<compile_context>
chip_gen: v5e
topology: v5e:2x2
jax: 0.10.0
libtpu: 0.0.40
codegen_flags: <defaults>
</compile_context>

<pallas_src>
import math

import jax
import jax.numpy as jnp
import numpy as np
from jax import lax
from jax.experimental import pallas as pl
from jax.experimental.pallas import tpu as pltpu

# ----------------------------- config ---------------------------------------
VOCAB_SIZE = 256
BLOCK_SIZE = 16
N_LAYER = 2
N_HEAD = 4
N_EMBD = 32
LN_EPS = 1e-5
NEG_INF = -1e30


# ------------------------- shared math helpers -------------------------------
def _layernorm(x, g, b):
    mu = jnp.mean(x, axis=-1, keepdims=True)
    var = jnp.mean((x - mu) ** 2, axis=-1, keepdims=True)
    return (x - mu) * lax.rsqrt(var + LN_EPS) * g + b


def _gelu_tanh(x):
    c = math.sqrt(2.0 / math.pi)
    return 0.5 * x * (1.0 + jnp.tanh(c * (x + 0.044715 * x * x * x)))


# --------------------------- fused Pallas kernel ------------------------------
def gpt_kernel(x_ref, bias_ref,
               ln1g_ref, ln1b_ref, wqkv_ref, bqkv_ref, wpr_ref, bpr_ref,
               ln2g_ref, ln2b_ref, wfc_ref, bfc_ref, wp2_ref, bp2_ref,
               lnfg_ref, lnfb_ref, wte_ref,
               o_ref):
    x = x_ref[...]                       # (B*T, D) all batch rows stacked
    BT, D = x.shape
    hd = D // N_HEAD
    scale = 1.0 / math.sqrt(hd)
    # Hoist the (1, BT, BT) broadcast of the block-diag causal bias out of the
    # layer loop (JAX does not CSE broadcast_in_dim).
    bias3 = bias_ref[...][None]

    def split_heads(m):                  # (BT, D) -> (H, BT, hd)
        return m.reshape(BT, N_HEAD, hd).swapaxes(0, 1)

    for l in range(N_LAYER):             # static unroll; static ref indexing
        # ---------------- attention ----------------
        xn = _layernorm(x, ln1g_ref[l], ln1b_ref[l])
        q = split_heads(jnp.dot(xn, wqkv_ref[l, 0],
                                preferred_element_type=jnp.float32)
                        + bqkv_ref[l, 0])
        k = split_heads(jnp.dot(xn, wqkv_ref[l, 1],
                                preferred_element_type=jnp.float32)
                        + bqkv_ref[l, 1])
        v = split_heads(jnp.dot(xn, wqkv_ref[l, 2],
                                preferred_element_type=jnp.float32)
                        + bqkv_ref[l, 2])

        s = jnp.einsum('htd,hsd->hts', q, k,
                       preferred_element_type=jnp.float32) * scale
        s = s + bias3                                    # masked (additive)
        s = s - jnp.max(s, axis=-1, keepdims=True)
        p = jnp.exp(s)
        p = p * pl.reciprocal(jnp.sum(p, axis=-1, keepdims=True), approx=True)

        y = jnp.einsum('hts,hsd->htd', p, v,
                       preferred_element_type=jnp.float32)
        y = y.swapaxes(0, 1).reshape(BT, D)              # back to (BT, D)
        y = jnp.dot(y, wpr_ref[l],
                    preferred_element_type=jnp.float32) + bpr_ref[l]
        x = x + y                                        # residual 1

        # ------------------ MLP --------------------
        xn2 = _layernorm(x, ln2g_ref[l], ln2b_ref[l])
        h1 = _gelu_tanh(jnp.dot(xn2, wfc_ref[l],
                                preferred_element_type=jnp.float32)
                        + bfc_ref[l])
        h2 = jnp.dot(h1, wp2_ref[l],
                     preferred_element_type=jnp.float32) + bp2_ref[l]
        x = x + h2                                       # residual 2

    # -------------- final LN + tied lm_head --------------
    xn = _layernorm(x, lnfg_ref[...], lnfb_ref[...])
    # logits = ln_f(x) @ wte.T, contracting the last dims (no XLU transpose)
    o_ref[...] = lax.dot_general(xn, wte_ref[...],
                                 (((1,), (1,)), ((), ())),
                                 preferred_element_type=jnp.float32)


# ------------------------------ wrappers --------------------------------------
def _causal_block_bias(B, T):
    """Additive attention bias for (B*T) flattened rows: 0 where attention is
    allowed (same batch & causal), NEG_INF elsewhere. Built at trace time."""
    i = np.arange(B * T)
    same_batch = (i[:, None] // T) == (i[None, :] // T)
    causal = i[:, None] >= i[None, :]
    return jnp.asarray(np.where(same_batch & causal, 0.0, NEG_INF),
                       dtype=jnp.float32)


def gpt_forward(idx, params, targets=None):
    B, T = idx.shape
    assert T <= BLOCK_SIZE, "input sequence length should be <= block size"
    D, V = N_EMBD, VOCAB_SIZE

    # embedding gather + positional add: tiny glue JAX outside the kernel
    x = (params["wte"][idx] + params["wpe"][:T][None]).reshape(B * T, D)
    bias = _causal_block_bias(B, T)

    logits = pl.pallas_call(
        gpt_kernel,
        out_shape=jax.ShapeDtypeStruct((B * T, V), jnp.float32),
        compiler_params=pltpu.CompilerParams(
            vmem_limit_bytes=32 * 1024 * 1024),
    )(x, bias,
      params["ln1_g"], params["ln1_b"],
      params["w_qkv"], params["b_qkv"],
      params["w_proj"], params["b_proj"],
      params["ln2_g"], params["ln2_b"],
      params["w_fc"], params["b_fc"],
      params["w_proj2"], params["b_proj2"],
      params["lnf_g"], params["lnf_b"],
      params["wte"])
    logits = logits.reshape(B, T, V)

    loss = None
    if targets is not None:
        logp = jax.nn.log_softmax(logits.reshape(-1, V), axis=-1)
        nll = -jnp.take_along_axis(logp, targets.reshape(-1, 1), axis=-1)
        loss = jnp.mean(nll)
    return logits, loss


# --------------------------- parameter init -----------------------------------
def init_params(key):
    D, V, P, L = N_EMBD, VOCAB_SIZE, BLOCK_SIZE, N_LAYER
    ks = jax.random.split(key, 10)

    def rnd(k, shape, scale=0.02):
        return scale * jax.random.normal(k, shape, jnp.float32)

    return dict(
        wte=rnd(ks[0], (V, D)),
        wpe=rnd(ks[1], (P, D)),
        lnf_g=jnp.ones((1, D), jnp.float32),
        lnf_b=jnp.zeros((1, D), jnp.float32),
        # per-layer weights stacked along a leading layer axis
        ln1_g=jnp.ones((L, 1, D), jnp.float32),
        ln1_b=jnp.zeros((L, 1, D), jnp.float32),
        ln2_g=jnp.ones((L, 1, D), jnp.float32),
        ln2_b=jnp.zeros((L, 1, D), jnp.float32),
        w_qkv=rnd(ks[2], (L, 3, D, D)),          # q/k/v weights pre-split
        b_qkv=rnd(ks[3], (L, 3, 1, D), 0.01),
        w_proj=rnd(ks[4], (L, D, D)),
        b_proj=rnd(ks[5], (L, 1, D), 0.01),
        w_fc=rnd(ks[6], (L, D, 4 * D)),
        b_fc=rnd(ks[7], (L, 1, 4 * D), 0.01),
        w_proj2=rnd(ks[8], (L, 4 * D, D)),
        b_proj2=rnd(ks[9], (L, 1, D), 0.01),
    )


# ---------------------------- pure-JAX reference -------------------------------
def ref_forward(idx, params):
    B, T = idx.shape
    D, H = N_EMBD, N_HEAD
    hd = D // H
    x = params["wte"][idx] + params["wpe"][:T][None]
    mask = jnp.tril(jnp.ones((T, T), bool))
    for l in range(N_LAYER):
        xn = _layernorm(x, params["ln1_g"][l], params["ln1_b"][l])
        q = xn @ params["w_qkv"][l, 0] + params["b_qkv"][l, 0]
        k = xn @ params["w_qkv"][l, 1] + params["b_qkv"][l, 1]
        v = xn @ params["w_qkv"][l, 2] + params["b_qkv"][l, 2]
        q = q.reshape(B, T, H, hd).transpose(0, 2, 1, 3)
        k = k.reshape(B, T, H, hd).transpose(0, 2, 1, 3)
        v = v.reshape(B, T, H, hd).transpose(0, 2, 1, 3)
        s = jnp.einsum("bhqd,bhkd->bhqk", q, k) / math.sqrt(hd)
        s = jnp.where(mask, s, -jnp.inf)
        p = jax.nn.softmax(s, axis=-1)
        y = jnp.einsum("bhqk,bhkd->bhqd", p, v).transpose(0, 2, 1, 3).reshape(B, T, D)
        x = x + (y @ params["w_proj"][l] + params["b_proj"][l])
        xn2 = _layernorm(x, params["ln2_g"][l], params["ln2_b"][l])
        h = _gelu_tanh(xn2 @ params["w_fc"][l] + params["b_fc"][l])
        x = x + (h @ params["w_proj2"][l] + params["b_proj2"][l])
    x = _layernorm(x, params["lnf_g"], params["lnf_b"])
    return x @ params["wte"].T


# ---------------------------------- main ---------------------------------------
if __name__ == "__main__":
    key = jax.random.PRNGKey(0)
    pkey, ikey, tkey = jax.random.split(key, 3)
    params = init_params(pkey)

    B, T = 2, 8
    idx = jax.random.randint(ikey, (B, T), 0, VOCAB_SIZE, dtype=jnp.int32)
    targets = jax.random.randint(tkey, (B, T), 0, VOCAB_SIZE, dtype=jnp.int32)

    fwd = jax.jit(gpt_forward)
    logits, loss = fwd(idx, params, targets)
    logits = jax.block_until_ready(logits)
    loss = jax.block_until_ready(loss)

    # reference logits / loss
    ref_logits = ref_forward(idx, params)
    ref_logp = jax.nn.log_softmax(ref_logits.reshape(-1, VOCAB_SIZE), axis=-1)
    ref_loss = jnp.mean(
        -jnp.take_along_axis(ref_logp, targets.reshape(-1, 1), axis=-1))

    np.testing.assert_allclose(np.asarray(logits), np.asarray(ref_logits),
                               rtol=1e-3, atol=1e-3)
    np.testing.assert_allclose(np.asarray(loss), np.asarray(ref_loss),
                               rtol=1e-3, atol=1e-3)
    print("KERNEL_OK")
</pallas_src>

<mosaic_0001>
module attributes {stable_mosaic.version = 11 : i64} {
  func.func @gpt_kernel(%arg0: memref<16x32xf32, #tpu.memory_space<vmem>>, %arg1: memref<16x16xf32, #tpu.memory_space<vmem>>, %arg2: memref<2x1x32xf32, #tpu.memory_space<vmem>>, %arg3: memref<2x1x32xf32, #tpu.memory_space<vmem>>, %arg4: memref<2x3x32x32xf32, #tpu.memory_space<vmem>>, %arg5: memref<2x3x1x32xf32, #tpu.memory_space<vmem>>, %arg6: memref<2x32x32xf32, #tpu.memory_space<vmem>>, %arg7: memref<2x1x32xf32, #tpu.memory_space<vmem>>, %arg8: memref<2x1x32xf32, #tpu.memory_space<vmem>>, %arg9: memref<2x1x32xf32, #tpu.memory_space<vmem>>, %arg10: memref<2x32x128xf32, #tpu.memory_space<vmem>>, %arg11: memref<2x1x128xf32, #tpu.memory_space<vmem>>, %arg12: memref<2x128x32xf32, #tpu.memory_space<vmem>>, %arg13: memref<2x1x32xf32, #tpu.memory_space<vmem>>, %arg14: memref<1x32xf32, #tpu.memory_space<vmem>>, %arg15: memref<1x32xf32, #tpu.memory_space<vmem>>, %arg16: memref<256x32xf32, #tpu.memory_space<vmem>>, %arg17: memref<16x256xf32, #tpu.memory_space<vmem>>) attributes {dimension_semantics = [], scalar_prefetch = 0 : i64, scratch_operands = 0 : i64, tpu.core_type = #tpu.core_type<tc>} {
    %c0 = arith.constant 0 : index
    %c0_0 = arith.constant 0 : index
    %0 = vector.load %arg0[%c0, %c0_0] : memref<16x32xf32, #tpu.memory_space<vmem>>, vector<16x32xf32>
    %c0_1 = arith.constant 0 : index
    %c0_2 = arith.constant 0 : index
    %1 = vector.load %arg1[%c0_1, %c0_2] : memref<16x16xf32, #tpu.memory_space<vmem>>, vector<16x16xf32>
    %2 = vector.shape_cast %1 : vector<16x16xf32> to vector<1x16x16xf32>
    %c0_3 = arith.constant 0 : index
    %c0_4 = arith.constant 0 : index
    %c0_5 = arith.constant 0 : index
    %3 = vector.load %arg2[%c0_3, %c0_4, %c0_5] : memref<2x1x32xf32, #tpu.memory_space<vmem>>, vector<1x1x32xf32>
    %4 = vector.shape_cast %3 : vector<1x1x32xf32> to vector<1x32xf32>
    %c0_6 = arith.constant 0 : index
    %c0_7 = arith.constant 0 : index
    %c0_8 = arith.constant 0 : index
    %5 = vector.load %arg3[%c0_6, %c0_7, %c0_8] : memref<2x1x32xf32, #tpu.memory_space<vmem>>, vector<1x1x32xf32>
    %6 = vector.shape_cast %5 : vector<1x1x32xf32> to vector<1x32xf32>
    %cst = arith.constant dense<0.000000e+00> : vector<16xf32>
    %7 = vector.multi_reduction <add>, %0, %cst [1] : vector<16x32xf32> to vector<16xf32>
    %8 = vector.shape_cast %7 : vector<16xf32> to vector<16x1xf32>
    %cst_9 = arith.constant 3.200000e+01 : f32
    %9 = vector.broadcast %cst_9 : f32 to vector<16x1xf32>
    %10 = arith.divf %8, %9 : vector<16x1xf32>
    %11 = vector.broadcast %10 : vector<16x1xf32> to vector<16x32xf32>
    %12 = arith.subf %0, %11 : vector<16x32xf32>
    %13 = arith.mulf %12, %12 : vector<16x32xf32>
    %cst_10 = arith.constant dense<0.000000e+00> : vector<16xf32>
    %14 = vector.multi_reduction <add>, %13, %cst_10 [1] : vector<16x32xf32> to vector<16xf32>
    %15 = vector.shape_cast %14 : vector<16xf32> to vector<16x1xf32>
    %cst_11 = arith.constant 3.200000e+01 : f32
    %16 = vector.broadcast %cst_11 : f32 to vector<16x1xf32>
    %17 = arith.divf %15, %16 : vector<16x1xf32>
    %18 = vector.broadcast %10 : vector<16x1xf32> to vector<16x32xf32>
    %19 = arith.subf %0, %18 : vector<16x32xf32>
    %cst_12 = arith.constant 9.99999974E-6 : f32
    %20 = vector.broadcast %cst_12 : f32 to vector<16x1xf32>
    %21 = arith.addf %17, %20 : vector<16x1xf32>
    %22 = math.rsqrt %21 : vector<16x1xf32>
    %23 = vector.broadcast %22 : vector<16x1xf32> to vector<16x32xf32>
    %24 = arith.mulf %19, %23 : vector<16x32xf32>
    %25 = vector.broadcast %4 : vector<1x32xf32> to vector<16x32xf32>
    %26 = arith.mulf %24, %25 : vector<16x32xf32>
    %27 = vector.broadcast %6 : vector<1x32xf32> to vector<16x32xf32>
    %28 = arith.addf %26, %27 : vector<16x32xf32>
    %c0_13 = arith.constant 0 : index
    %c0_14 = arith.constant 0 : index
    %c0_15 = arith.constant 0 : index
    %c0_16 = arith.constant 0 : index
    %29 = vector.load %arg4[%c0_13, %c0_14, %c0_15, %c0_16] : memref<2x3x32x32xf32, #tpu.memory_space<vmem>>, vector<1x1x32x32xf32>
    %30 = vector.shape_cast %29 : vector<1x1x32x32xf32> to vector<32x32xf32>
    %cst_17 = arith.constant dense<0.000000e+00> : vector<16x32xf32>
    %31 = tpu.matmul %28, %30, %cst_17 {dimension_numbers = #tpu.dot_dimension_numbers<[1], [0], [0], [1], [0, 0, 1, 1], [], []>} : vector<16x32xf32>, vector<32x32xf32>, vector<16x32xf32> -> vector<16x32xf32>
    %c0_18 = arith.constant 0 : index
    %c0_19 = arith.constant 0 : index
    %c0_20 = arith.constant 0 : index
    %c0_21 = arith.constant 0 : index
    %32 = vector.load %arg5[%c0_18, %c0_19, %c0_20, %c0_21] : memref<2x3x1x32xf32, #tpu.memory_space<vmem>>, vector<1x1x1x32xf32>
    %33 = vector.shape_cast %32 : vector<1x1x1x32xf32> to vector<1x32xf32>
    %34 = vector.broadcast %33 : vector<1x32xf32> to vector<16x32xf32>
    %35 = arith.addf %31, %34 : vector<16x32xf32>
    %36 = vector.shape_cast %35 : vector<16x32xf32> to vector<16x4x8xf32>
    %37 = tpu.transpose %36, [1, 0, 2] : vector<16x4x8xf32> -> vector<4x16x8xf32>
    %c0_22 = arith.constant 0 : index
    %c1 = arith.constant 1 : index
    %c0_23 = arith.constant 0 : index
    %c0_24 = arith.constant 0 : index
    %38 = vector.load %arg4[%c0_22, %c1, %c0_23, %c0_24] : memref<2x3x32x32xf32, #tpu.memory_space<vmem>>, vector<1x1x32x32xf32>
    %39 = vector.shape_cast %38 : vector<1x1x32x32xf32> to vector<32x32xf32>
    %cst_25 = arith.constant dense<0.000000e+00> : vector<16x32xf32>
    %40 = tpu.matmul %28, %39, %cst_25 {dimension_numbers = #tpu.dot_dimension_numbers<[1], [0], [0], [1], [0, 0, 1, 1], [], []>} : vector<16x32xf32>, vector<32x32xf32>, vector<16x32xf32> -> vector<16x32xf32>
    %c0_26 = arith.constant 0 : index
    %c1_27 = arith.constant 1 : index
    %c0_28 = arith.constant 0 : index
    %c0_29 = arith.constant 0 : index
    %41 = vector.load %arg5[%c0_26, %c1_27, %c0_28, %c0_29] : memref<2x3x1x32xf32, #tpu.memory_space<vmem>>, vector<1x1x1x32xf32>
    %42 = vector.shape_cast %41 : vector<1x1x1x32xf32> to vector<1x32xf32>
    %43 = vector.broadcast %42 : vector<1x32xf32> to vector<16x32xf32>
    %44 = arith.addf %40, %43 : vector<16x32xf32>
    %45 = vector.shape_cast %44 : vector<16x32xf32> to vector<16x4x8xf32>
    %46 = tpu.transpose %45, [1, 0, 2] : vector<16x4x8xf32> -> vector<4x16x8xf32>
    %c0_30 = arith.constant 0 : index
    %c2 = arith.constant 2 : index
    %c0_31 = arith.constant 0 : index
    %c0_32 = arith.constant 0 : index
    %47 = vector.load %arg4[%c0_30, %c2, %c0_31, %c0_32] : memref<2x3x32x32xf32, #tpu.memory_space<vmem>>, vector<1x1x32x32xf32>
    %48 = vector.shape_cast %47 : vector<1x1x32x32xf32> to vector<32x32xf32>
    %cst_33 = arith.constant dense<0.000000e+00> : vector<16x32xf32>
    %49 = tpu.matmul %28, %48, %cst_33 {dimension_numbers = #tpu.dot_dimension_numbers<[1], [0], [0], [1], [0, 0, 1, 1], [], []>} : vector<16x32xf32>, vector<32x32xf32>, vector<16x32xf32> -> vector<16x32xf32>
    %c0_34 = arith.constant 0 : index
    %c2_35 = arith.constant 2 : index
    %c0_36 = arith.constant 0 : index
    %c0_37 = arith.constant 0 : index
    %50 = vector.load %arg5[%c0_34, %c2_35, %c0_36, %c0_37] : memref<2x3x1x32xf32, #tpu.memory_space<vmem>>, vector<1x1x1x32xf32>
    %51 = vector.shape_cast %50 : vector<1x1x1x32xf32> to vector<1x32xf32>
    %52 = vector.broadcast %51 : vector<1x32xf32> to vector<16x32xf32>
    %53 = arith.addf %49, %52 : vector<16x32xf32>
    %54 = vector.shape_cast %53 : vector<16x32xf32> to vector<16x4x8xf32>
    %55 = tpu.transpose %54, [1, 0, 2] : vector<16x4x8xf32> -> vector<4x16x8xf32>
    "tpu.trace_start"() <{level = 10 : i32, message = "htd,hsd->hts"}> : () -> ()
    %cst_38 = arith.constant dense<0.000000e+00> : vector<4x16x16xf32>
    %56 = tpu.matmul %37, %46, %cst_38 {dimension_numbers = #tpu.dot_dimension_numbers<[2], [2], [1], [1], [0, 0, 0, 1, 1, 1], [0], [0]>} : vector<4x16x8xf32>, vector<4x16x8xf32>, vector<4x16x16xf32> -> vector<4x16x16xf32>
    "tpu.trace_stop"() : () -> ()
    %cst_39 = arith.constant 0.353553385 : f32
    %57 = vector.broadcast %cst_39 : f32 to vector<4x16x16xf32>
    %58 = arith.mulf %56, %57 : vector<4x16x16xf32>
    %59 = vector.broadcast %2 : vector<1x16x16xf32> to vector<4x16x16xf32>
    %60 = arith.addf %58, %59 : vector<4x16x16xf32>
    %cst_40 = arith.constant dense<0xFF800000> : vector<4x16xf32>
    %61 = vector.multi_reduction <maximumf>, %60, %cst_40 [2] : vector<4x16x16xf32> to vector<4x16xf32>
    %62 = vector.shape_cast %61 : vector<4x16xf32> to vector<4x16x1xf32>
    %63 = vector.broadcast %62 : vector<4x16x1xf32> to vector<4x16x16xf32>
    %64 = arith.subf %60, %63 : vector<4x16x16xf32>
    %65 = math.exp %64 : vector<4x16x16xf32>
    %cst_41 = arith.constant dense<0.000000e+00> : vector<4x16xf32>
    %66 = vector.multi_reduction <add>, %65, %cst_41 [2] : vector<4x16x16xf32> to vector<4x16xf32>
    %67 = vector.shape_cast %66 : vector<4x16xf32> to vector<4x16x1xf32>
    %68 = tpu.reciprocal %67 {approx = true} : vector<4x16x1xf32> -> vector<4x16x1xf32>
    %69 = vector.broadcast %68 : vector<4x16x1xf32> to vector<4x16x16xf32>
    %70 = arith.mulf %65, %69 : vector<4x16x16xf32>
    "tpu.trace_start"() <{level = 10 : i32, message = "hts,hsd->htd"}> : () -> ()
    %cst_42 = arith.constant dense<0.000000e+00> : vector<4x16x8xf32>
    %71 = tpu.matmul %70, %55, %cst_42 {dimension_numbers = #tpu.dot_dimension_numbers<[2], [1], [1], [2], [0, 0, 0, 1, 1, 2], [0], [0]>} : vector<4x16x16xf32>, vector<4x16x8xf32>, vector<4x16x8xf32> -> vector<4x16x8xf32>
    "tpu.trace_stop"() : () -> ()
    %72 = tpu.transpose %71, [1, 0, 2] : vector<4x16x8xf32> -> vector<16x4x8xf32>
    %73 = vector.shape_cast %72 : vector<16x4x8xf32> to vector<16x32xf32>
    %c0_43 = arith.constant 0 : index
    %c0_44 = arith.constant 0 : index
    %c0_45 = arith.constant 0 : index
    %74 = vector.load %arg6[%c0_43, %c0_44, %c0_45] : memref<2x32x32xf32, #tpu.memory_space<vmem>>, vector<1x32x32xf32>
    %75 = vector.shape_cast %74 : vector<1x32x32xf32> to vector<32x32xf32>
    %cst_46 = arith.constant dense<0.000000e+00> : vector<16x32xf32>
    %76 = tpu.matmul %73, %75, %cst_46 {dimension_numbers = #tpu.dot_dimension_numbers<[1], [0], [0], [1], [0, 0, 1, 1], [], []>} : vector<16x32xf32>, vector<32x32xf32>, vector<16x32xf32> -> vector<16x32xf32>
    %c0_47 = arith.constant 0 : index
    %c0_48 = arith.constant 0 : index
    %c0_49 = arith.constant 0 : index
    %77 = vector.load %arg7[%c0_47, %c0_48, %c0_49] : memref<2x1x32xf32, #tpu.memory_space<vmem>>, vector<1x1x32xf32>
    %78 = vector.shape_cast %77 : vector<1x1x32xf32> to vector<1x32xf32>
    %79 = vector.broadcast %78 : vector<1x32xf32> to vector<16x32xf32>
    %80 = arith.addf %76, %79 : vector<16x32xf32>
    %81 = arith.addf %0, %80 : vector<16x32xf32>
    %c0_50 = arith.constant 0 : index
    %c0_51 = arith.constant 0 : index
    %c0_52 = arith.constant 0 : index
    %82 = vector.load %arg8[%c0_50, %c0_51, %c0_52] : memref<2x1x32xf32, #tpu.memory_space<vmem>>, vector<1x1x32xf32>
    %83 = vector.shape_cast %82 : vector<1x1x32xf32> to vector<1x32xf32>
    %c0_53 = arith.constant 0 : index
    %c0_54 = arith.constant 0 : index
    %c0_55 = arith.constant 0 : index
    %84 = vector.load %arg9[%c0_53, %c0_54, %c0_55] : memref<2x1x32xf32, #tpu.memory_space<vmem>>, vector<1x1x32xf32>
    %85 = vector.shape_cast %84 : vector<1x1x32xf32> to vector<1x32xf32>
    %cst_56 = arith.constant dense<0.000000e+00> : vector<16xf32>
    %86 = vector.multi_reduction <add>, %81, %cst_56 [1] : vector<16x32xf32> to vector<16xf32>
    %87 = vector.shape_cast %86 : vector<16xf32> to vector<16x1xf32>
    %cst_57 = arith.constant 3.200000e+01 : f32
    %88 = vector.broadcast %cst_57 : f32 to vector<16x1xf32>
    %89 = arith.divf %87, %88 : vector<16x1xf32>
    %90 = vector.broadcast %89 : vector<16x1xf32> to vector<16x32xf32>
    %91 = arith.subf %81, %90 : vector<16x32xf32>
    %92 = arith.mulf %91, %91 : vector<16x32xf32>
    %cst_58 = arith.constant dense<0.000000e+00> : vector<16xf32>
    %93 = vector.multi_reduction <add>, %92, %cst_58 [1] : vector<16x32xf32> to vector<16xf32>
    %94 = vector.shape_cast %93 : vector<16xf32> to vector<16x1xf32>
    %cst_59 = arith.constant 3.200000e+01 : f32
    %95 = vector.broadcast %cst_59 : f32 to vector<16x1xf32>
    %96 = arith.divf %94, %95 : vector<16x1xf32>
    %97 = vector.broadcast %89 : vector<16x1xf32> to vector<16x32xf32>
    %98 = arith.subf %81, %97 : vector<16x32xf32>
    %cst_60 = arith.constant 9.99999974E-6 : f32
    %99 = vector.broadcast %cst_60 : f32 to vector<16x1xf32>
    %100 = arith.addf %96, %99 : vector<16x1xf32>
    %101 = math.rsqrt %100 : vector<16x1xf32>
    %102 = vector.broadcast %101 : vector<16x1xf32> to vector<16x32xf32>
    %103 = arith.mulf %98, %102 : vector<16x32xf32>
    %104 = vector.broadcast %83 : vector<1x32xf32> to vector<16x32xf32>
    %105 = arith.mulf %103, %104 : vector<16x32xf32>
    %106 = vector.broadcast %85 : vector<1x32xf32> to vector<16x32xf32>
    %107 = arith.addf %105, %106 : vector<16x32xf32>
    %c0_61 = arith.constant 0 : index
    %c0_62 = arith.constant 0 : index
    %c0_63 = arith.constant 0 : index
    %108 = vector.load %arg10[%c0_61, %c0_62, %c0_63] : memref<2x32x128xf32, #tpu.memory_space<vmem>>, vector<1x32x128xf32>
    %109 = vector.shape_cast %108 : vector<1x32x128xf32> to vector<32x128xf32>
    %cst_64 = arith.constant dense<0.000000e+00> : vector<16x128xf32>
    %110 = tpu.matmul %107, %109, %cst_64 {dimension_numbers = #tpu.dot_dimension_numbers<[1], [0], [0], [1], [0, 0, 1, 1], [], []>} : vector<16x32xf32>, vector<32x128xf32>, vector<16x128xf32> -> vector<16x128xf32>
    %c0_65 = arith.constant 0 : index
    %c0_66 = arith.constant 0 : index
    %c0_67 = arith.constant 0 : index
    %111 = vector.load %arg11[%c0_65, %c0_66, %c0_67] : memref<2x1x128xf32, #tpu.memory_space<vmem>>, vector<1x1x128xf32>
    %112 = vector.shape_cast %111 : vector<1x1x128xf32> to vector<1x128xf32>
    %113 = vector.broadcast %112 : vector<1x128xf32> to vector<16x128xf32>
    %114 = arith.addf %110, %113 : vector<16x128xf32>
    %cst_68 = arith.constant 5.000000e-01 : f32
    %115 = vector.broadcast %cst_68 : f32 to vector<16x128xf32>
    %116 = arith.mulf %115, %114 : vector<16x128xf32>
    %cst_69 = arith.constant 4.471500e-02 : f32
    %117 = vector.broadcast %cst_69 : f32 to vector<16x128xf32>
    %118 = arith.mulf %117, %114 : vector<16x128xf32>
    %119 = arith.mulf %118, %114 : vector<16x128xf32>
    %120 = arith.mulf %119, %114 : vector<16x128xf32>
    %121 = arith.addf %114, %120 : vector<16x128xf32>
    %cst_70 = arith.constant 0.797884583 : f32
    %122 = vector.broadcast %cst_70 : f32 to vector<16x128xf32>
    %123 = arith.mulf %122, %121 : vector<16x128xf32>
    %124 = math.tanh %123 : vector<16x128xf32>
    %cst_71 = arith.constant 1.000000e+00 : f32
    %125 = vector.broadcast %cst_71 : f32 to vector<16x128xf32>
    %126 = arith.addf %125, %124 : vector<16x128xf32>
    %127 = arith.mulf %116, %126 : vector<16x128xf32>
    %c0_72 = arith.constant 0 : index
    %c0_73 = arith.constant 0 : index
    %c0_74 = arith.constant 0 : index
    %128 = vector.load %arg12[%c0_72, %c0_73, %c0_74] : memref<2x128x32xf32, #tpu.memory_space<vmem>>, vector<1x128x32xf32>
    %129 = vector.shape_cast %128 : vector<1x128x32xf32> to vector<128x32xf32>
    %cst_75 = arith.constant dense<0.000000e+00> : vector<16x32xf32>
    %130 = tpu.matmul %127, %129, %cst_75 {dimension_numbers = #tpu.dot_dimension_numbers<[1], [0], [0], [1], [0, 0, 1, 1], [], []>} : vector<16x128xf32>, vector<128x32xf32>, vector<16x32xf32> -> vector<16x32xf32>
    %c0_76 = arith.constant 0 : index
    %c0_77 = arith.constant 0 : index
    %c0_78 = arith.constant 0 : index
    %131 = vector.load %arg13[%c0_76, %c0_77, %c0_78] : memref<2x1x32xf32, #tpu.memory_space<vmem>>, vector<1x1x32xf32>
    %132 = vector.shape_cast %131 : vector<1x1x32xf32> to vector<1x32xf32>
    %133 = vector.broadcast %132 : vector<1x32xf32> to vector<16x32xf32>
    %134 = arith.addf %130, %133 : vector<16x32xf32>
    %135 = arith.addf %81, %134 : vector<16x32xf32>
    %c1_79 = arith.constant 1 : index
    %c0_80 = arith.constant 0 : index
    %c0_81 = arith.constant 0 : index
    %136 = vector.load %arg2[%c1_79, %c0_80, %c0_81] : memref<2x1x32xf32, #tpu.memory_space<vmem>>, vector<1x1x32xf32>
    %137 = vector.shape_cast %136 : vector<1x1x32xf32> to vector<1x32xf32>
    %c1_82 = arith.constant 1 : index
    %c0_83 = arith.constant 0 : index
    %c0_84 = arith.constant 0 : index
    %138 = vector.load %arg3[%c1_82, %c0_83, %c0_84] : memref<2x1x32xf32, #tpu.memory_space<vmem>>, vector<1x1x32xf32>
    %139 = vector.shape_cast %138 : vector<1x1x32xf32> to vector<1x32xf32>
    %cst_85 = arith.constant dense<0.000000e+00> : vector<16xf32>
    %140 = vector.multi_reduction <add>, %135, %cst_85 [1] : vector<16x32xf32> to vector<16xf32>
    %141 = vector.shape_cast %140 : vector<16xf32> to vector<16x1xf32>
    %cst_86 = arith.constant 3.200000e+01 : f32
    %142 = vector.broadcast %cst_86 : f32 to vector<16x1xf32>
    %143 = arith.divf %141, %142 : vector<16x1xf32>
    %144 = vector.broadcast %143 : vector<16x1xf32> to vector<16x32xf32>
    %145 = arith.subf %135, %144 : vector<16x32xf32>
    %146 = arith.mulf %145, %145 : vector<16x32xf32>
    %cst_87 = arith.constant dense<0.000000e+00> : vector<16xf32>
    %147 = vector.multi_reduction <add>, %146, %cst_87 [1] : vector<16x32xf32> to vector<16xf32>
    %148 = vector.shape_cast %147 : vector<16xf32> to vector<16x1xf32>
    %cst_88 = arith.constant 3.200000e+01 : f32
    %149 = vector.broadcast %cst_88 : f32 to vector<16x1xf32>
    %150 = arith.divf %148, %149 : vector<16x1xf32>
    %151 = vector.broadcast %143 : vector<16x1xf32> to vector<16x32xf32>
    %152 = arith.subf %135, %151 : vector<16x32xf32>
    %cst_89 = arith.constant 9.99999974E-6 : f32
    %153 = vector.broadcast %cst_89 : f32 to vector<16x1xf32>
    %154 = arith.addf %150, %153 : vector<16x1xf32>
    %155 = math.rsqrt %154 : vector<16x1xf32>
    %156 = vector.broadcast %155 : vector<16x1xf32> to vector<16x32xf32>
    %157 = arith.mulf %152, %156 : vector<16x32xf32>
    %158 = vector.broadcast %137 : vector<1x32xf32> to vector<16x32xf32>
    %159 = arith.mulf %157, %158 : vector<16x32xf32>
    %160 = vector.broadcast %139 : vector<1x32xf32> to vector<16x32xf32>
    %161 = arith.addf %159, %160 : vector<16x32xf32>
    %c1_90 = arith.constant 1 : index
    %c0_91 = arith.constant 0 : index
    %c0_92 = arith.constant 0 : index
    %c0_93 = arith.constant 0 : index
    %162 = vector.load %arg4[%c1_90, %c0_91, %c0_92, %c0_93] : memref<2x3x32x32xf32, #tpu.memory_space<vmem>>, vector<1x1x32x32xf32>
    %163 = vector.shape_cast %162 : vector<1x1x32x32xf32> to vector<32x32xf32>
    %cst_94 = arith.constant dense<0.000000e+00> : vector<16x32xf32>
    %164 = tpu.matmul %161, %163, %cst_94 {dimension_numbers = #tpu.dot_dimension_numbers<[1], [0], [0], [1], [0, 0, 1, 1], [], []>} : vector<16x32xf32>, vector<32x32xf32>, vector<16x32xf32> -> vector<16x32xf32>
    %c1_95 = arith.constant 1 : index
    %c0_96 = arith.constant 0 : index
    %c0_97 = arith.constant 0 : index
    %c0_98 = arith.constant 0 : index
    %165 = vector.load %arg5[%c1_95, %c0_96, %c0_97, %c0_98] : memref<2x3x1x32xf32, #tpu.memory_space<vmem>>, vector<1x1x1x32xf32>
    %166 = vector.shape_cast %165 : vector<1x1x1x32xf32> to vector<1x32xf32>
    %167 = vector.broadcast %166 : vector<1x32xf32> to vector<16x32xf32>
    %168 = arith.addf %164, %167 : vector<16x32xf32>
    %169 = vector.shape_cast %168 : vector<16x32xf32> to vector<16x4x8xf32>
    %170 = tpu.transpose %169, [1, 0, 2] : vector<16x4x8xf32> -> vector<4x16x8xf32>
    %c1_99 = arith.constant 1 : index
    %c1_100 = arith.constant 1 : index
    %c0_101 = arith.constant 0 : index
    %c0_102 = arith.constant 0 : index
    %171 = vector.load %arg4[%c1_99, %c1_100, %c0_101, %c0_102] : memref<2x3x32x32xf32, #tpu.memory_space<vmem>>, vector<1x1x32x32xf32>
    %172 = vector.shape_cast %171 : vector<1x1x32x32xf32> to vector<32x32xf32>
    %cst_103 = arith.constant dense<0.000000e+00> : vector<16x32xf32>
    %173 = tpu.matmul %161, %172, %cst_103 {dimension_numbers = #tpu.dot_dimension_numbers<[1], [0], [0], [1], [0, 0, 1, 1], [], []>} : vector<16x32xf32>, vector<32x32xf32>, vector<16x32xf32> -> vector<16x32xf32>
    %c1_104 = arith.constant 1 : index
    %c1_105 = arith.constant 1 : index
    %c0_106 = arith.constant 0 : index
    %c0_107 = arith.constant 0 : index
    %174 = vector.load %arg5[%c1_104, %c1_105, %c0_106, %c0_107] : memref<2x3x1x32xf32, #tpu.memory_space<vmem>>, vector<1x1x1x32xf32>
    %175 = vector.shape_cast %174 : vector<1x1x1x32xf32> to vector<1x32xf32>
    %176 = vector.broadcast %175 : vector<1x32xf32> to vector<16x32xf32>
    %177 = arith.addf %173, %176 : vector<16x32xf32>
    %178 = vector.shape_cast %177 : vector<16x32xf32> to vector<16x4x8xf32>
    %179 = tpu.transpose %178, [1, 0, 2] : vector<16x4x8xf32> -> vector<4x16x8xf32>
    %c1_108 = arith.constant 1 : index
    %c2_109 = arith.constant 2 : index
    %c0_110 = arith.constant 0 : index
    %c0_111 = arith.constant 0 : index
    %180 = vector.load %arg4[%c1_108, %c2_109, %c0_110, %c0_111] : memref<2x3x32x32xf32, #tpu.memory_space<vmem>>, vector<1x1x32x32xf32>
    %181 = vector.shape_cast %180 : vector<1x1x32x32xf32> to vector<32x32xf32>
    %cst_112 = arith.constant dense<0.000000e+00> : vector<16x32xf32>
    %182 = tpu.matmul %161, %181, %cst_112 {dimension_numbers = #tpu.dot_dimension_numbers<[1], [0], [0], [1], [0, 0, 1, 1], [], []>} : vector<16x32xf32>, vector<32x32xf32>, vector<16x32xf32> -> vector<16x32xf32>
    %c1_113 = arith.constant 1 : index
    %c2_114 = arith.constant 2 : index
    %c0_115 = arith.constant 0 : index
    %c0_116 = arith.constant 0 : index
    %183 = vector.load %arg5[%c1_113, %c2_114, %c0_115, %c0_116] : memref<2x3x1x32xf32, #tpu.memory_space<vmem>>, vector<1x1x1x32xf32>
    %184 = vector.shape_cast %183 : vector<1x1x1x32xf32> to vector<1x32xf32>
    %185 = vector.broadcast %184 : vector<1x32xf32> to vector<16x32xf32>
    %186 = arith.addf %182, %185 : vector<16x32xf32>
    %187 = vector.shape_cast %186 : vector<16x32xf32> to vector<16x4x8xf32>
    %188 = tpu.transpose %187, [1, 0, 2] : vector<16x4x8xf32> -> vector<4x16x8xf32>
    "tpu.trace_start"() <{level = 10 : i32, message = "htd,hsd->hts"}> : () -> ()
    %cst_117 = arith.constant dense<0.000000e+00> : vector<4x16x16xf32>
    %189 = tpu.matmul %170, %179, %cst_117 {dimension_numbers = #tpu.dot_dimension_numbers<[2], [2], [1], [1], [0, 0, 0, 1, 1, 1], [0], [0]>} : vector<4x16x8xf32>, vector<4x16x8xf32>, vector<4x16x16xf32> -> vector<4x16x16xf32>
    "tpu.trace_stop"() : () -> ()
    %cst_118 = arith.constant 0.353553385 : f32
    %190 = vector.broadcast %cst_118 : f32 to vector<4x16x16xf32>
    %191 = arith.mulf %189, %190 : vector<4x16x16xf32>
    %192 = vector.broadcast %2 : vector<1x16x16xf32> to vector<4x16x16xf32>
    %193 = arith.addf %191, %192 : vector<4x16x16xf32>
    %cst_119 = arith.constant dense<0xFF800000> : vector<4x16xf32>
    %194 = vector.multi_reduction <maximumf>, %193, %cst_119 [2] : vector<4x16x16xf32> to vector<4x16xf32>
    %195 = vector.shape_cast %194 : vector<4x16xf32> to vector<4x16x1xf32>
    %196 = vector.broadcast %195 : vector<4x16x1xf32> to vector<4x16x16xf32>
    %197 = arith.subf %193, %196 : vector<4x16x16xf32>
    %198 = math.exp %197 : vector<4x16x16xf32>
    %cst_120 = arith.constant dense<0.000000e+00> : vector<4x16xf32>
    %199 = vector.multi_reduction <add>, %198, %cst_120 [2] : vector<4x16x16xf32> to vector<4x16xf32>
    %200 = vector.shape_cast %199 : vector<4x16xf32> to vector<4x16x1xf32>
    %201 = tpu.reciprocal %200 {approx = true} : vector<4x16x1xf32> -> vector<4x16x1xf32>
    %202 = vector.broadcast %201 : vector<4x16x1xf32> to vector<4x16x16xf32>
    %203 = arith.mulf %198, %202 : vector<4x16x16xf32>
    "tpu.trace_start"() <{level = 10 : i32, message = "hts,hsd->htd"}> : () -> ()
    %cst_121 = arith.constant dense<0.000000e+00> : vector<4x16x8xf32>
    %204 = tpu.matmul %203, %188, %cst_121 {dimension_numbers = #tpu.dot_dimension_numbers<[2], [1], [1], [2], [0, 0, 0, 1, 1, 2], [0], [0]>} : vector<4x16x16xf32>, vector<4x16x8xf32>, vector<4x16x8xf32> -> vector<4x16x8xf32>
    "tpu.trace_stop"() : () -> ()
    %205 = tpu.transpose %204, [1, 0, 2] : vector<4x16x8xf32> -> vector<16x4x8xf32>
    %206 = vector.shape_cast %205 : vector<16x4x8xf32> to vector<16x32xf32>
    %c1_122 = arith.constant 1 : index
    %c0_123 = arith.constant 0 : index
    %c0_124 = arith.constant 0 : index
    %207 = vector.load %arg6[%c1_122, %c0_123, %c0_124] : memref<2x32x32xf32, #tpu.memory_space<vmem>>, vector<1x32x32xf32>
    %208 = vector.shape_cast %207 : vector<1x32x32xf32> to vector<32x32xf32>
    %cst_125 = arith.constant dense<0.000000e+00> : vector<16x32xf32>
    %209 = tpu.matmul %206, %208, %cst_125 {dimension_numbers = #tpu.dot_dimension_numbers<[1], [0], [0], [1], [0, 0, 1, 1], [], []>} : vector<16x32xf32>, vector<32x32xf32>, vector<16x32xf32> -> vector<16x32xf32>
    %c1_126 = arith.constant 1 : index
    %c0_127 = arith.constant 0 : index
    %c0_128 = arith.constant 0 : index
    %210 = vector.load %arg7[%c1_126, %c0_127, %c0_128] : memref<2x1x32xf32, #tpu.memory_space<vmem>>, vector<1x1x32xf32>
    %211 = vector.shape_cast %210 : vector<1x1x32xf32> to vector<1x32xf32>
    %212 = vector.broadcast %211 : vector<1x32xf32> to vector<16x32xf32>
    %213 = arith.addf %209, %212 : vector<16x32xf32>
    %214 = arith.addf %135, %213 : vector<16x32xf32>
    %c1_129 = arith.constant 1 : index
    %c0_130 = arith.constant 0 : index
    %c0_131 = arith.constant 0 : index
    %215 = vector.load %arg8[%c1_129, %c0_130, %c0_131] : memref<2x1x32xf32, #tpu.memory_space<vmem>>, vector<1x1x32xf32>
    %216 = vector.shape_cast %215 : vector<1x1x32xf32> to vector<1x32xf32>
    %c1_132 = arith.constant 1 : index
    %c0_133 = arith.constant 0 : index
    %c0_134 = arith.constant 0 : index
    %217 = vector.load %arg9[%c1_132, %c0_133, %c0_134] : memref<2x1x32xf32, #tpu.memory_space<vmem>>, vector<1x1x32xf32>
    %218 = vector.shape_cast %217 : vector<1x1x32xf32> to vector<1x32xf32>
    %cst_135 = arith.constant dense<0.000000e+00> : vector<16xf32>
    %219 = vector.multi_reduction <add>, %214, %cst_135 [1] : vector<16x32xf32> to vector<16xf32>
    %220 = vector.shape_cast %219 : vector<16xf32> to vector<16x1xf32>
    %cst_136 = arith.constant 3.200000e+01 : f32
    %221 = vector.broadcast %cst_136 : f32 to vector<16x1xf32>
    %222 = arith.divf %220, %221 : vector<16x1xf32>
    %223 = vector.broadcast %222 : vector<16x1xf32> to vector<16x32xf32>
    %224 = arith.subf %214, %223 : vector<16x32xf32>
    %225 = arith.mulf %224, %224 : vector<16x32xf32>
    %cst_137 = arith.constant dense<0.000000e+00> : vector<16xf32>
    %226 = vector.multi_reduction <add>, %225, %cst_137 [1] : vector<16x32xf32> to vector<16xf32>
    %227 = vector.shape_cast %226 : vector<16xf32> to vector<16x1xf32>
    %cst_138 = arith.constant 3.200000e+01 : f32
    %228 = vector.broadcast %cst_138 : f32 to vector<16x1xf32>
    %229 = arith.divf %227, %228 : vector<16x1xf32>
    %230 = vector.broadcast %222 : vector<16x1xf32> to vector<16x32xf32>
    %231 = arith.subf %214, %230 : vector<16x32xf32>
    %cst_139 = arith.constant 9.99999974E-6 : f32
    %232 = vector.broadcast %cst_139 : f32 to vector<16x1xf32>
    %233 = arith.addf %229, %232 : vector<16x1xf32>
    %234 = math.rsqrt %233 : vector<16x1xf32>
    %235 = vector.broadcast %234 : vector<16x1xf32> to vector<16x32xf32>
    %236 = arith.mulf %231, %235 : vector<16x32xf32>
    %237 = vector.broadcast %216 : vector<1x32xf32> to vector<16x32xf32>
    %238 = arith.mulf %236, %237 : vector<16x32xf32>
    %239 = vector.broadcast %218 : vector<1x32xf32> to vector<16x32xf32>
    %240 = arith.addf %238, %239 : vector<16x32xf32>
    %c1_140 = arith.constant 1 : index
    %c0_141 = arith.constant 0 : index
    %c0_142 = arith.constant 0 : index
    %241 = vector.load %arg10[%c1_140, %c0_141, %c0_142] : memref<2x32x128xf32, #tpu.memory_space<vmem>>, vector<1x32x128xf32>
    %242 = vector.shape_cast %241 : vector<1x32x128xf32> to vector<32x128xf32>
    %cst_143 = arith.constant dense<0.000000e+00> : vector<16x128xf32>
    %243 = tpu.matmul %240, %242, %cst_143 {dimension_numbers = #tpu.dot_dimension_numbers<[1], [0], [0], [1], [0, 0, 1, 1], [], []>} : vector<16x32xf32>, vector<32x128xf32>, vector<16x128xf32> -> vector<16x128xf32>
    %c1_144 = arith.constant 1 : index
    %c0_145 = arith.constant 0 : index
    %c0_146 = arith.constant 0 : index
    %244 = vector.load %arg11[%c1_144, %c0_145, %c0_146] : memref<2x1x128xf32, #tpu.memory_space<vmem>>, vector<1x1x128xf32>
    %245 = vector.shape_cast %244 : vector<1x1x128xf32> to vector<1x128xf32>
    %246 = vector.broadcast %245 : vector<1x128xf32> to vector<16x128xf32>
    %247 = arith.addf %243, %246 : vector<16x128xf32>
    %cst_147 = arith.constant 5.000000e-01 : f32
    %248 = vector.broadcast %cst_147 : f32 to vector<16x128xf32>
    %249 = arith.mulf %248, %247 : vector<16x128xf32>
    %cst_148 = arith.constant 4.471500e-02 : f32
    %250 = vector.broadcast %cst_148 : f32 to vector<16x128xf32>
    %251 = arith.mulf %250, %247 : vector<16x128xf32>
    %252 = arith.mulf %251, %247 : vector<16x128xf32>
    %253 = arith.mulf %252, %247 : vector<16x128xf32>
    %254 = arith.addf %247, %253 : vector<16x128xf32>
    %cst_149 = arith.constant 0.797884583 : f32
    %255 = vector.broadcast %cst_149 : f32 to vector<16x128xf32>
    %256 = arith.mulf %255, %254 : vector<16x128xf32>
    %257 = math.tanh %256 : vector<16x128xf32>
    %cst_150 = arith.constant 1.000000e+00 : f32
    %258 = vector.broadcast %cst_150 : f32 to vector<16x128xf32>
    %259 = arith.addf %258, %257 : vector<16x128xf32>
    %260 = arith.mulf %249, %259 : vector<16x128xf32>
    %c1_151 = arith.constant 1 : index
    %c0_152 = arith.constant 0 : index
    %c0_153 = arith.constant 0 : index
    %261 = vector.load %arg12[%c1_151, %c0_152, %c0_153] : memref<2x128x32xf32, #tpu.memory_space<vmem>>, vector<1x128x32xf32>
    %262 = vector.shape_cast %261 : vector<1x128x32xf32> to vector<128x32xf32>
    %cst_154 = arith.constant dense<0.000000e+00> : vector<16x32xf32>
    %263 = tpu.matmul %260, %262, %cst_154 {dimension_numbers = #tpu.dot_dimension_numbers<[1], [0], [0], [1], [0, 0, 1, 1], [], []>} : vector<16x128xf32>, vector<128x32xf32>, vector<16x32xf32> -> vector<16x32xf32>
    %c1_155 = arith.constant 1 : index
    %c0_156 = arith.constant 0 : index
    %c0_157 = arith.constant 0 : index
    %264 = vector.load %arg13[%c1_155, %c0_156, %c0_157] : memref<2x1x32xf32, #tpu.memory_space<vmem>>, vector<1x1x32xf32>
    %265 = vector.shape_cast %264 : vector<1x1x32xf32> to vector<1x32xf32>
    %266 = vector.broadcast %265 : vector<1x32xf32> to vector<16x32xf32>
    %267 = arith.addf %263, %266 : vector<16x32xf32>
    %268 = arith.addf %214, %267 : vector<16x32xf32>
    %c0_158 = arith.constant 0 : index
    %c0_159 = arith.constant 0 : index
    %269 = vector.load %arg14[%c0_158, %c0_159] : memref<1x32xf32, #tpu.memory_space<vmem>>, vector<1x32xf32>
    %c0_160 = arith.constant 0 : index
    %c0_161 = arith.constant 0 : index
    %270 = vector.load %arg15[%c0_160, %c0_161] : memref<1x32xf32, #tpu.memory_space<vmem>>, vector<1x32xf32>
    %cst_162 = arith.constant dense<0.000000e+00> : vector<16xf32>
    %271 = vector.multi_reduction <add>, %268, %cst_162 [1] : vector<16x32xf32> to vector<16xf32>
    %272 = vector.shape_cast %271 : vector<16xf32> to vector<16x1xf32>
    %cst_163 = arith.constant 3.200000e+01 : f32
    %273 = vector.broadcast %cst_163 : f32 to vector<16x1xf32>
    %274 = arith.divf %272, %273 : vector<16x1xf32>
    %275 = vector.broadcast %274 : vector<16x1xf32> to vector<16x32xf32>
    %276 = arith.subf %268, %275 : vector<16x32xf32>
    %277 = arith.mulf %276, %276 : vector<16x32xf32>
    %cst_164 = arith.constant dense<0.000000e+00> : vector<16xf32>
    %278 = vector.multi_reduction <add>, %277, %cst_164 [1] : vector<16x32xf32> to vector<16xf32>
    %279 = vector.shape_cast %278 : vector<16xf32> to vector<16x1xf32>
    %cst_165 = arith.constant 3.200000e+01 : f32
    %280 = vector.broadcast %cst_165 : f32 to vector<16x1xf32>
    %281 = arith.divf %279, %280 : vector<16x1xf32>
    %282 = vector.broadcast %274 : vector<16x1xf32> to vector<16x32xf32>
    %283 = arith.subf %268, %282 : vector<16x32xf32>
    %cst_166 = arith.constant 9.99999974E-6 : f32
    %284 = vector.broadcast %cst_166 : f32 to vector<16x1xf32>
    %285 = arith.addf %281, %284 : vector<16x1xf32>
    %286 = math.rsqrt %285 : vector<16x1xf32>
    %287 = vector.broadcast %286 : vector<16x1xf32> to vector<16x32xf32>
    %288 = arith.mulf %283, %287 : vector<16x32xf32>
    %289 = vector.broadcast %269 : vector<1x32xf32> to vector<16x32xf32>
    %290 = arith.mulf %288, %289 : vector<16x32xf32>
    %291 = vector.broadcast %270 : vector<1x32xf32> to vector<16x32xf32>
    %292 = arith.addf %290, %291 : vector<16x32xf32>
    %c0_167 = arith.constant 0 : index
    %c0_168 = arith.constant 0 : index
    %293 = vector.load %arg16[%c0_167, %c0_168] : memref<256x32xf32, #tpu.memory_space<vmem>>, vector<256x32xf32>
    %cst_169 = arith.constant dense<0.000000e+00> : vector<16x256xf32>
    %294 = tpu.matmul %292, %293, %cst_169 {dimension_numbers = #tpu.dot_dimension_numbers<[1], [1], [0], [0], [0, 0, 1, 0], [], []>} : vector<16x32xf32>, vector<256x32xf32>, vector<16x256xf32> -> vector<16x256xf32>
    %c0_170 = arith.constant 0 : index
    %c0_171 = arith.constant 0 : index
    %295 = vector.load %arg17[%c0_170, %c0_171] : memref<16x256xf32, #tpu.memory_space<vmem>>, vector<16x256xf32>
    tpu.vector_store %arg17[%c0_170, %c0_171], %294 {strides = array<i32>} : memref<16x256xf32, #tpu.memory_space<vmem>>, vector<16x256xf32>,
    return
  }
}

</mosaic_0001>

<bundles_post_ra>
// kernel: gpt_forward.1
= control target key start
LH: loop header
LB: loop body
LE: loop exit
PB: predicated region body
PF: predicated region fallthrough
CT: control target
= control target key end

     0   :  { %vm62_vm0 = vcmask 261120   ;;  %v4021_v4 = vmov 32.0   ;;  %s4022_s18 = smov 112   ;;  %s4023_s19 = smov 120   ;;  %vm182_vm8 = vcmask 1047556   ;;  %vm948_vm9 = vcmask 64512   ;;  %s5756_s0 = inlined_call_operand.vmem [shape: f32[16,32], index: 0, kind: input, shape index: {}]   ;;  %s5757_s2 = inlined_call_operand.vmem [shape: f32[2,1,32], index: 2, kind: input, shape index: {}]   ;;  %s5758_s3 = inlined_call_operand.vmem [shape: f32[2,1,32], index: 3, kind: input, shape index: {}]   ;;  %s5759_s5 = inlined_call_operand.vmem [shape: f32[2,3,1,32], index: 5, kind: input, shape index: {}]   ;;  %s5760_s4 = inlined_call_operand.vmem [shape: f32[2,3,32,32], index: 4, kind: input, shape index: {}]   ;;  %s5761_s1 = inlined_call_operand.vmem [shape: f32[16,16], index: 1, kind: input, shape index: {}]   ;;  %s5762_s7 = inlined_call_operand.vmem [shape: f32[2,1,32], index: 7, kind: input, shape index: {}]   ;;  %s5763_s6 = inlined_call_operand.vmem [shape: f32[2,32,32], index: 6, kind: input, shape index: {}]   ;;  %s5764_s8 = inlined_call_operand.vmem [shape: f32[2,1,32], index: 8, kind: input, shape index: {}]   ;;  %s5765_s9 = inlined_call_operand.vmem [shape: f32[2,1,32], index: 9, kind: input, shape index: {}]   ;;  %s5766_s11 = inlined_call_operand.vmem [shape: f32[2,1,128], index: 11, kind: input, shape index: {}]   ;;  %s5767_s10 = inlined_call_operand.vmem [shape: f32[2,32,128], index: 10, kind: input, shape index: {}]   ;;  %s5768_s12 = inlined_call_operand.vmem [shape: f32[2,128,32], index: 12, kind: input, shape index: {}]   ;;  %s5769_s13 = inlined_call_operand.vmem [shape: f32[2,1,32], index: 13, kind: input, shape index: {}]   ;;  %s5770_s14 = inlined_call_operand.vmem [shape: f32[1,32], index: 14, kind: input, shape index: {}]   ;;  %s5771_s16 = inlined_call_operand.vmem [shape: f32[256,32], index: 16, kind: input, shape index: {}]   ;;  %s5772_s15 = inlined_call_operand.vmem [shape: f32[1,32], index: 15, kind: input, shape index: {}]   ;;  %s5773_s17 = inlined_call_operand.vmem [shape: f32[16,256], index: 17, kind: output, shape index: {}]  }
   0x1   :  { %5780 = sst [smem:[#allocation2_spill]] %s5756_s0  ;;  %3923 = vrcp.f32 %v4021_v4  ;;  %v127_v21 = vld [vmem:[%s5760_s4 + $0x18] sm:$0xff]  ;;  %v126_v22 = vld [vmem:[%s5760_s4 + $0x10] sm:$0xff]  ;;  %v125_v23 = vld [vmem:[%s5760_s4 + $0x8] sm:$0xff]  ;;  %s4024_s21 = smov 104   ;;  %vm1105_vm10 = vcmask 130048  }
   0x2   :  { %5781 = sst [smem:[#allocation3_spill]] %s5757_s2  ;;  %3856 = vmatpush.msra.mxu1 %v127_v21  ;;  %150 = vmatpush.msra.mxu0 %v127_v21  ;;  %v124_v24 = vld [vmem:[%s5760_s4] sm:$0xff]  ;;  %v3701_v25 = vld [vmem:[%s5760_s4 + $0x38] sm:$0xff]  ;;  %v3700_v26 = vld [vmem:[%s5760_s4 + $0x30] sm:$0xff]  ;;  %s4027_s0 = smov 24   ;;  %vm1558_vm11 = vcmask 195584  }
   0x3   :  { %s5782_s26 = sld [smem:[#allocation2_spill]]  ;;  %v3699_v27 = vld [vmem:[%s5760_s4 + $0x28] sm:$0xff]  ;;  %v3698_v30 = vld [vmem:[%s5760_s4 + $0x20] sm:$0xff]  ;;  %v3708_v32 = vld [vmem:[%s5760_s4 + $0x58] sm:$0xff]  ;;  %s5776_s30 = smov 16  }
   0x4   :  { %3857 = vmatpush.msra.mxu1 %v126_v22  ;;  %151 = vmatpush.msra.mxu0 %v126_v22  ;;  %v3707_v33 = vld [vmem:[%s5760_s4 + $0x50] sm:$0xff]  ;;  %v3706_v34 = vld [vmem:[%s5760_s4 + $0x48] sm:$0xff]  ;;  %v3705_v37 = vld [vmem:[%s5760_s4 + $0x40] sm:$0xff]  ;;  %s5783_s27 = sld [smem:[#allocation3_spill]]  ;;  %s5778_s2 = smov 8  }
   0x5   :  { %v3902_v51 = vld [vmem:[%s5758_s3] ss:$0 sm:$0xff]  ;;  %v3906_v62 = vld [vmem:[%s5759_s5 + $0x1] ss:$0 sm:$0xff] }
   0x6   :  { %3858 = vmatpush.msra.mxu1 %v125_v23  ;;  %152 = vmatpush.msra.mxu0 %v125_v23 }
   0x7   :  { %v3924_v5 = vpop.eup %3923 }
   0x8   :  { %v70_v6 = vmul.f32 32.0, %v3924_v5  ;;  %vm74_vm1 = vweird.f32 %v3924_v5  ;;  %3859 = vmatpush.msra.mxu1 %v124_v24  ;;  %153 = vmatpush.msra.mxu0 %v124_v24 }
   0x9   :  { %v57_v0 = vld [vmem:[%s5782_s26 + $0x8] sm:$0xff]  ;;  %v56_v2 = vld [vmem:[%s5782_s26] sm:$0xff] }
   0xa   :  { %v66_v1 = vsel %vm62_vm0, %v57_v0, 0.0  ;;  %v63_v3 = vsel %vm62_vm0, %v56_v2, 0.0  ;;  %v71_v7 = vsub.f32 1.0, %v70_v6  ;;  %424 = vmatpush.msrb.mxu1 %v3701_v25  ;;  %697 = vmatpush.msrb.mxu0 %v3708_v32  ;;  %v3901_v47 = vld [vmem:[%s5783_s27] ss:$0 sm:$0xff] }
   0xb   :  { %67 = vadd.xlane.f32.xlu0 %v66_v1  ;;  %v3905_v1 = vld [vmem:[%s5759_s5] ss:$0 sm:$0xff] }
   0xc   :  { %v72_v8 = vmul.f32 %v3924_v5, %v71_v7  ;;  %425 = vmatpush.msrb.mxu1 %v3700_v26  ;;  %698 = vmatpush.msrb.mxu0 %v3707_v33 }
   0xe   :  { %v73_v9 = vadd.f32 %v3924_v5, %v72_v8  ;;  %426 = vmatpush.msrb.mxu1 %v3699_v27  ;;  %699 = vmatpush.msrb.mxu0 %v3706_v34 }
  0x10   :  { %v4128_v10 = vsel %vm74_vm1, %v3924_v5, %v73_v9  ;;  %427 = vmatpush.msrb.mxu1 %v3698_v30  ;;  %700 = vmatpush.msrb.mxu0 %v3705_v37  ;;  %v4025_v9 = vmov 1983009808  }
  0x13   :  { %64 = vadd.xlane.f32.xlu0 %v63_v3 }
  0x7e   :  { %v68_v11 = vpop.xlane.xlu0 %67 }
  0x7f   :  { %v77_v12 = vmul.f32 %v4128_v10, %v68_v11  ;;  %v187_v11 = vunpack.c.l.s4 %v4025_v9 }
  0x81   :  { %v4131_v13 = vsub.f32 %v57_v0, %v77_v12 }
  0x83   :  { %v81_v14 = vmul.f32 %v4131_v13, %v4131_v13 }
  0x85   :  { %v85_v15 = vsel %vm62_vm0, %v81_v14, 0.0 }
  0x86   :  { %86 = vadd.xlane.f32.xlu1 %v85_v15  ;;  %v65_v16 = vpop.xlane.xlu0 %64  ;;  %v4222_v15 = vunpack.c.0.s8 %v187_v11 }
  0x87   :  { %v76_v17 = vmul.f32 %v4128_v10, %v65_v16 }
  0x89   :  { %v4137_v18 = vsub.f32 %v56_v2, %v76_v17 }
  0x8b   :  { %v80_v19 = vmul.f32 %v4137_v18, %v4137_v18 }
  0x8d   :  { %v82_v20 = vsel %vm62_vm0, %v80_v19, 0.0 }
  0x8e   :  { %83 = vadd.xlane.f32.xlu1 %v82_v20 }
  0xf9   :  { %v87_v28 = vpop.xlane.xlu1 %86 }
  0xfa   :  { %v89_v29 = vmul.f32 %v87_v28, %v4128_v10 }
  0xfc   :  { %v91_v31 = vadd.f32 1e-05, %v89_v29 }
  0xfe   :  { %3925 = vrsqrt.f32 %v91_v31  ;;  %vm108_vm3 = vweird.f32 %v91_v31 }
 0x101   :  { %v84_v35 = vpop.xlane.xlu1 %83 }
 0x102   :  { %v88_v36 = vmul.f32 %v84_v35, %v4128_v10 }
 0x104   :  { %v3926_v38 = vpop.eup %3925  ;;  %v90_v39 = vadd.f32 1e-05, %v88_v36 }
 0x105   :  { %v103_v40 = vmul.f32 %v3926_v38, %v91_v31  ;;  %vm109_vm2 = vweird.f32 %v3926_v38 }
 0x106   :  { %3927 = vrsqrt.f32 %v90_v39  ;;  %vm110_vm4 = vmor %vm108_vm3, %vm109_vm2  ;;  %vm98_vm6 = vweird.f32 %v90_v39 }
 0x107   :  { %v104_v41 = vmul.f32 %v3926_v38, %v103_v40 }
 0x109   :  { %v105_v42 = vmul.f32 0.5, %v104_v41 }
 0x10b   :  { %v106_v43 = vsub.f32 1.5, %v105_v42 }
 0x10c   :  { %v3928_v44 = vpop.eup %3927 }
 0x10d   :  { %v107_v45 = vmul.f32 %v3926_v38, %v106_v43  ;;  %v93_v46 = vmul.f32 %v3928_v44, %v90_v39  ;;  %vm99_vm5 = vweird.f32 %v3928_v44 }
 0x10e   :  { %vm100_vm7 = vmor %vm98_vm6, %vm99_vm5 }
 0x10f   :  { %v111_v48 = vsel %vm110_vm4, %v3926_v38, %v107_v45  ;;  %v94_v49 = vmul.f32 %v3928_v44, %v93_v46 }
 0x110   :  { %v113_v50 = vmul.f32 %v111_v48, %v4131_v13 }
 0x111   :  { %v95_v52 = vmul.f32 0.5, %v94_v49 }
 0x112   :  { %v118_v53 = vmul.f32 %v3901_v47, %v113_v50 }
 0x113   :  { %v96_v54 = vsub.f32 1.5, %v95_v52 }
 0x114   :  { %v123_v55 = vadd.f32 %v3902_v51, %v118_v53 }
 0x115   :  { %v97_v56 = vmul.f32 %v3928_v44, %v96_v54 }
 0x116   :  { %3697 = vmatmul.msk.f32.vlgmr.msra.gmra.mxu1 %vm62_vm0, %v123_v55 }
 0x117   :  { %v101_v57 = vsel %vm100_vm7, %v3928_v44, %v97_v56 }
 0x118   :  { %v112_v58 = vmul.f32 %v101_v57, %v4137_v18  ;;  %v4026_v18 = vmov 1934713408  }
 0x119   :  { %v211_v19 = vunpack.c.l.s4 %v4026_v18 }
 0x11a   :  { %v117_v59 = vmul.f32 %v3901_v47, %v112_v58 }
 0x11b   :  { %v4230_v30 = vunpack.c.0.s8 %v211_v19 }
 0x11c   :  { %v122_v60 = vadd.f32 %v3902_v51, %v117_v59 }
 0x11e   :  { %3696 = vmatmul.msk.f32.vlgmr.msra.gmra.mxu0 %vm62_vm0, %v122_v60  ;;  %3703 = vmatmul.msk.f32.vlgmr.msrb.gmra.mxu1 %vm62_vm0, %v122_v60 }
 0x126   :  { %3704 = vmatmul.msk.f32.gmra.mxu1 %vm62_vm0, %v123_v55  ;;  %3710 = vmatmul.msk.f32.vlgmr.msrb.gmra.mxu0 %vm62_vm0, %v122_v60 }
 0x12e   :  { %3711 = vmatmul.msk.f32.gmra.mxu0 %vm62_vm0, %v123_v55 }
 0x193   :  { %v158_v61 = vpop.f32.mrf.mxu1 }
 0x194   :  { %v4202_v4 = vadd.f32 %v3905_v1, %v158_v61 }
 0x196   :  { %v240_v40 = vrot.slane %v4202_v4, 4 }
 0x19b   :  { %v429_v63 = vpop.f32.mrf.mxu1  ;;  %v155_v5 = vpop.f32.mrf.mxu0 }
 0x19c   :  { %v430_v0 = vadd.f32 %v3906_v62, %v429_v63  ;;  %v4208_v6 = vadd.f32 %v3905_v1, %v155_v5 }
 0x19e   :  { %443 = vrot.lane.b32.xlu2 %v430_v0, %s4022_s18  ;;  %437 = vrot.lane.b32.xlu1 %v430_v0, %s4023_s19  ;;  %v457_v14 = vrot.slane %v430_v0, 4  ;;  %v184_v44 = vrot.slane %v4208_v6, 4 }
 0x1a3   :  { %v432_v2 = vpop.f32.mrf.mxu1 }
 0x1a4   :  { %v433_v3 = vadd.f32 %v3906_v62, %v432_v2 }
 0x1a6   :  { %451 = vrot.lane.b32.xlu0 %v433_v3, %s4024_s21  ;;  %449 = vrot.lane.b32.xlu2 %v430_v0, %s4024_s21  ;;  %v513_v22 = vrot.slane %v433_v3, 4 }
 0x1a7   :  { %165 = vrot.lane.b32.xlu1 %v4202_v4, %s4023_s19 }
 0x1ae   :  { %439 = vrot.lane.b32.xlu2 %v433_v3, %s4023_s19  ;;  %169 = vrot.lane.b32.xlu0 %v4208_v6, %s4022_s18 }
 0x1b6   :  { %445 = vrot.lane.b32.xlu2 %v433_v3, %s4022_s18  ;;  %171 = vrot.lane.b32.xlu0 %v4202_v4, %s4022_s18 }
 0x1be   :  { %163 = vrot.lane.b32.xlu2 %v4208_v6, %s4023_s19 }
 0x1c6   :  { %175 = vrot.lane.b32.xlu2 %v4208_v6, %s4024_s21 }
 0x1ce   :  { %177 = vrot.lane.b32.xlu2 %v4202_v4, %s4024_s21 }
 0x1f8   :  { %v444_v7 = vpop.permute.xlu2 %443 }
 0x1f9   :  { %v455_v12 = vrot.slane %v444_v7, 4  ;;  %v458_v17 = vsel %vm182_vm8, %v444_v7, %v457_v14 }
 0x1fa   :  { %v466_v23 = vperm.slane %v458_v17, %v4222_v15 }
 0x1fb   :  { %v456_v16 = vsel %vm182_vm8, %v455_v12, %v430_v0 }
 0x1fc   :  { %v462_v20 = vperm.slane %v456_v16, %v4222_v15  ;;  %v493_v38 = vrot.slane %v466_v23, 4 }
 0x1fe   :  { %v481_v32 = vrot.slane %v462_v20, 4 }
 0x200   :  { %v450_v8 = vpop.permute.xlu2 %449 }
 0x201   :  { %v467_v21 = vrot.slane %v450_v8, 4 }
 0x208   :  { %v440_v13 = vpop.permute.xlu2 %439 }
 0x209   :  { %v525_v45 = vrot.slane %v440_v13, 4 }
 0x210   :  { %v446_v24 = vpop.permute.xlu2 %445  ;;  %v438_v25 = vpop.permute.xlu1 %437 }
 0x211   :  { %v511_v26 = vrot.slane %v446_v24, 4  ;;  %v514_v27 = vsel %vm182_vm8, %v446_v24, %v513_v22  ;;  %v468_v28 = vsel %vm182_vm8, %v467_v21, %v438_v25  ;;  %v469_v29 = vrot.slane %v438_v25, 4 }
 0x212   :  { %v474_v31 = vperm.slane %v468_v28, %v4222_v15  ;;  %v522_v35 = vperm.slane %v514_v27, %v4222_v15 }
 0x213   :  { %v470_v33 = vsel %vm182_vm8, %v450_v8, %v469_v29  ;;  %v512_v34 = vsel %vm182_vm8, %v511_v26, %v433_v3 }
 0x214   :  { %v478_v36 = vperm.slane %v470_v33, %v4222_v15  ;;  %v479_v37 = vrot.slane %v474_v31, 4  ;;  %v482_v39 = vsel %vm182_vm8, %v474_v31, %v481_v32  ;;  %v518_v46 = vperm.slane %v512_v34, %v4222_v15 }
 0x215   :  { %v490_v42 = vperm.slane %v482_v39, %v4230_v30  ;;  %v549_v49 = vrot.slane %v522_v35, 4 }
 0x216   :  { %v480_v41 = vsel %vm182_vm8, %v479_v37, %v462_v20  ;;  %v491_v43 = vrot.slane %v478_v36, 4  ;;  %v494_v48 = vsel %vm182_vm8, %v478_v36, %v493_v38  ;;  %v537_v63 = vrot.slane %v518_v46, 4 }
 0x217   :  { %v486_v47 = vperm.slane %v480_v41, %v4230_v30  ;;  %v502_v51 = vperm.slane %v494_v48, %v4230_v30  ;;  %v505_v52 = vrot.slane %v490_v42, 4 }
 0x218   :  { %v492_v50 = vsel %vm182_vm8, %v491_v43, %v466_v23  ;;  %v452_v53 = vpop.permute.xlu0 %451  ;;  %v4247_v54 = vpop.permute.xlu2 %163 }
 0x219   :  { %v498_v55 = vperm.slane %v492_v50, %v4230_v30  ;;  %v503_v56 = vrot.slane %v486_v47, 4  ;;  %v523_v57 = vrot.slane %v452_v53, 4  ;;  %v526_v58 = vsel %vm182_vm8, %v452_v53, %v525_v45  ;;  %v4258_v3 = vpop.permute.xlu1 %165 }
 0x21a   :  { %v506_v59 = vsel %vm182_vm8, 0.0, %v505_v52  ;;  %v509_v60 = vrot.slane %v502_v51, 4  ;;  %v567_v61 = vsel %vm182_vm8, %v505_v52, %v486_v47  ;;  %v534_v62 = vperm.slane %v526_v58, %v4222_v15 }
 0x21b   :  { %v504_v0 = vsel %vm182_vm8, 0.0, %v503_v56  ;;  %v507_v1 = vrot.slane %v498_v55, 4  ;;  %v4256_v2 = vperm.slane %v567_v61, %v4222_v15  ;;  %v572_v7 = vrot.slane %v506_v59, 4 }
 0x21c   :  { %v4261_v5 = vsel %vm182_vm8, 0.0, %v509_v60  ;;  %v524_v8 = vsel %vm182_vm8, %v523_v57, %v440_v13  ;;  %v547_v9 = vrot.slane %v534_v62, 4  ;;  %v578_v11 = vsel %vm182_vm8, %v509_v60, %v498_v55 }
 0x21d   :  { %v583_v12 = vrot.slane %v4261_v5, 4  ;;  %v530_v14 = vperm.slane %v524_v8, %v4222_v15  ;;  %v550_v16 = vsel %vm182_vm8, %v534_v62, %v549_v49  ;;  %v252_v19 = vrot.slane %v4258_v3, 4 }
 0x21e   :  { %v548_v17 = vsel %vm182_vm8, %v547_v9, %v522_v35  ;;  %v558_v18 = vperm.slane %v550_v16, %v4230_v30  ;;  %v196_v20 = vrot.slane %v4247_v54, 4  ;;  %v4275_v23 = vsel %vm182_vm8, 0.0, %v507_v1 }
 0x21f   :  { %v535_v21 = vrot.slane %v530_v14, 4  ;;  %v538_v13 = vsel %vm182_vm8, %v530_v14, %v537_v63  ;;  %v554_v22 = vperm.slane %v548_v17, %v4230_v30  ;;  %v4279_v28 = vsel %vm182_vm8, %v572_v7, %v504_v0 }
 0x220   :  { %v546_v24 = vperm.slane %v538_v13, %v4230_v30  ;;  %v565_v25 = vrot.slane %v558_v18, 4  ;;  %v170_v26 = vpop.permute.xlu0 %169  ;;  %v176_v27 = vpop.permute.xlu2 %175  ;;  %v4282_v29 = vperm.slane %v578_v11, %v4222_v15 }
 0x221   :  { %v536_v31 = vsel %vm182_vm8, %v535_v21, %v518_v46  ;;  %v563_v32 = vrot.slane %v554_v22, 4  ;;  %v181_v33 = vrot.slane %v170_v26, 4  ;;  %v185_v34 = vsel %vm182_vm8, %v170_v26, %v184_v44 }
 0x222   :  { %v542_v35 = vperm.slane %v536_v31, %v4230_v30  ;;  %v561_v36 = vrot.slane %v546_v24, 4  ;;  %v566_v37 = vsel %vm182_vm8, 0.0, %v565_v25  ;;  %v632_v38 = vsel %vm182_vm8, %v565_v25, %v554_v22 }
 0x223   :  { %v564_v39 = vsel %vm182_vm8, 0.0, %v563_v32  ;;  %v4291_v41 = vperm.slane %v632_v38, %v4222_v15  ;;  %v637_v42 = vrot.slane %v566_v37, 4  ;;  %v183_v43 = vsel %vm182_vm8, %v181_v33, %v4208_v6 }
 0x224   :  { %v559_v45 = vrot.slane %v542_v35, 4  ;;  %v562_v46 = vsel %vm182_vm8, 0.0, %v561_v36  ;;  %v621_v44 = vsel %vm182_vm8, %v561_v36, %v542_v35  ;;  %v189_v47 = vperm.slane %v183_v43, %v4222_v15 }
 0x225   :  { %v626_v48 = vrot.slane %v562_v46, 4  ;;  %v638_v49 = vsel %vm182_vm8, %v637_v42, %v564_v39  ;;  %v657_v50 = vrot.slane %v4291_v41, 4  ;;  %v193_v51 = vperm.slane %v185_v34, %v4222_v15 }
 0x226   :  { %v560_v52 = vsel %vm182_vm8, 0.0, %v559_v45  ;;  %v4303_v53 = vperm.slane %v638_v49, %v4222_v15  ;;  %v208_v6 = vrot.slane %v189_v47, 4  ;;  %v194_v55 = vrot.slane %v176_v27, 4 }
 0x227   :  { %v220_v56 = vrot.slane %v193_v51, 4  ;;  %v197_v57 = vsel %vm182_vm8, %v176_v27, %v196_v20  ;;  %v4307_v58 = vperm.slane %v621_v44, %v4222_v15  ;;  %v627_v59 = vsel %vm182_vm8, %v626_v48, %v560_v52 }
 0x228   :  { %v195_v60 = vsel %vm182_vm8, %v194_v55, %v4247_v54  ;;  %v205_v61 = vperm.slane %v197_v57, %v4222_v15  ;;  %v172_v62 = vpop.permute.xlu0 %171  ;;  %v178_v63 = vpop.permute.xlu2 %177  ;;  %v4314_v0 = vperm.slane %v627_v59, %v4222_v15  ;;  %v658_v1 = vsel %vm182_vm8, %v4303_v53, %v657_v50 }
 0x229   :  { %v201_v7 = vperm.slane %v195_v60, %v4222_v15  ;;  %v238_v8 = vrot.slane %v172_v62, 4  ;;  %v241_v9 = vsel %vm182_vm8, %v172_v62, %v240_v40  ;;  %v250_v11 = vrot.slane %v178_v63, 4 }
 0x22a   :  { %v218_v14 = vrot.slane %v205_v61, 4  ;;  %v221_v54 = vsel %vm182_vm8, %v205_v61, %v220_v56  ;;  %v249_v16 = vperm.slane %v241_v9, %v4222_v15  ;;  %v253_v17 = vsel %vm182_vm8, %v178_v63, %v252_v19 }
 0x22b   :  { %v206_v18 = vrot.slane %v201_v7, 4  ;;  %v209_v20 = vsel %vm182_vm8, %v201_v7, %v208_v6  ;;  %v229_v21 = vperm.slane %v221_v54, %v4230_v30  ;;  %v239_v13 = vsel %vm182_vm8, %v238_v8, %v4202_v4 }
 0x22c   :  { %v217_v22 = vperm.slane %v209_v20, %v4230_v30  ;;  %v219_v40 = vsel %vm182_vm8, %v218_v14, %v193_v51  ;;  %v245_v24 = vperm.slane %v239_v13, %v4222_v15  ;;  %v276_v25 = vrot.slane %v249_v16, 4 }
 0x22d   :  { %v207_v26 = vsel %vm182_vm8, %v206_v18, %v189_v47  ;;  %v225_v27 = vperm.slane %v219_v40, %v4230_v30  ;;  %v236_v19 = vrot.slane %v229_v21, 4  ;;  %v251_v31 = vsel %vm182_vm8, %v250_v11, %v4258_v3 }
 0x22e   :  { %v213_v32 = vperm.slane %v207_v26, %v4230_v30  ;;  %v232_v33 = vrot.slane %v217_v22, 4  ;;  %v264_v34 = vrot.slane %v245_v24, 4  ;;  %v257_v4 = vperm.slane %v251_v31, %v4222_v15 }
 0x22f   :  { %v234_v35 = vrot.slane %v225_v27, 4  ;;  %v237_v36 = vsel %vm182_vm8, 0.0, %v236_v19  ;;  %v305_v37 = vsel %vm182_vm8, %v236_v19, %v225_v27  ;;  %v261_v38 = vperm.slane %v253_v17, %v4222_v15 }
 0x230   :  { %v230_v39 = vrot.slane %v213_v32, 4  ;;  %v4342_v42 = vsel %vm182_vm8, 0.0, %v232_v33  ;;  %v294_v43 = vsel %vm182_vm8, %v232_v33, %v213_v32  ;;  %v4346_v3 = vperm.slane %v305_v37, %v4222_v15 }
 0x231   :  { %v235_v45 = vsel %vm182_vm8, 0.0, %v234_v35  ;;  %v299_v46 = vrot.slane %v4342_v42, 4  ;;  %v310_v44 = vrot.slane %v237_v36, 4  ;;  %v262_v47 = vrot.slane %v257_v4, 4 }
 0x232   :  { %v231_v48 = vsel %vm182_vm8, 0.0, %v230_v39  ;;  %v330_v49 = vrot.slane %v4346_v3, 4  ;;  %v265_v50 = vsel %vm182_vm8, %v257_v4, %v264_v34  ;;  %v274_v51 = vrot.slane %v261_v38, 4 }
 0x233   :  { %v311_v52 = vsel %vm182_vm8, %v310_v44, %v235_v45  ;;  %v263_v6 = vsel %vm182_vm8, %v262_v47, %v245_v24  ;;  %v273_v55 = vperm.slane %v265_v50, %v4230_v30  ;;  %v277_v56 = vsel %vm182_vm8, %v261_v38, %v276_v25 }
 0x234   :  { %v4358_v57 = vperm.slane %v311_v52, %v4222_v15  ;;  %v4361_v59 = vperm.slane %v263_v6, %v4230_v30  ;;  %v275_v60 = vsel %vm182_vm8, %v274_v51, %v249_v16  ;;  %v285_v61 = vperm.slane %v277_v56, %v4230_v30 }
 0x235   :  { %v281_v62 = vperm.slane %v275_v60, %v4230_v30  ;;  %v4366_v63 = vrot.slane %v273_v55, 4  ;;  %v645_v7 = vrot.slane %v4307_v58, 4  ;;  %v666_v8 = vperm.slane %v658_v1, %v4230_v30 }
 0x236   :  { %v286_v9 = vrot.slane %v4361_v59, 4  ;;  %v292_v11 = vrot.slane %v285_v61, 4  ;;  %v643_v14 = vrot.slane %v4314_v0, 4  ;;  %v655_v54 = vrot.slane %v4303_v53, 4 }
 0x237   :  { %v4375_v16 = vsel %vm182_vm8, 0.0, %v4366_v63  ;;  %v290_v17 = vrot.slane %v281_v62, 4  ;;  %v646_v18 = vsel %vm182_vm8, %v4314_v0, %v645_v7  ;;  %v671_v20 = vrot.slane %v666_v8, 4 }
 0x238   :  { %v4380_v21 = vsel %vm182_vm8, 0.0, %v292_v11  ;;  %v353_v1 = vrot.slane %v4375_v16, 4  ;;  %v359_v13 = vsel %vm182_vm8, %v292_v11, %v281_v62  ;;  %v654_v22 = vperm.slane %v646_v18, %v4230_v30 }
 0x239   :  { %v4386_v53 = vsel %vm182_vm8, 0.0, %v290_v17  ;;  %v4389_v40 = vperm.slane %v359_v13, %v4222_v15  ;;  %v364_v24 = vrot.slane %v4380_v21, 4  ;;  %v644_v0 = vsel %vm182_vm8, %v643_v14, %v4307_v58 }
 0x23a   :  { %v672_v25 = vsel %vm182_vm8, %v671_v20, %v654_v22  ;;  %v650_v26 = vperm.slane %v644_v0, %v4230_v30  ;;  %v656_v27 = vsel %vm182_vm8, %v655_v54, %v4291_v41  ;;  %v673_v19 = vrot.slane %v654_v22, 4 }
 0x23b   :  { %3720 = vmatpush.xpose.msk.msra.mxu1 %vm948_vm9, %v672_v25  ;;  %v662_v31 = vperm.slane %v656_v27, %v4230_v30  ;;  %v577_v32 = vperm.slane %v4279_v28, %v4222_v15  ;;  %v584_v58 = vsel %vm182_vm8, %v583_v12, %v4275_v23  ;;  %v591_v33 = vrot.slane %v4256_v2, 4 }
 0x23c   :  { %v669_v34 = vrot.slane %v650_v26, 4  ;;  %v674_v4 = vsel %vm182_vm8, %v666_v8, %v673_v19  ;;  %v588_v41 = vperm.slane %v584_v58, %v4222_v15  ;;  %v603_v35 = vrot.slane %v4282_v29, 4 }
 0x23d   :  { %v667_v36 = vrot.slane %v662_v31, 4  ;;  %3724 = vmatpush.xpose.msk.msra.mxu2 %vm948_vm9, %v674_v4  ;;  %v592_v37 = vsel %vm182_vm8, %v577_v32, %v591_v33  ;;  %v589_v28 = vrot.slane %v577_v32, 4  ;;  %v298_v38 = vperm.slane %v294_v43, %v4222_v15 }
 0x23e   :  { %v670_v5 = vsel %vm182_vm8, %v662_v31, %v669_v34  ;;  %v600_v12 = vperm.slane %v592_v37, %v4230_v30  ;;  %v604_v23 = vsel %vm182_vm8, %v588_v41, %v603_v35  ;;  %v601_v39 = vrot.slane %v588_v41, 4 }
 0x23f   :  { %v668_v42 = vsel %vm182_vm8, %v667_v36, %v650_v26  ;;  %3716 = vmatpush.xpose.msk.msra.mxu0 %vm948_vm9, %v670_v5  ;;  %v612_v45 = vperm.slane %v604_v23, %v4230_v30  ;;  %v590_v44 = vsel %vm182_vm8, %v589_v28, %v4256_v2  ;;  %v300_v47 = vsel %vm182_vm8, %v299_v46, %v231_v48 }
 0x240   :  { %3712 = vmatpush.xpose.msk.msra.mxu3 %vm948_vm9, %v668_v42  ;;  %v596_v43 = vperm.slane %v590_v44, %v4230_v30  ;;  %v602_v50 = vsel %vm182_vm8, %v601_v39, %v4282_v29  ;;  %v619_v51 = vrot.slane %v600_v12, 4  ;;  %v304_v52 = vperm.slane %v300_v47, %v4222_v15 }
 0x241   :  { %v617_v6 = vrot.slane %v612_v45, 4  ;;  %v608_v55 = vperm.slane %v602_v50, %v4230_v30  ;;  %v318_v56 = vrot.slane %v298_v38, 4  ;;  %v331_v2 = vsel %vm182_vm8, %v4358_v57, %v330_v49 }
 0x242   :  { %v620_v46 = vsel %vm182_vm8, %v612_v45, %v619_v51  ;;  %v615_v48 = vrot.slane %v596_v43, 4  ;;  %v339_v60 = vperm.slane %v331_v2, %v4230_v30  ;;  %v316_v61 = vrot.slane %v304_v52, 4  ;;  %v702_v45 = vpop.f32.mrf.mxu0 }
 0x243   :  { %v618_v29 = vsel %vm182_vm8, %v617_v6, %v600_v12  ;;  %v613_v62 = vrot.slane %v608_v55, 4  ;;  %3725 = vmatpush.xpose.msk.msra.mxu2 %vm948_vm9, %v620_v46  ;;  %v319_v7 = vsel %vm182_vm8, %v304_v52, %v318_v56  ;;  %v328_v8 = vrot.slane %v4358_v57, 4 }
 0x244   :  { %3721 = vmatpush.xpose.msk.msra.mxu1 %vm948_vm9, %v618_v29  ;;  %v616_v11 = vsel %vm182_vm8, %v608_v55, %v615_v48  ;;  %v327_v49 = vperm.slane %v319_v7, %v4230_v30  ;;  %v344_v14 = vrot.slane %v339_v60, 4  ;;  %v317_v54 = vsel %vm182_vm8, %v316_v61, %v298_v38 }
 0x245   :  { %v614_v17 = vsel %vm182_vm8, %v613_v62, %v596_v43  ;;  %3717 = vmatpush.xpose.msk.msra.mxu0 %vm948_vm9, %v616_v11  ;;  %v323_v18 = vperm.slane %v317_v54, %v4230_v30  ;;  %v329_v20 = vsel %vm182_vm8, %v328_v8, %v4346_v3  ;;  %v287_v57 = vsel %vm182_vm8, 0.0, %v286_v9  ;;  %v58_v43 = vld [vmem:[%s5761_s1] sm:$0xff] }
 0x246   :  { %3713 = vmatpush.xpose.msk.msra.mxu3 %vm948_vm9, %v614_v17  ;;  %v345_v13 = vsel %vm182_vm8, %v344_v14, %v327_v49  ;;  %v335_v22 = vperm.slane %v329_v20, %v4230_v30  ;;  %v346_v0 = vrot.slane %v327_v49, 4  ;;  %v348_v25 = vsel %vm182_vm8, %v4366_v63, %v4361_v59  ;;  %v59_v17 = vld [vmem:[%s5761_s1 + $0x8] sm:$0xff] }
 0x247   :  { %3722 = vmatmul.msk.f32.vlgmr.msra.gmra.mxu1 %vm948_vm9, %v345_v13  ;;  %v342_v3 = vrot.slane %v323_v18, 4  ;;  %v352_v26 = vperm.slane %v348_v25, %v4222_v15  ;;  %v354_v9 = vsel %vm182_vm8, %v353_v1, %v287_v57  ;;  %v365_v27 = vsel %vm182_vm8, %v364_v24, %v4386_v53 }
 0x248   :  { %v340_v19 = vrot.slane %v335_v22, 4  ;;  %v347_v31 = vsel %vm182_vm8, %v339_v60, %v346_v0  ;;  %v358_v59 = vperm.slane %v354_v9, %v4222_v15  ;;  %v369_v63 = vperm.slane %v365_v27, %v4222_v15 }
 0x249   :  { %3726 = vmatmul.msk.f32.vlgmr.msra.gmra.mxu2 %vm948_vm9, %v347_v31  ;;  %v343_v32 = vsel %vm182_vm8, %v335_v22, %v342_v3  ;;  %v372_v58 = vrot.slane %v352_v26, 4  ;;  %v384_v16 = vrot.slane %v4389_v40, 4  ;;  %v3907_v31 = vld [vmem:[%s5759_s5 + $0x2] ss:$0 sm:$0xff] }
 0x24a   :  { %3860 = vmatpush.xpose.msk.msrb.mxu3 %vm948_vm9, %v674_v4  ;;  %v341_v1 = vsel %vm182_vm8, %v340_v19, %v323_v18  ;;  %3718 = vmatmul.msk.f32.vlgmr.msra.gmra.mxu0 %vm948_vm9, %v343_v32  ;;  %v370_v21 = vrot.slane %v358_v59, 4  ;;  %v382_v53 = vrot.slane %v369_v63, 4  ;;  %v705_v44 = vpop.f32.mrf.mxu0 }
 0x24b   :  { %v373_v24 = vsel %vm182_vm8, %v358_v59, %v372_v58  ;;  %v385_v33 = vsel %vm182_vm8, %v369_v63, %v384_v16  ;;  %3714 = vmatmul.msk.f32.vlgmr.msra.gmra.mxu3 %vm948_vm9, %v341_v1  ;;  %v4513_v59 = vadd.f32 %v3907_v31, %v705_v44  ;;  %v4515_v63 = vadd.f32 %v3907_v31, %v702_v45 }
 0x24c   :  { %v381_v34 = vperm.slane %v373_v24, %v4230_v30  ;;  %v393_v4 = vperm.slane %v385_v33, %v4230_v30  ;;  %v371_v41 = vsel %vm182_vm8, %v370_v21, %v352_v26  ;;  %v383_v35 = vsel %vm182_vm8, %v382_v53, %v4389_v40 }
 0x24d   :  { %v377_v36 = vperm.slane %v371_v41, %v4230_v30  ;;  %v389_v37 = vperm.slane %v383_v35, %v4230_v30  ;;  %v3881_v32 = vpack.i.bf16 %v4515_v63, %v4513_v59  ;;  %v786_v31 = vrot.slane %v4513_v59, 4 }
 0x24e   :  { %3861 = vmatpush.xpose.msk.msrb.mxu3 %vm948_vm9, %v620_v46  ;;  %v398_v28 = vrot.slane %v393_v4, 4  ;;  %v400_v40 = vrot.slane %v381_v34, 4 }
 0x24f   :  { %v394_v38 = vrot.slane %v389_v37, 4  ;;  %v396_v5 = vrot.slane %v377_v36, 4 }
 0x250   :  { %v399_v12 = vsel %vm182_vm8, %v398_v28, %v381_v34  ;;  %v401_v42 = vsel %vm182_vm8, %v393_v4, %v400_v40 }
 0x251   :  { %3723 = vmatmul.msk.f32.gmra.mxu1 %vm948_vm9, %v399_v12  ;;  %v395_v23 = vsel %vm182_vm8, %v394_v38, %v377_v36  ;;  %v397_v39 = vsel %vm182_vm8, %v389_v37, %v396_v5 }
 0x252   :  { %3719 = vmatmul.msk.f32.gmra.mxu0 %vm948_vm9, %v397_v39 }
 0x253   :  { %3715 = vmatmul.msk.f32.gmra.mxu3 %vm948_vm9, %v395_v23 }
 0x25b   :  { %3727 = vmatmul.msk.f32.vlgmr.msrb.gmra.mxu3 %vm948_vm9, %v401_v42 }
 0x2c4   :  { %v1048_v47 = vpop.f32.mrf.mxu1 }
 0x2c5   :  { %v1093_v50 = vmul.f32 0.35355338, %v1048_v47 }
 0x2c7   :  { %v1013_v51 = vpop.f32.mrf.mxu0  ;;  %v1101_v52 = vadd.f32 %v1093_v50, %v58_v43 }
 0x2c8   :  { %v1091_v6 = vmul.f32 0.35355338, %v1013_v51 }
 0x2c9   :  { %v1118_v55 = vsel %vm1105_vm10, %v1101_v52, -inf }
 0x2ca   :  { %1119 = vmax.xlane.f32.xlu2 %v1118_v55  ;;  %v1099_v56 = vadd.f32 %v1091_v6, %v58_v43 }
 0x2cc   :  { %v1083_v2 = vpop.f32.mrf.mxu2  ;;  %v1112_v46 = vsel %vm1105_vm10, %v1099_v56, -inf }
 0x2cd   :  { %v1095_v48 = vmul.f32 0.35355338, %v1083_v2  ;;  %1113 = vmax.xlane.f32.xlu0 %v1112_v46 }
 0x2ce   :  { %v978_v60 = vpop.f32.mrf.mxu3  ;;  %v1051_v62 = vpop.f32.mrf.mxu1 }
 0x2cf   :  { %v1089_v61 = vmul.f32 0.35355338, %v978_v60  ;;  %v1103_v29 = vadd.f32 %v1095_v48, %v58_v43  ;;  %v1016_v7 = vpop.f32.mrf.mxu0  ;;  %v1094_v11 = vmul.f32 0.35355338, %v1051_v62 }
 0x2d0   :  { %v1092_v49 = vmul.f32 0.35355338, %v1016_v7 }
 0x2d1   :  { %v1097_v8 = vadd.f32 %v1089_v61, %v58_v43  ;;  %v1124_v54 = vsel %vm1105_vm10, %v1103_v29, -inf  ;;  %v4503_v20 = vadd.f32 %v1094_v11, %v59_v17 }
 0x2d2   :  { %v1100_v57 = vadd.f32 %v1092_v49, %v59_v17 }
 0x2d3   :  { %v1106_v14 = vsel %vm1105_vm10, %v1097_v8, -inf  ;;  %v1121_v22 = vsel %vm1105_vm10, %v4503_v20, -inf }
 0x2d4   :  { %1107 = vmax.xlane.f32.xlu1 %v1106_v14  ;;  %v1115_v0 = vsel %vm1105_vm10, %v1100_v57, -inf }
 0x2d5   :  { %1125 = vmax.xlane.f32.xlu0 %v1124_v54 }
 0x2d6   :  { %v981_v18 = vpop.f32.mrf.mxu3 }
 0x2d7   :  { %v1090_v13 = vmul.f32 0.35355338, %v981_v18 }
 0x2d9   :  { %v1098_v26 = vadd.f32 %v1090_v13, %v59_v17 }
 0x2db   :  { %v1109_v27 = vsel %vm1105_vm10, %v1098_v26, -inf }
 0x2dc   :  { %1122 = vmax.xlane.f32.xlu1 %v1121_v22 }
 0x2dd   :  { %1116 = vmax.xlane.f32.xlu0 %v1115_v0 }
 0x2de   :  { %v1086_v25 = vpop.f32.mrf.mxu3 }
 0x2df   :  { %v1096_v3 = vmul.f32 0.35355338, %v1086_v25 }
 0x2e1   :  { %v1104_v9 = vadd.f32 %v1096_v3, %v59_v17 }
 0x2e3   :  { %v1127_v19 = vsel %vm1105_vm10, %v1104_v9, -inf }
 0x2e4   :  { %1110 = vmax.xlane.f32.xlu1 %v1109_v27  ;;  %1128 = vmax.xlane.f32.xlu2 %v1127_v19  ;;  %v730_v19 = vrot.slane %v4515_v63, 4 }
 0x2f1   :  { %3882 = vrot.lane.b32.xlu0 %v3881_v32, %s4024_s21 }
 0x2fc   :  { %3872 = vrot.lane.b32.xlu2 %v3881_v32, %s4023_s19 }
 0x2fd   :  { %3877 = vrot.lane.b32.xlu1 %v3881_v32, %s4022_s18 }
 0x33d   :  { %v1120_v58 = vpop.xlane.xlu2 %1119 }
 0x33e   :  { %v1134_v16 = vsub.f32 %v1101_v52, %v1120_v58 }
 0x340   :  { %v1146_v1 = vmul.f32 1.442695, %v1134_v16  ;;  %v1114_v21 = vpop.xlane.xlu0 %1113 }
 0x341   :  { %v1132_v37 = vsub.f32 %v1099_v56, %v1114_v21 }
 0x342   :  { %3929 = vpow2.f32 %v1146_v1 }
 0x343   :  { %v1142_v28 = vmul.f32 1.442695, %v1132_v37 }
 0x347   :  { %v1108_v24 = vpop.xlane.xlu1 %1107 }
 0x348   :  { %v4522_v53 = vpop.eup %3929  ;;  %v1126_v33 = vpop.xlane.xlu0 %1125  ;;  %v1130_v34 = vsub.f32 %v1097_v8, %v1108_v24 }
 0x349   :  { %v1136_v4 = vsub.f32 %v1103_v29, %v1126_v33  ;;  %v1166_v41 = vsel %vm1105_vm10, %v4522_v53, 0.0 }
 0x34a   :  { %1167 = vadd.xlane.f32.xlu1 %v1166_v41  ;;  %v1138_v35 = vmul.f32 1.442695, %v1130_v34 }
 0x34b   :  { %v1150_v36 = vmul.f32 1.442695, %v1136_v4 }
 0x34c   :  { %3931 = vpow2.f32 %v1138_v35 }
 0x34d   :  { %3933 = vpow2.f32 %v1150_v36 }
 0x34e   :  { %3935 = vpow2.f32 %v1142_v28 }
 0x34f   :  { %v1123_v38 = vpop.xlane.xlu1 %1122 }
 0x350   :  { %v1117_v5 = vpop.xlane.xlu0 %1116  ;;  %v1135_v52 = vsub.f32 %v4503_v20, %v1123_v38 }
 0x351   :  { %v1133_v39 = vsub.f32 %v1100_v57, %v1117_v5 }
 0x352   :  { %v4526_v12 = vpop.eup %3931  ;;  %v1148_v2 = vmul.f32 1.442695, %v1135_v52 }
 0x353   :  { %v4528_v23 = vpop.eup %3933  ;;  %v1154_v40 = vsel %vm1105_vm10, %v4526_v12, 0.0  ;;  %v1144_v45 = vmul.f32 1.442695, %v1133_v39 }
 0x354   :  { %1155 = vadd.xlane.f32.xlu2 %v1154_v40  ;;  %v1172_v42 = vsel %vm1105_vm10, %v4528_v23, 0.0  ;;  %v4534_v51 = vpop.eup %3935 }
 0x355   :  { %1173 = vadd.xlane.f32.xlu0 %v1172_v42  ;;  %3937 = vpow2.f32 %v1144_v45  ;;  %v1160_v56 = vsel %vm1105_vm10, %v4534_v51, 0.0 }
 0x357   :  { %v1111_v44 = vpop.xlane.xlu1 %1110  ;;  %v1129_v47 = vpop.xlane.xlu2 %1128 }
 0x358   :  { %v1131_v43 = vsub.f32 %v1098_v26, %v1111_v44  ;;  %v1137_v50 = vsub.f32 %v1104_v9, %v1129_v47 }
 0x35a   :  { %v1140_v6 = vmul.f32 1.442695, %v1131_v43  ;;  %v1152_v55 = vmul.f32 1.442695, %v1137_v50 }
 0x35b   :  { %v4539_v46 = vpop.eup %3937 }
 0x35c   :  { %3939 = vpow2.f32 %v1140_v6  ;;  %v1163_v8 = vsel %vm1105_vm10, %v4539_v46, 0.0 }
 0x35d   :  { %3941 = vpow2.f32 %v1152_v55  ;;  %1161 = vadd.xlane.f32.xlu0 %v1160_v56 }
 0x35e   :  { %3943 = vpow2.f32 %v1148_v2 }
 0x35f   :  { %v3873_v29 = vpop.permute.xlu2 %3872 }
 0x360   :  { %v3875_v14 = vunpack.i.h.bf16 %v3873_v29  ;;  %v3874_v54 = vunpack.i.l.bf16 %v3873_v29 }
 0x362   :  { %v4541_v48 = vpop.eup %3939  ;;  %v742_v57 = vrot.slane %v3875_v14, 4  ;;  %v798_v13 = vrot.slane %v3874_v54, 4 }
 0x363   :  { %v3883_v60 = vpop.permute.xlu0 %3882  ;;  %v4543_v61 = vpop.eup %3941  ;;  %v1157_v62 = vsel %vm1105_vm10, %v4541_v48, 0.0 }
 0x364   :  { %1158 = vadd.xlane.f32.xlu2 %v1157_v62  ;;  %v1175_v7 = vsel %vm1105_vm10, %v4543_v61, 0.0  ;;  %v3885_v11 = vunpack.i.h.bf16 %v3883_v60  ;;  %v3884_v49 = vunpack.i.l.bf16 %v3883_v60  ;;  %v4551_v17 = vpop.eup %3943 }
 0x365   :  { %1176 = vadd.xlane.f32.xlu1 %v1175_v7  ;;  %1164 = vadd.xlane.f32.xlu0 %v1163_v8  ;;  %v1169_v22 = vsel %vm1105_vm10, %v4551_v17, 0.0 }
 0x366   :  { %v740_v18 = vrot.slane %v3885_v11, 4  ;;  %v796_v20 = vrot.slane %v3884_v49, 4  ;;  %v743_v0 = vsel %vm182_vm8, %v3885_v11, %v742_v57  ;;  %v799_v25 = vsel %vm182_vm8, %v3884_v49, %v798_v13 }
 0x367   :  { %v751_v9 = vperm.slane %v743_v0, %v4222_v15  ;;  %v807_v27 = vperm.slane %v799_v25, %v4222_v15 }
 0x368   :  { %v741_v3 = vsel %vm182_vm8, %v740_v18, %v3875_v14  ;;  %v797_v26 = vsel %vm182_vm8, %v796_v20, %v3874_v54 }
 0x369   :  { %v747_v58 = vperm.slane %v741_v3, %v4222_v15  ;;  %v803_v16 = vperm.slane %v797_v26, %v4222_v15  ;;  %v764_v41 = vrot.slane %v751_v9, 4  ;;  %v820_v35 = vrot.slane %v807_v27, 4 }
 0x36b   :  { %v752_v28 = vrot.slane %v747_v58, 4  ;;  %v808_v38 = vrot.slane %v803_v16, 4 }
 0x36c   :  { %1170 = vadd.xlane.f32.xlu2 %v1169_v22 }
 0x36f   :  { %v3878_v32 = vpop.permute.xlu1 %3877 }
 0x370   :  { %v3880_v1 = vunpack.i.h.bf16 %v3878_v32  ;;  %v3879_v21 = vunpack.i.l.bf16 %v3878_v32 }
 0x372   :  { %v728_v24 = vrot.slane %v3880_v1, 4  ;;  %v731_v33 = vsel %vm182_vm8, %v3880_v1, %v730_v19  ;;  %v784_v34 = vrot.slane %v3879_v21, 4  ;;  %v787_v4 = vsel %vm182_vm8, %v3879_v21, %v786_v31 }
 0x373   :  { %v739_v36 = vperm.slane %v731_v33, %v4222_v15  ;;  %v795_v37 = vperm.slane %v787_v4, %v4222_v15 }
 0x374   :  { %v729_v5 = vsel %vm182_vm8, %v728_v24, %v4515_v63  ;;  %v785_v39 = vsel %vm182_vm8, %v784_v34, %v4513_v59 }
 0x375   :  { %v735_v40 = vperm.slane %v729_v5, %v4222_v15  ;;  %v766_v42 = vrot.slane %v739_v36, 4  ;;  %v765_v45 = vsel %vm182_vm8, %v764_v41, %v739_v36  ;;  %v791_v44 = vperm.slane %v785_v39, %v4222_v15 }
 0x376   :  { %v771_v47 = vperm.slane %v765_v45, %v4230_v30  ;;  %v821_v43 = vsel %vm182_vm8, %v820_v35, %v795_v37  ;;  %v822_v50 = vrot.slane %v795_v37, 4 }
 0x377   :  { %v754_v52 = vrot.slane %v735_v40, 4  ;;  %v753_v6 = vsel %vm182_vm8, %v752_v28, %v735_v40  ;;  %v767_v63 = vsel %vm182_vm8, %v751_v9, %v766_v42  ;;  %v809_v55 = vsel %vm182_vm8, %v808_v38, %v791_v44 }
 0x378   :  { %v759_v59 = vperm.slane %v753_v6, %v4230_v30  ;;  %v775_v56 = vperm.slane %v767_v63, %v4230_v30  ;;  %v780_v2 = vrot.slane %v771_v47, 4  ;;  %v810_v60 = vrot.slane %v791_v44, 4 }
 0x379   :  { %v755_v29 = vsel %vm182_vm8, %v747_v58, %v754_v52  ;;  %v815_v62 = vperm.slane %v809_v55, %v4230_v30  ;;  %v823_v7 = vsel %vm182_vm8, %v807_v27, %v822_v50  ;;  %v827_v8 = vperm.slane %v821_v43, %v4230_v30 }
 0x37a   :  { %v763_v11 = vperm.slane %v755_v29, %v4230_v30  ;;  %v776_v49 = vrot.slane %v759_v59, 4  ;;  %v781_v14 = vsel %vm182_vm8, 0.0, %v780_v2  ;;  %v782_v54 = vrot.slane %v775_v56, 4 }
 0x37b   :  { %v811_v18 = vsel %vm182_vm8, %v803_v16, %v810_v60  ;;  %v831_v20 = vperm.slane %v823_v7, %v4230_v30  ;;  %v832_v57 = vrot.slane %v815_v62, 4  ;;  %v836_v13 = vrot.slane %v827_v8, 4 }
 0x37c   :  { %v778_v22 = vrot.slane %v763_v11, 4  ;;  %v783_v0 = vsel %vm182_vm8, 0.0, %v782_v54  ;;  %v819_v25 = vperm.slane %v811_v18, %v4230_v30  ;;  %v777_v3 = vsel %vm182_vm8, 0.0, %v776_v49 }
 0x37d   :  { %v837_v26 = vsel %vm182_vm8, 0.0, %v836_v13  ;;  %v838_v9 = vrot.slane %v831_v20, 4  ;;  %v856_v27 = vrot.slane %v783_v0, 4  ;;  %v833_v19 = vsel %vm182_vm8, 0.0, %v832_v57 }
 0x37e   :  { %v834_v31 = vrot.slane %v819_v25, 4  ;;  %v779_v32 = vsel %vm182_vm8, 0.0, %v778_v22  ;;  %v840_v58 = vsel %vm182_vm8, %v778_v22, %v759_v59  ;;  %v851_v16 = vsel %vm182_vm8, %v782_v54, %v771_v47 }
 0x37f   :  { %v839_v1 = vsel %vm182_vm8, 0.0, %v838_v9  ;;  %v905_v21 = vsel %vm182_vm8, %v838_v9, %v827_v8  ;;  %v844_v24 = vperm.slane %v840_v58, %v4222_v15  ;;  %v845_v33 = vrot.slane %v779_v32, 4 }
 0x380   :  { %v910_v34 = vrot.slane %v839_v1, 4  ;;  %v835_v4 = vsel %vm182_vm8, 0.0, %v834_v31  ;;  %v894_v41 = vsel %vm182_vm8, %v834_v31, %v815_v62  ;;  %v909_v35 = vperm.slane %v905_v21, %v4222_v15 }
 0x381   :  { %v898_v36 = vperm.slane %v894_v41, %v4222_v15  ;;  %v899_v37 = vrot.slane %v835_v4, 4  ;;  %v846_v28 = vsel %vm182_vm8, %v845_v33, %v777_v3  ;;  %v855_v38 = vperm.slane %v851_v16, %v4222_v15 }
 0x382   :  { %v911_v5 = vsel %vm182_vm8, %v910_v34, %v837_v26  ;;  %v930_v39 = vrot.slane %v909_v35, 4  ;;  %v850_v40 = vperm.slane %v846_v28, %v4222_v15  ;;  %v857_v42 = vsel %vm182_vm8, %v856_v27, %v781_v14 }
 0x383   :  { %v900_v45 = vsel %vm182_vm8, %v899_v37, %v833_v19  ;;  %v915_v44 = vperm.slane %v911_v5, %v4222_v15  ;;  %v918_v47 = vrot.slane %v898_v36, 4  ;;  %v861_v43 = vperm.slane %v857_v42, %v4222_v15 }
 0x384   :  { %v904_v50 = vperm.slane %v900_v45, %v4222_v15  ;;  %v864_v52 = vrot.slane %v844_v24, 4  ;;  %v876_v6 = vrot.slane %v855_v38, 4  ;;  %v862_v59 = vrot.slane %v850_v40, 4 }
 0x385   :  { %v931_v63 = vsel %vm182_vm8, %v915_v44, %v930_v39  ;;  %v928_v55 = vrot.slane %v915_v44, 4  ;;  %v874_v56 = vrot.slane %v861_v43, 4 }
 0x386   :  { %v919_v2 = vsel %vm182_vm8, %v904_v50, %v918_v47  ;;  %v939_v60 = vperm.slane %v931_v63, %v4230_v30  ;;  %v916_v29 = vrot.slane %v904_v50, 4  ;;  %v865_v62 = vsel %vm182_vm8, %v850_v40, %v864_v52 }
 0x387   :  { %v927_v7 = vperm.slane %v919_v2, %v4230_v30  ;;  %v929_v8 = vsel %vm182_vm8, %v928_v55, %v909_v35  ;;  %v873_v11 = vperm.slane %v865_v62, %v4230_v30  ;;  %v877_v49 = vsel %vm182_vm8, %v861_v43, %v876_v6 }
 0x388   :  { %v944_v14 = vrot.slane %v939_v60, 4  ;;  %v917_v54 = vsel %vm182_vm8, %v916_v29, %v898_v36  ;;  %v935_v18 = vperm.slane %v929_v8, %v4230_v30  ;;  %v885_v20 = vperm.slane %v877_v49, %v4230_v30 }
 0x389   :  { %v923_v57 = vperm.slane %v917_v54, %v4230_v30  ;;  %v946_v13 = vrot.slane %v927_v7, 4  ;;  %v863_v22 = vsel %vm182_vm8, %v862_v59, %v844_v24  ;;  %v875_v0 = vsel %vm182_vm8, %v874_v56, %v855_v38 }
 0x38a   :  { %v945_v25 = vsel %vm182_vm8, %v944_v14, %v927_v7  ;;  %v940_v3 = vrot.slane %v935_v18, 4  ;;  %v890_v26 = vrot.slane %v885_v20, 4  ;;  %v869_v9 = vperm.slane %v863_v22, %v4230_v30 }
 0x38b   :  { %1272 = vmatpush.msrb.mxu1 %v945_v25  ;;  %v947_v27 = vsel %vm182_vm8, %v939_v60, %v946_v13  ;;  %v881_v19 = vperm.slane %v875_v0, %v4230_v30  ;;  %v942_v31 = vrot.slane %v923_v57, 4  ;;  %v892_v32 = vrot.slane %v873_v11, 4 }
 0x38c   :  { %v941_v58 = vsel %vm182_vm8, %v940_v3, %v923_v57  ;;  %v891_v16 = vsel %vm182_vm8, %v890_v26, %v873_v11  ;;  %1301 = vmatpush.msrb.mxu2 %v947_v27  ;;  %v888_v1 = vrot.slane %v869_v9, 4 }
 0x38d   :  { %1214 = vmatpush.msra.mxu3 %v941_v58  ;;  %1273 = vmatpush.msrb.mxu1 %v891_v16  ;;  %v886_v21 = vrot.slane %v881_v19, 4  ;;  %v943_v24 = vsel %vm182_vm8, %v935_v18, %v942_v31  ;;  %v893_v33 = vsel %vm182_vm8, %v885_v20, %v892_v32 }
 0x38e   :  { %1243 = vmatpush.msrb.mxu0 %v943_v24  ;;  %1302 = vmatpush.msrb.mxu2 %v893_v33  ;;  %v889_v4 = vsel %vm182_vm8, %v881_v19, %v888_v1 }
 0x38f   :  { %v887_v34 = vsel %vm182_vm8, %v886_v21, %v869_v9 }
 0x390   :  { %1215 = vmatpush.msra.mxu3 %v887_v34  ;;  %1244 = vmatpush.msrb.mxu0 %v889_v4 }
 0x3bd   :  { %v1168_v41 = vpop.xlane.xlu1 %1167 }
 0x3be   :  { %3945 = vrcp.f32 %v1168_v41 }
 0x3c4   :  { %v3946_v35 = vpop.eup %3945 }
 0x3c5   :  { %v1190_v36 = vmul.f32 %v3946_v35, %v4522_v53 }
 0x3c7   :  { %3732 = vmatmul.msk.f32.vlgmr.msrb.gmra.mxu1 %vm1105_vm10, %v1190_v36  ;;  %v1156_v37 = vpop.xlane.xlu2 %1155 }
 0x3c8   :  { %3947 = vrcp.f32 %v1156_v37  ;;  %v1174_v28 = vpop.xlane.xlu0 %1173 }
 0x3c9   :  { %3949 = vrcp.f32 %v1174_v28 }
 0x3ce   :  { %v3948_v38 = vpop.eup %3947 }
 0x3cf   :  { %v3950_v5 = vpop.eup %3949  ;;  %v1186_v39 = vmul.f32 %v3948_v38, %v4526_v12 }
 0x3d0   :  { %v1162_v40 = vpop.xlane.xlu0 %1161  ;;  %v1192_v42 = vmul.f32 %v3950_v5, %v4528_v23 }
 0x3d1   :  { %3728 = vmatmul.msk.f32.vlgmr.msra.gmra.mxu3 %vm1105_vm10, %v1186_v39  ;;  %3951 = vrcp.f32 %v1162_v40 }
 0x3d2   :  { %3734 = vmatmul.msk.f32.vlgmr.msrb.gmra.mxu2 %vm1105_vm10, %v1192_v42 }
 0x3d7   :  { %v3952_v45 = vpop.eup %3951  ;;  %v1159_v53 = vpop.xlane.xlu2 %1158 }
 0x3d8   :  { %v1188_v44 = vmul.f32 %v3952_v45, %v4534_v51  ;;  %v1177_v47 = vpop.xlane.xlu1 %1176  ;;  %3953 = vrcp.f32 %v1159_v53  ;;  %v1165_v43 = vpop.xlane.xlu0 %1164 }
 0x3d9   :  { %3955 = vrcp.f32 %v1177_v47 }
 0x3da   :  { %3957 = vrcp.f32 %v1165_v43  ;;  %3730 = vmatmul.msk.f32.vlgmr.msrb.gmra.mxu0 %vm1105_vm10, %v1188_v44 }
 0x3de   :  { %v3954_v12 = vpop.eup %3953 }
 0x3df   :  { %v3956_v50 = vpop.eup %3955  ;;  %v1171_v52 = vpop.xlane.xlu2 %1170  ;;  %v1187_v23 = vmul.f32 %v3954_v12, %v4541_v48 }
 0x3e0   :  { %v3958_v6 = vpop.eup %3957  ;;  %3959 = vrcp.f32 %v1171_v52  ;;  %v1193_v63 = vmul.f32 %v3956_v50, %v4543_v61 }
 0x3e1   :  { %3729 = vmatmul.msk.f32.gmra.mxu3 %vm1105_vm10, %v1187_v23  ;;  %v1189_v51 = vmul.f32 %v3958_v6, %v4539_v46 }
 0x3e2   :  { %3735 = vmatmul.msk.f32.gmra.mxu2 %vm1105_vm10, %v1193_v63 }
 0x3e3   :  { %3731 = vmatmul.msk.f32.gmra.mxu0 %vm1105_vm10, %v1189_v51 }
 0x3e6   :  { %v3960_v55 = vpop.eup %3959 }
 0x3e7   :  { %v1191_v59 = vmul.f32 %v3960_v55, %v4551_v17 }
 0x3e9   :  { %3733 = vmatmul.msk.f32.gmra.mxu1 %vm1105_vm10, %v1191_v59 }
 0x444   :  { %v1275_v56 = vpop.f32.mrf.mxu1 }
 0x445   :  { %v1310_v2 = vrot.slane %v1275_v56, 4 }
 0x454   :  { %v1217_v48 = vpop.f32.mrf.mxu3 }
 0x455   :  { %v1311_v60 = vsel %vm182_vm8, %v1310_v2, %v1217_v48  ;;  %v1312_v29 = vrot.slane %v1217_v48, 4  ;;  %v1304_v61 = vpop.f32.mrf.mxu2 }
 0x456   :  { %v1317_v62 = vperm.slane %v1311_v60, %v4222_v15  ;;  %v1322_v7 = vrot.slane %v1304_v61, 4 }
 0x457   :  { %v1313_v46 = vsel %vm182_vm8, %v1275_v56, %v1312_v29  ;;  %v1246_v8 = vpop.f32.mrf.mxu0 }
 0x458   :  { %v1321_v11 = vperm.slane %v1313_v46, %v4222_v15  ;;  %v1323_v49 = vsel %vm182_vm8, %v1322_v7, %v1246_v8  ;;  %v1324_v17 = vrot.slane %v1246_v8, 4  ;;  %v1336_v14 = vrot.slane %v1317_v62, 4 }
 0x459   :  { %v1329_v54 = vperm.slane %v1323_v49, %v4222_v15 }
 0x45a   :  { %v1325_v18 = vsel %vm182_vm8, %v1304_v61, %v1324_v17  ;;  %v1348_v20 = vrot.slane %v1321_v11, 4 }
 0x45b   :  { %v1333_v57 = vperm.slane %v1325_v18, %v4222_v15  ;;  %v1334_v13 = vrot.slane %v1329_v54, 4  ;;  %v1337_v22 = vsel %vm182_vm8, %v1329_v54, %v1336_v14 }
 0x45c   :  { %v1345_v0 = vperm.slane %v1337_v22, %v4230_v30 }
 0x45d   :  { %v1335_v25 = vsel %vm182_vm8, %v1334_v13, %v1317_v62  ;;  %v1346_v3 = vrot.slane %v1333_v57, 4  ;;  %v1349_v26 = vsel %vm182_vm8, %v1333_v57, %v1348_v20 }
 0x45e   :  { %v1341_v9 = vperm.slane %v1335_v25, %v4230_v30  ;;  %v1357_v27 = vperm.slane %v1349_v26, %v4230_v30  ;;  %v1360_v19 = vrot.slane %v1345_v0, 4 }
 0x45f   :  { %v1347_v31 = vsel %vm182_vm8, %v1346_v3, %v1321_v11 }
 0x460   :  { %v1353_v32 = vperm.slane %v1347_v31, %v4230_v30  ;;  %v1358_v58 = vrot.slane %v1341_v9, 4  ;;  %v1361_v16 = vsel %vm182_vm8, 0.0, %v1360_v19  ;;  %v1364_v1 = vrot.slane %v1357_v27, 4  ;;  %v1249_v21 = vpop.f32.mrf.mxu0 }
 0x461   :  { %v1422_v24 = vsel %vm182_vm8, %v1360_v19, %v1341_v9  ;;  %v1427_v33 = vrot.slane %v1361_v16, 4  ;;  %v1380_v34 = vrot.slane %v1249_v21, 4 }
 0x462   :  { %v1359_v4 = vsel %vm182_vm8, 0.0, %v1358_v58  ;;  %v1362_v41 = vrot.slane %v1353_v32, 4  ;;  %v1365_v35 = vsel %vm182_vm8, 0.0, %v1364_v1  ;;  %v1426_v36 = vperm.slane %v1422_v24, %v4222_v15 }
 0x463   :  { %v1438_v37 = vrot.slane %v1365_v35, 4  ;;  %v1428_v28 = vsel %vm182_vm8, %v1427_v33, %v1359_v4  ;;  %v1433_v38 = vsel %vm182_vm8, %v1364_v1, %v1353_v32 }
 0x464   :  { %v1220_v5 = vpop.f32.mrf.mxu3  ;;  %v1363_v39 = vsel %vm182_vm8, 0.0, %v1362_v41  ;;  %v1432_v40 = vperm.slane %v1428_v28, %v4222_v15  ;;  %v1437_v42 = vperm.slane %v1433_v38, %v4222_v15  ;;  %v1446_v45 = vrot.slane %v1426_v36, 4 }
 0x465   :  { %v1368_v53 = vrot.slane %v1220_v5, 4  ;;  %v1307_v44 = vpop.f32.mrf.mxu2  ;;  %v1439_v47 = vsel %vm182_vm8, %v1438_v37, %v1363_v39 }
 0x466   :  { %v1378_v43 = vrot.slane %v1307_v44, 4  ;;  %v1381_v12 = vsel %vm182_vm8, %v1307_v44, %v1380_v34  ;;  %v1278_v50 = vpop.f32.mrf.mxu1  ;;  %v1443_v52 = vperm.slane %v1439_v47, %v4222_v15  ;;  %v1447_v23 = vsel %vm182_vm8, %v1432_v40, %v1446_v45 }
 0x467   :  { %v1389_v6 = vperm.slane %v1381_v12, %v4222_v15  ;;  %v1366_v63 = vrot.slane %v1278_v50, 4  ;;  %v1369_v51 = vsel %vm182_vm8, %v1278_v50, %v1368_v53  ;;  %v1455_v55 = vperm.slane %v1447_v23, %v4230_v30 }
 0x468   :  { %v1379_v59 = vsel %vm182_vm8, %v1378_v43, %v1249_v21  ;;  %v1377_v56 = vperm.slane %v1369_v51, %v4222_v15  ;;  %v1458_v2 = vrot.slane %v1437_v42, 4  ;;  %v1444_v48 = vrot.slane %v1432_v40, 4 }
 0x469   :  { %v1385_v60 = vperm.slane %v1379_v59, %v4222_v15  ;;  %v1402_v29 = vrot.slane %v1389_v6, 4  ;;  %v1367_v61 = vsel %vm182_vm8, %v1366_v63, %v1220_v5  ;;  %v1474_v62 = vrot.slane %v1455_v55, 4 }
 0x46a   :  { %v1373_v7 = vperm.slane %v1367_v61, %v4222_v15  ;;  %v1404_v46 = vrot.slane %v1377_v56, 4  ;;  %v1459_v8 = vsel %vm182_vm8, %v1443_v52, %v1458_v2  ;;  %v1445_v11 = vsel %vm182_vm8, %v1444_v48, %v1426_v36 }
 0x46b   :  { %v1390_v49 = vrot.slane %v1385_v60, 4  ;;  %v1403_v17 = vsel %vm182_vm8, %v1402_v29, %v1377_v56  ;;  %v1467_v14 = vperm.slane %v1459_v8, %v4230_v30  ;;  %v1451_v54 = vperm.slane %v1445_v11, %v4230_v30  ;;  %v1564_v11 = vld [vmem:[%s5763_s6 + $0x18] sm:$0xff] }
 0x46c   :  { %v1392_v18 = vrot.slane %v1373_v7, 4  ;;  %v1405_v20 = vsel %vm182_vm8, %v1389_v6, %v1404_v46  ;;  %v1409_v57 = vperm.slane %v1403_v17, %v4230_v30  ;;  %v1456_v13 = vrot.slane %v1443_v52, 4  ;;  %1587 = vmatpush.msrb.mxu3 %v1564_v11  ;;  %v1562_v17 = vld [vmem:[%s5763_s6 + $0x8] sm:$0xff] }
 0x46d   :  { %v1391_v22 = vsel %vm182_vm8, %v1390_v49, %v1373_v7  ;;  %v1413_v0 = vperm.slane %v1405_v20, %v4230_v30  ;;  %v1475_v25 = vsel %vm182_vm8, %v1467_v14, %v1474_v62  ;;  %v1472_v3 = vrot.slane %v1467_v14, 4  ;;  %v1563_v49 = vld [vmem:[%s5763_s6 + $0x10] sm:$0xff]  ;;  %v1561_v14 = vld [vmem:[%s5763_s6] sm:$0xff] }
 0x46e   :  { %v1393_v26 = vsel %vm182_vm8, %v1385_v60, %v1392_v18  ;;  %v1397_v9 = vperm.slane %v1391_v22, %v4230_v30  ;;  %v1418_v27 = vrot.slane %v1409_v57, 4  ;;  %1548 = vrot.lane.b32.xlu0 %v1475_v25, %s4027_s0  ;;  %v1457_v19 = vsel %vm182_vm8, %v1456_v13, %v1437_v42  ;;  %1588 = vmatpush.msrb.mxu3 %v1563_v49 }
 0x46f   :  { %v1401_v31 = vperm.slane %v1393_v26, %v4230_v30  ;;  %v1420_v32 = vrot.slane %v1413_v0, 4  ;;  %v1473_v58 = vsel %vm182_vm8, %v1472_v3, %v1455_v55  ;;  %v1463_v16 = vperm.slane %v1457_v19, %v4230_v30  ;;  %v3908_v19 = vld [vmem:[%s5762_s7] ss:$0 sm:$0xff] }
 0x470   :  { %v1414_v1 = vrot.slane %v1397_v9, 4  ;;  %1540 = vrot.lane.b32.xlu2 %v1473_v58, %s5776_s30  ;;  %v1470_v21 = vrot.slane %v1451_v54, 4  ;;  %v1419_v28 = vsel %vm182_vm8, 0.0, %v1418_v27  ;;  %1589 = vmatpush.msrb.mxu3 %v1562_v17  ;;  %v4017_v58 = vld [vmem:[%s5782_s26] sm:$0xff] }
 0x471   :  { %v1416_v24 = vrot.slane %v1401_v31, 4  ;;  %v1421_v33 = vsel %vm182_vm8, 0.0, %v1420_v32  ;;  %v1487_v34 = vsel %vm182_vm8, %v1420_v32, %v1409_v57  ;;  %v1468_v4 = vrot.slane %v1463_v16, 4 }
 0x472   :  { %v1491_v41 = vperm.slane %v1487_v34, %v4222_v15  ;;  %v1492_v35 = vrot.slane %v1421_v33, 4  ;;  %v1471_v36 = vsel %vm182_vm8, %v1463_v16, %v1470_v21  ;;  %v1415_v53 = vsel %vm182_vm8, 0.0, %v1414_v1  ;;  %1590 = vmatpush.msrb.mxu3 %v1561_v14  ;;  %v4018_v33 = vld [vmem:[%s5782_s26 + $0x8] sm:$0xff] }
 0x473   :  { %v1417_v37 = vsel %vm182_vm8, 0.0, %v1416_v24  ;;  %1532 = vrot.lane.b32.xlu1 %v1471_v36, %s5778_s2  ;;  %v1476_v38 = vsel %vm182_vm8, %v1416_v24, %v1397_v9  ;;  %v1469_v5 = vsel %vm182_vm8, %v1468_v4, %v1451_v54 }
 0x474   :  { %v1493_v39 = vsel %vm182_vm8, %v1492_v35, %v1419_v28  ;;  %v1480_v40 = vperm.slane %v1476_v38, %v4222_v15  ;;  %v1481_v42 = vrot.slane %v1417_v37, 4  ;;  %v1512_v45 = vrot.slane %v1491_v41, 4 }
 0x475   :  { %v1497_v44 = vperm.slane %v1493_v39, %v4222_v15 }
 0x476   :  { %v1482_v47 = vsel %vm182_vm8, %v1481_v42, %v1415_v53  ;;  %v1500_v43 = vrot.slane %v1480_v40, 4 }
 0x477   :  { %v1486_v12 = vperm.slane %v1482_v47, %v4222_v15  ;;  %v1513_v50 = vsel %vm182_vm8, %v1497_v44, %v1512_v45  ;;  %v1510_v52 = vrot.slane %v1497_v44, 4  ;;  %v1659_v45 = vld [vmem:[%s5767_s10 + $0x18] sm:$0xff]  ;;  %v1658_v47 = vld [vmem:[%s5767_s10 + $0x10] sm:$0xff] }
 0x478   :  { %v1521_v23 = vperm.slane %v1513_v50, %v4230_v30  ;;  %1682 = vmatpush.msra.mxu0 %v1659_v45  ;;  %v1656_v50 = vld [vmem:[%s5767_s10] sm:$0xff] }
 0x479   :  { %v1501_v6 = vsel %vm182_vm8, %v1486_v12, %v1500_v43  ;;  %v1498_v63 = vrot.slane %v1486_v12, 4  ;;  %v1511_v51 = vsel %vm182_vm8, %v1510_v52, %v1491_v41  ;;  %v1657_v12 = vld [vmem:[%s5767_s10 + $0x8] sm:$0xff] }
 0x47a   :  { %v1509_v55 = vperm.slane %v1501_v6, %v4230_v30  ;;  %v1526_v59 = vrot.slane %v1521_v23, 4  ;;  %v1517_v56 = vperm.slane %v1511_v51, %v4230_v30  ;;  %1683 = vmatpush.msra.mxu0 %v1658_v47  ;;  %v1725_v6 = vld [vmem:[%s5768_s12 + $0x70] sm:$0xff]  ;;  %v1724_v51 = vld [vmem:[%s5768_s12 + $0x68] sm:$0xff] }
 0x47b   :  { %v1499_v2 = vsel %vm182_vm8, %v1498_v63, %v1480_v40 }
 0x47c   :  { %v1527_v48 = vsel %vm182_vm8, %v1526_v59, %v1509_v55  ;;  %v1528_v60 = vrot.slane %v1509_v55, 4  ;;  %v1505_v29 = vperm.slane %v1499_v2, %v4230_v30  ;;  %v1522_v61 = vrot.slane %v1517_v56, 4  ;;  %1684 = vmatpush.msra.mxu0 %v1657_v12  ;;  %v1723_v2 = vld [vmem:[%s5768_s12 + $0x60] sm:$0xff] }
 0x47d   :  { %1542 = vrot.lane.b32.xlu0 %v1527_v48, %s5776_s30 }
 0x47e   :  { %v1529_v62 = vsel %vm182_vm8, %v1521_v23, %v1528_v60  ;;  %v1524_v7 = vrot.slane %v1505_v29, 4  ;;  %v1523_v46 = vsel %vm182_vm8, %v1522_v61, %v1505_v29  ;;  %1685 = vmatpush.msra.mxu0 %v1656_v50  ;;  %v1726_v23 = vld [vmem:[%s5768_s12 + $0x78] sm:$0xff] }
 0x47f   :  { %1550 = vrot.lane.b32.xlu2 %v1529_v62, %s4027_s0  ;;  %1731 = vmatpush.msra.mxu3 %v1726_v23  ;;  %v3909_v62 = vld [vmem:[%s5764_s8] ss:$0 sm:$0xff] }
 0x480   :  { %v1525_v8 = vsel %vm182_vm8, %v1517_v56, %v1524_v7 }
 0x481   :  { %1534 = vrot.lane.b32.xlu1 %v1525_v8, %s5778_s2  ;;  %1732 = vmatpush.msra.mxu3 %v1725_v6  ;;  %v3910_v8 = vld [vmem:[%s5765_s9] ss:$0 sm:$0xff] }
 0x483   :  { %1733 = vmatpush.msra.mxu3 %v1724_v51 }
 0x485   :  { %1734 = vmatpush.msra.mxu3 %v1723_v2 }
 0x4ca   :  { %v1541_v18 = vpop.permute.xlu2 %1540 }
 0x4d9   :  { %v1551_v26 = vpop.permute.xlu2 %1550 }
 0x4e0   :  { %v1549_v57 = vpop.permute.xlu0 %1548 }
 0x4e5   :  { %v1533_v54 = vpop.permute.xlu1 %1532 }
 0x4e6   :  { %v1554_v20 = vsel %vm948_vm9, %v1469_v5, %v1533_v54 }
 0x4e7   :  { %v1556_v13 = vsel %vm1105_vm10, %v1554_v20, %v1541_v18 }
 0x4e8   :  { %v1559_v22 = vsel %vm1558_vm11, %v1556_v13, %v1549_v57 }
 0x4e9   :  { %3736 = vmatmul.msk.f32.vlgmr.msrb.gmra.mxu3 %vm62_vm0, %v1559_v22 }
 0x4ef   :  { %v1543_v25 = vpop.permute.xlu0 %1542 }
 0x4f3   :  { %v1535_v0 = vpop.permute.xlu1 %1534 }
 0x4f4   :  { %v1555_v3 = vsel %vm948_vm9, %v1523_v46, %v1535_v0 }
 0x4f5   :  { %v1557_v9 = vsel %vm1105_vm10, %v1555_v3, %v1543_v25  ;;  %v1722_v3 = vld [vmem:[%s5768_s12 + $0x58] sm:$0xff] }
 0x4f6   :  { %v1560_v27 = vsel %vm1558_vm11, %v1557_v9, %v1551_v26  ;;  %v1721_v26 = vld [vmem:[%s5768_s12 + $0x50] sm:$0xff]  ;;  %1735 = vmatpush.msra.mxu3 %v1722_v3  ;;  %v1720_v9 = vld [vmem:[%s5768_s12 + $0x48] sm:$0xff] }
 0x4f7   :  { %3737 = vmatmul.msk.f32.gmra.mxu3 %vm62_vm0, %v1560_v27  ;;  %v1719_v27 = vld [vmem:[%s5768_s12 + $0x40] sm:$0xff]  ;;  %v3758_v3 = vld [vmem:[%s5760_s4 + $0xb0] sm:$0xff] }
 0x4f8   :  { %1736 = vmatpush.msra.mxu3 %v1721_v26 }
 0x4fa   :  { %1737 = vmatpush.msra.mxu3 %v1720_v9  ;;  %v3743_v9 = vld [vmem:[%s5760_s4 + $0x68] sm:$0xff] }
 0x4fc   :  { %1738 = vmatpush.msra.mxu3 %v1719_v27  ;;  %v3750_v27 = vld [vmem:[%s5760_s4 + $0x88] sm:$0xff] }
 0x56c   :  { %v1592_v31 = vpop.f32.mrf.mxu3 }
 0x56d   :  { %v1593_v32 = vadd.f32 %v3908_v19, %v1592_v31  ;;  %v1717_v31 = vld [vmem:[%s5768_s12 + $0x30] sm:$0xff] }
 0x56f   :  { %v4767_v16 = vadd.f32 %v4017_v58, %v1593_v32  ;;  %v1716_v32 = vld [vmem:[%s5768_s12 + $0x28] sm:$0xff]  ;;  %v1715_v58 = vld [vmem:[%s5768_s12 + $0x20] sm:$0xff] }
 0x571   :  { %v1602_v1 = vsel %vm62_vm0, %v4767_v16, 0.0 }
 0x572   :  { %1603 = vadd.xlane.f32.xlu1 %v1602_v1  ;;  %v1714_v1 = vld [vmem:[%s5768_s12 + $0x18] sm:$0xff] }
 0x57a   :  { %v1595_v21 = vpop.f32.mrf.mxu3 }
 0x57b   :  { %v1596_v24 = vadd.f32 %v3908_v19, %v1595_v21  ;;  %v1718_v19 = vld [vmem:[%s5768_s12 + $0x38] sm:$0xff]  ;;  %v1713_v21 = vld [vmem:[%s5768_s12 + $0x10] sm:$0xff] }
 0x57c   :  { %1739 = vmatpush.msra.mxu3 %v1718_v19  ;;  %v3757_v19 = vld [vmem:[%s5760_s4 + $0xa8] sm:$0xff] }
 0x57d   :  { %v4774_v34 = vadd.f32 %v4018_v33, %v1596_v24  ;;  %v1712_v24 = vld [vmem:[%s5768_s12 + $0x8] sm:$0xff]  ;;  %v1711_v33 = vld [vmem:[%s5768_s12] sm:$0xff] }
 0x57e   :  { %1740 = vmatpush.msra.mxu3 %v1717_v31  ;;  %v3742_v31 = vld [vmem:[%s5760_s4 + $0x60] sm:$0xff] }
 0x57f   :  { %v1605_v4 = vsel %vm62_vm0, %v4774_v34, 0.0 }
 0x580   :  { %1606 = vadd.xlane.f32.xlu0 %v1605_v4  ;;  %1741 = vmatpush.msra.mxu3 %v1716_v32  ;;  %v3911_v4 = vld [vmem:[%s5766_s11] ss:$0 sm:$0xff] }
 0x581   :  { %v3749_v32 = vld [vmem:[%s5760_s4 + $0x80] sm:$0xff] }
 0x582   :  { %1742 = vmatpush.msra.mxu3 %v1715_v58  ;;  %v3756_v58 = vld [vmem:[%s5760_s4 + $0xa0] sm:$0xff] }
 0x584   :  { %1743 = vmatpush.msra.mxu3 %v1714_v1 }
 0x586   :  { %1744 = vmatpush.msra.mxu3 %v1713_v21 }
 0x588   :  { %1745 = vmatpush.msra.mxu3 %v1712_v24 }
 0x58a   :  { %1746 = vmatpush.msra.mxu3 %v1711_v33 }
 0x5e5   :  { %v1604_v41 = vpop.xlane.xlu1 %1603 }
 0x5e6   :  { %v1608_v35 = vmul.f32 %v1604_v41, %v4128_v10 }
 0x5e8   :  { %v1610_v36 = vsub.f32 %v4767_v16, %v1608_v35 }
 0x5ea   :  { %v1612_v37 = vmul.f32 %v1610_v36, %v1610_v36 }
 0x5ec   :  { %v1614_v28 = vsel %vm62_vm0, %v1612_v37, 0.0 }
 0x5ed   :  { %1615 = vadd.xlane.f32.xlu2 %v1614_v28 }
 0x5f3   :  { %v1607_v38 = vpop.xlane.xlu0 %1606 }
 0x5f4   :  { %v1609_v5 = vmul.f32 %v1607_v38, %v4128_v10 }
 0x5f6   :  { %v1611_v39 = vsub.f32 %v4774_v34, %v1609_v5 }
 0x5f8   :  { %v1613_v40 = vmul.f32 %v1611_v39, %v1611_v39 }
 0x5fa   :  { %v1617_v42 = vsel %vm62_vm0, %v1613_v40, 0.0 }
 0x5fb   :  { %1618 = vadd.xlane.f32.xlu1 %v1617_v42 }
 0x660   :  { %v1616_v53 = vpop.xlane.xlu2 %1615 }
 0x661   :  { %v1620_v44 = vmul.f32 %v1616_v53, %v4128_v10 }
 0x663   :  { %v1622_v43 = vadd.f32 1e-05, %v1620_v44 }
 0x665   :  { %3961 = vrsqrt.f32 %v1622_v43  ;;  %vm1630_vm13 = vweird.f32 %v1622_v43 }
 0x66b   :  { %v3962_v52 = vpop.eup %3961 }
 0x66c   :  { %v1625_v63 = vmul.f32 %v3962_v52, %v1622_v43  ;;  %vm1631_vm12 = vweird.f32 %v3962_v52 }
 0x66d   :  { %vm1632_vm14 = vmor %vm1630_vm13, %vm1631_vm12 }
 0x66e   :  { %v1626_v55 = vmul.f32 %v3962_v52, %v1625_v63  ;;  %v1619_v59 = vpop.xlane.xlu1 %1618 }
 0x66f   :  { %v1621_v56 = vmul.f32 %v1619_v59, %v4128_v10 }
 0x670   :  { %v1627_v48 = vmul.f32 0.5, %v1626_v55  ;;  %v3912_v55 = vld [vmem:[%s5769_s13] ss:$0 sm:$0xff] }
 0x671   :  { %v1623_v60 = vadd.f32 1e-05, %v1621_v56 }
 0x672   :  { %v1628_v29 = vsub.f32 1.5, %v1627_v48 }
 0x673   :  { %3963 = vrsqrt.f32 %v1623_v60  ;;  %vm1640_vm1 = vweird.f32 %v1623_v60 }
 0x674   :  { %v1629_v61 = vmul.f32 %v3962_v52, %v1628_v29 }
 0x676   :  { %v1633_v7 = vsel %vm1632_vm14, %v3962_v52, %v1629_v61 }
 0x677   :  { %v1644_v46 = vmul.f32 %v1633_v7, %v1610_v36 }
 0x679   :  { %v3964_v11 = vpop.eup %3963  ;;  %v1649_v49 = vmul.f32 %v3909_v62, %v1644_v46 }
 0x67a   :  { %v1635_v17 = vmul.f32 %v3964_v11, %v1623_v60  ;;  %vm1641_vm15 = vweird.f32 %v3964_v11 }
 0x67b   :  { %v1654_v14 = vadd.f32 %v3910_v8, %v1649_v49  ;;  %vm1642_vm2 = vmor %vm1640_vm1, %vm1641_vm15 }
 0x67c   :  { %v1636_v54 = vmul.f32 %v3964_v11, %v1635_v17 }
 0x67d   :  { %3738 = vmatmul.msk.f32.vlgmr.msra.gmra.mxu0 %vm62_vm0, %v1654_v14 }
 0x67e   :  { %v1637_v18 = vmul.f32 0.5, %v1636_v54 }
 0x680   :  { %v1638_v20 = vsub.f32 1.5, %v1637_v18  ;;  %v3745_v18 = vld [vmem:[%s5760_s4 + $0x78] sm:$0xff] }
 0x681   :  { %1842 = vmatpush.msra.mxu2 %v3745_v18 }
 0x682   :  { %v1639_v57 = vmul.f32 %v3964_v11, %v1638_v20  ;;  %v3752_v20 = vld [vmem:[%s5760_s4 + $0x98] sm:$0xff] }
 0x683   :  { %2115 = vmatpush.msrb.mxu3 %v3752_v20 }
 0x684   :  { %v1643_v13 = vsel %vm1642_vm2, %v3964_v11, %v1639_v57  ;;  %v3759_v57 = vld [vmem:[%s5760_s4 + $0xb8] sm:$0xff] }
 0x685   :  { %v1645_v22 = vmul.f32 %v1643_v13, %v1611_v39  ;;  %2388 = vmatpush.msrb.mxu0 %v3759_v57 }
 0x687   :  { %v1650_v0 = vmul.f32 %v3909_v62, %v1645_v22  ;;  %2389 = vmatpush.msrb.mxu0 %v3758_v3 }
 0x689   :  { %v1655_v25 = vadd.f32 %v3910_v8, %v1650_v0  ;;  %v3744_v0 = vld [vmem:[%s5760_s4 + $0x70] sm:$0xff]  ;;  %2390 = vmatpush.msrb.mxu0 %v3757_v19 }
 0x68a   :  { %1843 = vmatpush.msra.mxu2 %v3744_v0 }
 0x68b   :  { %3739 = vmatmul.msk.f32.gmra.mxu0 %vm62_vm0, %v1655_v25  ;;  %v3751_v25 = vld [vmem:[%s5760_s4 + $0x90] sm:$0xff] }
 0x68c   :  { %2116 = vmatpush.msrb.mxu3 %v3751_v25  ;;  %1844 = vmatpush.msra.mxu2 %v3743_v9 }
 0x68d   :  { %2391 = vmatpush.msrb.mxu0 %v3756_v58 }
 0x68e   :  { %2117 = vmatpush.msrb.mxu3 %v3750_v27  ;;  %1845 = vmatpush.msra.mxu2 %v3742_v31 }
 0x690   :  { %2118 = vmatpush.msrb.mxu3 %v3749_v32 }
 0x6fa   :  { %v1687_v41 = vpop.f32.mrf.mxu0 }
 0x6fb   :  { %v1688_v35 = vadd.f32 %v3911_v4, %v1687_v41 }
 0x6fd   :  { %v1695_v36 = vmul.f32 0.044715, %v1688_v35  ;;  %v1693_v44 = vmul.f32 0.5, %v1688_v35 }
 0x6ff   :  { %v1697_v37 = vmul.f32 %v1695_v36, %v1688_v35 }
 0x701   :  { %v1699_v28 = vmul.f32 %v1697_v37, %v1688_v35 }
 0x703   :  { %v1701_v38 = vadd.f32 %v1699_v28, %v1688_v35  ;;  %v3903_v28 = vld [vmem:[%s5783_s27 + $0x1] ss:$0 sm:$0xff] }
 0x705   :  { %v1703_v5 = vmul.f32 0.7978846, %v1701_v38 }
 0x707   :  { %3965 = vtanh.f32 %v1703_v5  ;;  %v3904_v5 = vld [vmem:[%s5758_s3 + $0x1] ss:$0 sm:$0xff] }
 0x708   :  { %v1690_v39 = vpop.f32.mrf.mxu0 }
 0x709   :  { %v1691_v40 = vadd.f32 %v3911_v4, %v1690_v39 }
 0x70b   :  { %v1696_v42 = vmul.f32 0.044715, %v1691_v40  ;;  %v1694_v6 = vmul.f32 0.5, %v1691_v40 }
 0x70d   :  { %v3966_v45 = vpop.eup %3965  ;;  %v1698_v53 = vmul.f32 %v1696_v42, %v1691_v40 }
 0x70e   :  { %v1707_v47 = vadd.f32 1.0, %v3966_v45 }
 0x70f   :  { %v1700_v43 = vmul.f32 %v1698_v53, %v1691_v40 }
 0x710   :  { %v1709_v12 = vmul.f32 %v1707_v47, %v1693_v44 }
 0x711   :  { %v1702_v50 = vadd.f32 %v1700_v43, %v1691_v40 }
 0x712   :  { %1747 = vmatmul.f32.vlgmr.msra.gmra.mxu3 %v1709_v12 }
 0x713   :  { %v1704_v52 = vmul.f32 0.7978846, %v1702_v50 }
 0x715   :  { %3967 = vtanh.f32 %v1704_v52 }
 0x71b   :  { %v3968_v23 = vpop.eup %3967 }
 0x71c   :  { %v1708_v63 = vadd.f32 1.0, %v3968_v23 }
 0x71e   :  { %v1710_v51 = vmul.f32 %v1708_v63, %v1694_v6  ;;  %v3915_v63 = vld [vmem:[%s5759_s5 + $0x4] ss:$0 sm:$0xff] }
 0x720   :  { %1750 = vmatmul.f32.gmra.mxu3 %v1710_v51 }
 0x795   :  { %v1748_v59 = vpop.f32.mrf.mxu3 }
 0x796   :  { %v1749_v56 = vadd.f32 %v3912_v55, %v1748_v59 }
 0x798   :  { %v4861_v2 = vadd.f32 %v1749_v56, %v4767_v16 }
 0x79a   :  { %v1760_v48 = vsel %vm62_vm0, %v4861_v2, 0.0 }
 0x79b   :  { %1761 = vadd.xlane.f32.xlu0 %v1760_v48  ;;  %v3914_v48 = vld [vmem:[%s5759_s5 + $0x3] ss:$0 sm:$0xff] }
 0x7a3   :  { %v1751_v60 = vpop.f32.mrf.mxu3 }
 0x7a4   :  { %v1752_v29 = vadd.f32 %v3912_v55, %v1751_v60 }
 0x7a6   :  { %v4866_v61 = vadd.f32 %v1752_v29, %v4774_v34 }
 0x7a8   :  { %v1763_v62 = vsel %vm62_vm0, %v4866_v61, 0.0 }
 0x7a9   :  { %1764 = vadd.xlane.f32.xlu2 %v1763_v62 }
 0x80e   :  { %v1762_v7 = vpop.xlane.xlu0 %1761 }
 0x80f   :  { %v1766_v46 = vmul.f32 %v1762_v7, %v4128_v10 }
 0x811   :  { %v1768_v8 = vsub.f32 %v4861_v2, %v1766_v46 }
 0x813   :  { %v1770_v16 = vmul.f32 %v1768_v8, %v1768_v8 }
 0x815   :  { %v1772_v11 = vsel %vm62_vm0, %v1770_v16, 0.0 }
 0x816   :  { %1773 = vadd.xlane.f32.xlu1 %v1772_v11 }
 0x81c   :  { %v1765_v49 = vpop.xlane.xlu2 %1764 }
 0x81d   :  { %v1767_v17 = vmul.f32 %v1765_v49, %v4128_v10 }
 0x81f   :  { %v4875_v14 = vsub.f32 %v4866_v61, %v1767_v17 }
 0x821   :  { %v1771_v34 = vmul.f32 %v4875_v14, %v4875_v14 }
 0x823   :  { %v1775_v54 = vsel %vm62_vm0, %v1771_v34, 0.0 }
 0x824   :  { %1776 = vadd.xlane.f32.xlu0 %v1775_v54 }
 0x889   :  { %v1774_v13 = vpop.xlane.xlu1 %1773 }
 0x88a   :  { %v1778_v22 = vmul.f32 %v1774_v13, %v4128_v10 }
 0x88c   :  { %v1780_v26 = vadd.f32 1e-05, %v1778_v22 }
 0x88e   :  { %3969 = vrsqrt.f32 %v1780_v26  ;;  %vm1788_vm4 = vweird.f32 %v1780_v26 }
 0x894   :  { %v3970_v1 = vpop.eup %3969 }
 0x895   :  { %v1783_v21 = vmul.f32 %v3970_v1, %v1780_v26  ;;  %vm1789_vm3 = vweird.f32 %v3970_v1 }
 0x896   :  { %vm1790_vm5 = vmor %vm1788_vm4, %vm1789_vm3 }
 0x897   :  { %v1784_v24 = vmul.f32 %v3970_v1, %v1783_v21  ;;  %v1777_v33 = vpop.xlane.xlu0 %1776 }
 0x898   :  { %v1779_v4 = vmul.f32 %v1777_v33, %v4128_v10 }
 0x899   :  { %v1785_v41 = vmul.f32 0.5, %v1784_v24 }
 0x89a   :  { %v1781_v35 = vadd.f32 1e-05, %v1779_v4 }
 0x89b   :  { %v1786_v36 = vsub.f32 1.5, %v1785_v41 }
 0x89c   :  { %3971 = vrsqrt.f32 %v1781_v35  ;;  %vm1798_vm7 = vweird.f32 %v1781_v35 }
 0x89d   :  { %v1787_v37 = vmul.f32 %v3970_v1, %v1786_v36 }
 0x89f   :  { %v1791_v38 = vsel %vm1790_vm5, %v3970_v1, %v1787_v37 }
 0x8a0   :  { %v1802_v39 = vmul.f32 %v1791_v38, %v1768_v8 }
 0x8a2   :  { %v3972_v40 = vpop.eup %3971  ;;  %v1807_v42 = vmul.f32 %v3903_v28, %v1802_v39 }
 0x8a3   :  { %v1793_v45 = vmul.f32 %v3972_v40, %v1781_v35  ;;  %vm1799_vm6 = vweird.f32 %v3972_v40 }
 0x8a4   :  { %v1812_v53 = vadd.f32 %v3904_v5, %v1807_v42  ;;  %vm1800_vm12 = vmor %vm1798_vm7, %vm1799_vm6 }
 0x8a5   :  { %v1794_v44 = vmul.f32 %v3972_v40, %v1793_v45 }
 0x8a6   :  { %3747 = vmatmul.msk.f32.vlgmr.msra.gmra.mxu2 %vm62_vm0, %v1812_v53  ;;  %3754 = vmatmul.msk.f32.vlgmr.msrb.gmra.mxu3 %vm62_vm0, %v1812_v53 }
 0x8a7   :  { %v1795_v47 = vmul.f32 0.5, %v1794_v44  ;;  %3761 = vmatmul.msk.f32.vlgmr.msrb.gmra.mxu0 %vm62_vm0, %v1812_v53 }
 0x8a9   :  { %v1796_v43 = vsub.f32 1.5, %v1795_v47 }
 0x8ab   :  { %v1797_v12 = vmul.f32 %v3972_v40, %v1796_v43 }
 0x8ad   :  { %v1801_v50 = vsel %vm1800_vm12, %v3972_v40, %v1797_v12 }
 0x8ae   :  { %v1803_v52 = vmul.f32 %v1801_v50, %v4875_v14 }
 0x8b0   :  { %v1808_v23 = vmul.f32 %v3903_v28, %v1803_v52 }
 0x8b2   :  { %v1813_v6 = vadd.f32 %v3904_v5, %v1808_v23 }
 0x8b4   :  { %3748 = vmatmul.msk.f32.gmra.mxu2 %vm62_vm0, %v1813_v6  ;;  %3755 = vmatmul.msk.f32.gmra.mxu3 %vm62_vm0, %v1813_v6 }
 0x8b5   :  { %3762 = vmatmul.msk.f32.gmra.mxu0 %vm62_vm0, %v1813_v6 }
 0x929   :  { %v2120_v51 = vpop.f32.mrf.mxu3  ;;  %v1847_v60 = vpop.f32.mrf.mxu2 }
 0x92a   :  { %v2121_v55 = vadd.f32 %v3915_v63, %v2120_v51  ;;  %v4942_v29 = vadd.f32 %v3914_v48, %v1847_v60 }
 0x92c   :  { %2134 = vrot.lane.b32.xlu0 %v2121_v55, %s4022_s18  ;;  %2128 = vrot.lane.b32.xlu2 %v2121_v55, %s4023_s19  ;;  %v2148_v17 = vrot.slane %v2121_v55, 4  ;;  %v1875_v4 = vrot.slane %v4942_v29, 4 }
 0x937   :  { %v2123_v59 = vpop.f32.mrf.mxu3  ;;  %v1850_v62 = vpop.f32.mrf.mxu2 }
 0x938   :  { %v2124_v56 = vadd.f32 %v3915_v63, %v2123_v59  ;;  %v4949_v7 = vadd.f32 %v3914_v48, %v1850_v62 }
 0x93a   :  { %2142 = vrot.lane.b32.xlu0 %v2124_v56, %s4024_s21  ;;  %2136 = vrot.lane.b32.xlu1 %v2124_v56, %s4022_s18  ;;  %v2204_v34 = vrot.slane %v2124_v56, 4  ;;  %v1931_v41 = vrot.slane %v4949_v7, 4 }
 0x93b   :  { %2130 = vrot.lane.b32.xlu2 %v2124_v56, %s4023_s19 }
 0x942   :  { %1861 = vrot.lane.b32.xlu0 %v4942_v29, %s4022_s18  ;;  %2140 = vrot.lane.b32.xlu1 %v2121_v55, %s4024_s21 }
 0x943   :  { %1855 = vrot.lane.b32.xlu2 %v4942_v29, %s4023_s19 }
 0x94a   :  { %1867 = vrot.lane.b32.xlu1 %v4942_v29, %s4024_s21  ;;  %1863 = vrot.lane.b32.xlu0 %v4949_v7, %s4022_s18 }
 0x94b   :  { %1857 = vrot.lane.b32.xlu2 %v4949_v7, %s4023_s19 }
 0x952   :  { %1869 = vrot.lane.b32.xlu1 %v4949_v7, %s4024_s21 }
 0x986   :  { %v2129_v46 = vpop.permute.xlu2 %2128 }
 0x987   :  { %v2160_v24 = vrot.slane %v2129_v46, 4 }
 0x995   :  { %v2131_v8 = vpop.permute.xlu2 %2130 }
 0x996   :  { %v2216_v14 = vrot.slane %v2131_v8, 4 }
 0x99d   :  { %v4959_v11 = vpop.permute.xlu2 %1855 }
 0x99e   :  { %v2135_v16 = vpop.permute.xlu0 %2134  ;;  %v1887_v38 = vrot.slane %v4959_v11, 4 }
 0x99f   :  { %v2146_v49 = vrot.slane %v2135_v16, 4  ;;  %v2149_v18 = vsel %vm182_vm8, %v2135_v16, %v2148_v17 }
 0x9a0   :  { %v2157_v27 = vperm.slane %v2149_v18, %v4222_v15 }
 0x9a1   :  { %v2147_v54 = vsel %vm182_vm8, %v2146_v49, %v2121_v55 }
 0x9a2   :  { %v4968_v9 = vperm.slane %v2147_v54, %v4222_v15  ;;  %v2184_v5 = vrot.slane %v2157_v27, 4 }
 0x9a4   :  { %v2172_v42 = vrot.slane %v4968_v9, 4 }
 0x9a5   :  { %v4975_v33 = vpop.permute.xlu2 %1857 }
 0x9a6   :  { %v1943_v45 = vrot.slane %v4975_v33, 4 }
 0x9ac   :  { %v2137_v20 = vpop.permute.xlu1 %2136  ;;  %v2143_v57 = vpop.permute.xlu0 %2142 }
 0x9ad   :  { %v2202_v13 = vrot.slane %v2137_v20, 4  ;;  %v2205_v22 = vsel %vm182_vm8, %v2137_v20, %v2204_v34  ;;  %v2214_v0 = vrot.slane %v2143_v57, 4  ;;  %v2217_v25 = vsel %vm182_vm8, %v2143_v57, %v2216_v14 }
 0x9ae   :  { %v2213_v3 = vperm.slane %v2205_v22, %v4222_v15  ;;  %v2225_v26 = vperm.slane %v2217_v25, %v4222_v15 }
 0x9af   :  { %v2203_v19 = vsel %vm182_vm8, %v2202_v13, %v2124_v56  ;;  %v2215_v31 = vsel %vm182_vm8, %v2214_v0, %v2131_v8 }
 0x9b0   :  { %v2209_v32 = vperm.slane %v2203_v19, %v4222_v15  ;;  %v2240_v58 = vrot.slane %v2213_v3, 4  ;;  %v2221_v1 = vperm.slane %v2215_v31, %v4222_v15  ;;  %v2238_v21 = vrot.slane %v2225_v26, 4 }
 0x9b2   :  { %v2228_v35 = vrot.slane %v2209_v32, 4  ;;  %v2226_v36 = vrot.slane %v2221_v1, 4  ;;  %v2239_v37 = vsel %vm182_vm8, %v2238_v21, %v2213_v3  ;;  %v2241_v28 = vsel %vm182_vm8, %v2225_v26, %v2240_v58 }
 0x9b3   :  { %v2245_v39 = vperm.slane %v2239_v37, %v4230_v30  ;;  %v2249_v40 = vperm.slane %v2241_v28, %v4230_v30 }
 0x9b4   :  { %v2227_v53 = vsel %vm182_vm8, %v2226_v36, %v2209_v32  ;;  %v2229_v44 = vsel %vm182_vm8, %v2221_v1, %v2228_v35  ;;  %v2141_v47 = vpop.permute.xlu1 %2140  ;;  %v1862_v43 = vpop.permute.xlu0 %1861 }
 0x9b5   :  { %v2233_v12 = vperm.slane %v2227_v53, %v4230_v30  ;;  %v2237_v50 = vperm.slane %v2229_v44, %v4230_v30  ;;  %v2254_v52 = vrot.slane %v2245_v39, 4  ;;  %v2256_v23 = vrot.slane %v2249_v40, 4 }
 0x9b6   :  { %v2158_v6 = vrot.slane %v2141_v47, 4  ;;  %v2161_v63 = vsel %vm182_vm8, %v2141_v47, %v2160_v24  ;;  %v1873_v51 = vrot.slane %v1862_v43, 4  ;;  %v1876_v55 = vsel %vm182_vm8, %v1862_v43, %v1875_v4 }
 0x9b7   :  { %v2250_v59 = vrot.slane %v2233_v12, 4  ;;  %v2252_v56 = vrot.slane %v2237_v50, 4  ;;  %v2255_v48 = vsel %vm182_vm8, 0.0, %v2254_v52  ;;  %v2257_v60 = vsel %vm182_vm8, 0.0, %v2256_v23 }
 0x9b8   :  { %v2323_v62 = vsel %vm182_vm8, %v2256_v23, %v2245_v39  ;;  %v2328_v8 = vrot.slane %v2257_v60, 4  ;;  %v2159_v16 = vsel %vm182_vm8, %v2158_v6, %v2129_v46  ;;  %v2169_v49 = vperm.slane %v2161_v63, %v4222_v15 }
 0x9b9   :  { %v2251_v17 = vsel %vm182_vm8, 0.0, %v2250_v59  ;;  %v2253_v14 = vsel %vm182_vm8, 0.0, %v2252_v56  ;;  %v2312_v34 = vsel %vm182_vm8, %v2252_v56, %v2233_v12  ;;  %v5001_v54 = vperm.slane %v2323_v62, %v4222_v15 }
 0x9ba   :  { %v2317_v18 = vrot.slane %v2253_v14, 4  ;;  %v2329_v20 = vsel %vm182_vm8, %v2328_v8, %v2255_v48  ;;  %v2165_v57 = vperm.slane %v2159_v16, %v4222_v15  ;;  %v2182_v13 = vrot.slane %v2169_v49, 4 }
 0x9bb   :  { %v5006_v22 = vperm.slane %v2329_v20, %v4222_v15  ;;  %v2348_v46 = vrot.slane %v5001_v54, 4  ;;  %v2185_v0 = vsel %vm182_vm8, %v2169_v49, %v2184_v5  ;;  %v1874_v25 = vsel %vm182_vm8, %v1873_v51, %v4942_v29 }
 0x9bc   :  { %v2170_v3 = vrot.slane %v2165_v57, 4  ;;  %v2173_v26 = vsel %vm182_vm8, %v2165_v57, %v2172_v42  ;;  %v2183_v19 = vsel %vm182_vm8, %v2182_v13, %v2157_v27  ;;  %v2193_v31 = vperm.slane %v2185_v0, %v4230_v30  ;;  %v1868_v32 = vpop.permute.xlu1 %1867 }
 0x9bd   :  { %v2181_v58 = vperm.slane %v2173_v26, %v4230_v30  ;;  %v2189_v1 = vperm.slane %v2183_v19, %v4230_v30  ;;  %v1880_v21 = vperm.slane %v1874_v25, %v4222_v15  ;;  %v1884_v24 = vperm.slane %v1876_v55, %v4222_v15 }
 0x9be   :  { %v2171_v4 = vsel %vm182_vm8, %v2170_v3, %v4968_v9  ;;  %v2200_v29 = vrot.slane %v2193_v31, 4  ;;  %v1885_v35 = vrot.slane %v1868_v32, 4  ;;  %v1888_v36 = vsel %vm182_vm8, %v1868_v32, %v1887_v38  ;;  %v1864_v9 = vpop.permute.xlu0 %1863 }
 0x9bf   :  { %v5023_v27 = vperm.slane %v2171_v4, %v4230_v30  ;;  %v5025_v37 = vrot.slane %v2181_v58, 4  ;;  %v2198_v28 = vrot.slane %v2189_v1, 4  ;;  %v1899_v5 = vrot.slane %v1880_v21, 4 }
 0x9c0   :  { %v2201_v39 = vsel %vm182_vm8, 0.0, %v2200_v29  ;;  %v2269_v40 = vsel %vm182_vm8, %v2200_v29, %v2189_v1  ;;  %v1911_v42 = vrot.slane %v1884_v24, 4  ;;  %v1886_v53 = vsel %vm182_vm8, %v1885_v35, %v4959_v11 }
 0x9c1   :  { %v2194_v44 = vrot.slane %v5023_v27, 4  ;;  %v5034_v38 = vsel %vm182_vm8, 0.0, %v5025_v37  ;;  %v2199_v47 = vsel %vm182_vm8, 0.0, %v2198_v28  ;;  %v5038_v43 = vperm.slane %v2269_v40, %v4222_v15 }
 0x9c2   :  { %v2263_v12 = vrot.slane %v5034_v38, 4  ;;  %v2274_v50 = vrot.slane %v2201_v39, 4  ;;  %v1892_v52 = vperm.slane %v1886_v53, %v4222_v15  ;;  %v1896_v23 = vperm.slane %v1888_v36, %v4222_v15 }
 0x9c3   :  { %v1929_v11 = vrot.slane %v1864_v9, 4  ;;  %v1932_v6 = vsel %vm182_vm8, %v1864_v9, %v1931_v41  ;;  %v2316_v63 = vperm.slane %v2312_v34, %v4222_v15  ;;  %v2318_v51 = vsel %vm182_vm8, %v2317_v18, %v2251_v17 }
 0x9c4   :  { %v5049_v55 = vsel %vm182_vm8, %v2274_v50, %v2199_v47  ;;  %v1897_v59 = vrot.slane %v1892_v52, 4  ;;  %v1900_v56 = vsel %vm182_vm8, %v1892_v52, %v1899_v5  ;;  %v1909_v48 = vrot.slane %v1896_v23, 4  ;;  %v1870_v32 = vpop.permute.xlu1 %1869 }
 0x9c5   :  { %v1908_v60 = vperm.slane %v1900_v56, %v4230_v30  ;;  %v1912_v62 = vsel %vm182_vm8, %v1896_v23, %v1911_v42  ;;  %v1930_v8 = vsel %vm182_vm8, %v1929_v11, %v4949_v7  ;;  %v1940_v41 = vperm.slane %v1932_v6, %v4222_v15 }
 0x9c6   :  { %v1898_v16 = vsel %vm182_vm8, %v1897_v59, %v1880_v21  ;;  %v1910_v49 = vsel %vm182_vm8, %v1909_v48, %v1884_v24  ;;  %v1920_v17 = vperm.slane %v1912_v62, %v4230_v30  ;;  %v1936_v14 = vperm.slane %v1930_v8, %v4222_v15 }
 0x9c7   :  { %v1904_v34 = vperm.slane %v1898_v16, %v4230_v30  ;;  %v1916_v18 = vperm.slane %v1910_v49, %v4230_v30  ;;  %v1923_v20 = vrot.slane %v1908_v60, 4  ;;  %v1967_v57 = vrot.slane %v1940_v41, 4 }
 0x9c8   :  { %v1927_v13 = vrot.slane %v1920_v17, 4  ;;  %v1955_v0 = vrot.slane %v1936_v14, 4  ;;  %v2322_v7 = vperm.slane %v2318_v51, %v4222_v15  ;;  %v2336_v25 = vrot.slane %v2316_v63, 4 }
 0x9c9   :  { %v1921_v3 = vrot.slane %v1904_v34, 4  ;;  %v5065_v26 = vsel %vm182_vm8, 0.0, %v1923_v20  ;;  %v1925_v19 = vrot.slane %v1916_v18, 4  ;;  %v5068_v31 = vsel %vm182_vm8, %v1923_v20, %v1904_v34 }
 0x9ca   :  { %v1928_v58 = vsel %vm182_vm8, 0.0, %v1927_v13  ;;  %v1990_v1 = vrot.slane %v5065_v26, 4  ;;  %v1996_v21 = vsel %vm182_vm8, %v1927_v13, %v1916_v18  ;;  %v2337_v24 = vsel %vm182_vm8, %v2322_v7, %v2336_v25 }
 0x9cb   :  { %v5075_v4 = vsel %vm182_vm8, 0.0, %v1921_v3  ;;  %v1926_v29 = vsel %vm182_vm8, 0.0, %v1925_v19  ;;  %v5079_v35 = vperm.slane %v1996_v21, %v4222_v15  ;;  %v2001_v36 = vrot.slane %v1928_v58, 4 }
 0x9cc   :  { %v2345_v28 = vperm.slane %v2337_v24, %v4230_v30  ;;  %v2349_v5 = vsel %vm182_vm8, %v5006_v22, %v2348_v46  ;;  %v1941_v39 = vrot.slane %v1870_v32, 4  ;;  %v1944_v40 = vsel %vm182_vm8, %v1870_v32, %v1943_v45 }
 0x9cd   :  { %v2002_v42 = vsel %vm182_vm8, %v2001_v36, %v1926_v29  ;;  %v2021_v53 = vrot.slane %v5079_v35, 4  ;;  %v2357_v9 = vperm.slane %v2349_v5, %v4230_v30  ;;  %v1952_v47 = vperm.slane %v1944_v40, %v4222_v15 }
 0x9ce   :  { %v5094_v50 = vperm.slane %v2002_v42, %v4222_v15  ;;  %v1942_v52 = vsel %vm182_vm8, %v1941_v39, %v4975_v33  ;;  %v2334_v46 = vrot.slane %v2322_v7, 4  ;;  %v2346_v23 = vrot.slane %v5006_v22, 4 }
 0x9cf   :  { %v2362_v11 = vrot.slane %v2357_v9, 4  ;;  %v1948_v45 = vperm.slane %v1942_v52, %v4222_v15  ;;  %v1965_v6 = vrot.slane %v1952_v47, 4  ;;  %v1968_v51 = vsel %vm182_vm8, %v1952_v47, %v1967_v57 }
 0x9d0   :  { %v1976_v59 = vperm.slane %v1968_v51, %v4230_v30  ;;  %v2335_v56 = vsel %vm182_vm8, %v2334_v46, %v2316_v63  ;;  %v2347_v48 = vsel %vm182_vm8, %v2346_v23, %v5001_v54  ;;  %v2364_v60 = vrot.slane %v2345_v28, 4 }
 0x9d1   :  { %v2363_v62 = vsel %vm182_vm8, %v2362_v11, %v2345_v28  ;;  %v1953_v33 = vrot.slane %v1948_v45, 4  ;;  %v1956_v8 = vsel %vm182_vm8, %v1948_v45, %v1955_v0  ;;  %v1966_v22 = vsel %vm182_vm8, %v1965_v6, %v1940_v41 }
 0x9d2   :  { %3771 = vmatpush.xpose.msk.msra.mxu0 %vm948_vm9, %v2363_v62  ;;  %v1964_v16 = vperm.slane %v1956_v8, %v4230_v30  ;;  %v1972_v49 = vperm.slane %v1966_v22, %v4230_v30  ;;  %v1983_v17 = vrot.slane %v1976_v59, 4  ;;  %v2341_v63 = vperm.slane %v2335_v56, %v4230_v30 }
 0x9d3   :  { %v1954_v34 = vsel %vm182_vm8, %v1953_v33, %v1936_v14  ;;  %v2353_v54 = vperm.slane %v2347_v48, %v4230_v30  ;;  %v2365_v18 = vsel %vm182_vm8, %v2357_v9, %v2364_v60  ;;  %v2195_v20 = vsel %vm182_vm8, 0.0, %v2194_v44 }
 0x9d4   :  { %v5119_v41 = vperm.slane %v1954_v34, %v4230_v30  ;;  %v5121_v57 = vrot.slane %v1964_v16, 4  ;;  %v1981_v13 = vrot.slane %v1972_v49, 4  ;;  %v5124_v0 = vsel %vm182_vm8, 0.0, %v1983_v17  ;;  %3775 = vmatpush.xpose.msk.msra.mxu1 %vm948_vm9, %v2365_v18 }
 0x9d5   :  { %v2050_v14 = vsel %vm182_vm8, %v1983_v17, %v1972_v49  ;;  %v2055_v7 = vrot.slane %v5124_v0, 4  ;;  %v2358_v25 = vrot.slane %v2353_v54, 4  ;;  %v2360_v3 = vrot.slane %v2341_v63, 4 }
 0x9d6   :  { %v1977_v19 = vrot.slane %v5119_v41, 4  ;;  %v1980_v44 = vsel %vm182_vm8, 0.0, %v5121_v57  ;;  %v1982_v32 = vsel %vm182_vm8, 0.0, %v1981_v13  ;;  %v5134_v58 = vperm.slane %v2050_v14, %v4222_v15 }
 0x9d7   :  { %v2044_v21 = vrot.slane %v1980_v44, 4  ;;  %v2359_v24 = vsel %vm182_vm8, %v2358_v25, %v2341_v63  ;;  %v2361_v29 = vsel %vm182_vm8, %v2353_v54, %v2360_v3  ;;  %v2258_v36 = vsel %vm182_vm8, %v5025_v37, %v5023_v27 }
 0x9d8   :  { %3763 = vmatpush.xpose.msk.msrb.mxu2 %vm948_vm9, %v2359_v24  ;;  %3767 = vmatpush.xpose.msk.msra.mxu3 %vm948_vm9, %v2361_v29  ;;  %v2262_v28 = vperm.slane %v2258_v36, %v4222_v15  ;;  %v2264_v5 = vsel %vm182_vm8, %v2263_v12, %v2195_v20  ;;  %v2279_v39 = vperm.slane %v5049_v55, %v4222_v15  ;;  %v2294_v40 = vrot.slane %v5038_v43, 4 }
 0x9d9   :  { %v2268_v42 = vperm.slane %v2264_v5, %v4222_v15  ;;  %v1989_v27 = vperm.slane %v5068_v31, %v4222_v15  ;;  %v1991_v37 = vsel %vm182_vm8, %v1990_v1, %v5075_v4  ;;  %v2022_v38 = vsel %vm182_vm8, %v5094_v50, %v2021_v53 }
 0x9da   :  { %v2282_v9 = vrot.slane %v2262_v28, 4  ;;  %v2295_v12 = vsel %vm182_vm8, %v2279_v39, %v2294_v40  ;;  %v2292_v47 = vrot.slane %v2279_v39, 4  ;;  %v1995_v55 = vperm.slane %v1991_v37, %v4222_v15 }
 0x9db   :  { %v2303_v52 = vperm.slane %v2295_v12, %v4230_v30  ;;  %v2280_v46 = vrot.slane %v2268_v42, 4  ;;  %v2009_v23 = vrot.slane %v1989_v27, 4  ;;  %v2030_v31 = vperm.slane %v2022_v38, %v4230_v30 }
 0x9dc   :  { %v2283_v11 = vsel %vm182_vm8, %v2268_v42, %v2282_v9  ;;  %v2293_v26 = vsel %vm182_vm8, %v2292_v47, %v5038_v43  ;;  %v2007_v1 = vrot.slane %v1995_v55, 4  ;;  %v2019_v4 = vrot.slane %v5094_v50, 4 }
 0x9dd   :  { %v2291_v53 = vperm.slane %v2283_v11, %v4230_v30  ;;  %v2308_v45 = vrot.slane %v2303_v52, 4  ;;  %v2281_v6 = vsel %vm182_vm8, %v2280_v46, %v2262_v28  ;;  %v2299_v51 = vperm.slane %v2293_v26, %v4230_v30 }
 0x9de   :  { %v2287_v59 = vperm.slane %v2281_v6, %v4230_v30  ;;  %v2010_v56 = vsel %vm182_vm8, %v1995_v55, %v2009_v23  ;;  %v2035_v48 = vrot.slane %v2030_v31, 4  ;;  %v2008_v60 = vsel %vm182_vm8, %v2007_v1, %v1989_v27  ;;  %v2393_v23 = vpop.f32.mrf.mxu0 }
 0x9df   :  { %v2309_v62 = vsel %vm182_vm8, %v2308_v45, %v2291_v53  ;;  %v2304_v43 = vrot.slane %v2299_v51, 4  ;;  %v2310_v33 = vrot.slane %v2291_v53, 4  ;;  %v2018_v50 = vperm.slane %v2010_v56, %v4230_v30  ;;  %v4019_v53 = vld [vmem:[%s5761_s1] sm:$0xff] }
 0x9e0   :  { %3772 = vmatpush.xpose.msk.msra.mxu0 %vm948_vm9, %v2309_v62  ;;  %v2306_v8 = vrot.slane %v2287_v59, 4  ;;  %v2014_v22 = vperm.slane %v2008_v60, %v4230_v30  ;;  %v2020_v16 = vsel %vm182_vm8, %v2019_v4, %v5079_v35  ;;  %v1978_v49 = vsel %vm182_vm8, 0.0, %v1977_v19 }
 0x9e1   :  { %v2305_v17 = vsel %vm182_vm8, %v2304_v43, %v2287_v59  ;;  %v2311_v63 = vsel %vm182_vm8, %v2303_v52, %v2310_v33  ;;  %v2036_v34 = vsel %vm182_vm8, %v2035_v48, %v2018_v50  ;;  %v2026_v54 = vperm.slane %v2020_v16, %v4230_v30 }
 0x9e2   :  { %3764 = vmatpush.xpose.msk.msrb.mxu2 %vm948_vm9, %v2305_v17  ;;  %3776 = vmatpush.xpose.msk.msra.mxu1 %vm948_vm9, %v2311_v63  ;;  %v2307_v18 = vsel %vm182_vm8, %v2299_v51, %v2306_v8  ;;  %v2037_v20 = vrot.slane %v2018_v50, 4  ;;  %v2033_v13 = vrot.slane %v2014_v22, 4  ;;  %v2039_v35 = vsel %vm182_vm8, %v5121_v57, %v5119_v41 }
 0x9e3   :  { %3768 = vmatpush.xpose.msk.msra.mxu3 %vm948_vm9, %v2307_v18  ;;  %3773 = vmatmul.msk.f32.vlgmr.msra.gmra.mxu0 %vm948_vm9, %v2036_v34  ;;  %v2031_v14 = vrot.slane %v2026_v54, 4  ;;  %v2043_v25 = vperm.slane %v2039_v35, %v4222_v15  ;;  %v2045_v3 = vsel %vm182_vm8, %v2044_v21, %v1978_v49  ;;  %v2056_v19 = vsel %vm182_vm8, %v2055_v7, %v1982_v32 }
 0x9e4   :  { %v2038_v44 = vsel %vm182_vm8, %v2030_v31, %v2037_v20  ;;  %v2034_v24 = vsel %vm182_vm8, %v2026_v54, %v2033_v13  ;;  %v2049_v29 = vperm.slane %v2045_v3, %v4222_v15  ;;  %v2060_v41 = vperm.slane %v2056_v19, %v4222_v15  ;;  %v4020_v54 = vld [vmem:[%s5761_s1 + $0x8] sm:$0xff] }
 0x9e5   :  { %v2032_v57 = vsel %vm182_vm8, %v2031_v14, %v2014_v22  ;;  %3777 = vmatmul.msk.f32.vlgmr.msra.gmra.mxu1 %vm948_vm9, %v2038_v44  ;;  %v2063_v36 = vrot.slane %v2043_v25, 4  ;;  %v2075_v28 = vrot.slane %v5134_v58, 4 }
 0x9e6   :  { %3765 = vmatmul.msk.f32.vlgmr.msrb.gmra.mxu2 %vm948_vm9, %v2032_v57  ;;  %3769 = vmatmul.msk.f32.vlgmr.msra.gmra.mxu3 %vm948_vm9, %v2034_v24  ;;  %v2061_v0 = vrot.slane %v2049_v29, 4  ;;  %v2073_v7 = vrot.slane %v2060_v41, 4  ;;  %v2396_v31 = vpop.f32.mrf.mxu0 }
 0x9e7   :  { %v2064_v32 = vsel %vm182_vm8, %v2049_v29, %v2063_v36  ;;  %v2076_v21 = vsel %vm182_vm8, %v2060_v41, %v2075_v28  ;;  %v3913_v29 = vld [vmem:[%s5759_s5 + $0x5] ss:$0 sm:$0xff]  ;;  %s5784_s5 = smov 16  }
 0x9e8   :  { %v2072_v5 = vperm.slane %v2064_v32, %v4230_v30  ;;  %v2084_v39 = vperm.slane %v2076_v21, %v4230_v30  ;;  %v2062_v40 = vsel %vm182_vm8, %v2061_v0, %v2043_v25  ;;  %v2074_v42 = vsel %vm182_vm8, %v2073_v7, %v5134_v58 }
 0x9e9   :  { %v2068_v27 = vperm.slane %v2062_v40, %v4230_v30  ;;  %v2080_v37 = vperm.slane %v2074_v42, %v4230_v30  ;;  %v5243_v41 = vadd.f32 %v3913_v29, %v2396_v31  ;;  %v5245_v57 = vadd.f32 %v3913_v29, %v2393_v23 }
 0x9ea   :  { %v2089_v38 = vrot.slane %v2084_v39, 4  ;;  %v2091_v9 = vrot.slane %v2072_v5, 4 }
 0x9eb   :  { %v2085_v12 = vrot.slane %v2080_v37, 4  ;;  %v2087_v47 = vrot.slane %v2068_v27, 4  ;;  %v3891_v36 = vpack.i.bf16 %v5245_v57, %v5243_v41 }
 0x9ec   :  { %v2090_v55 = vsel %vm182_vm8, %v2089_v38, %v2072_v5  ;;  %v2092_v52 = vsel %vm182_vm8, %v2084_v39, %v2091_v9 }
 0x9ed   :  { %3774 = vmatmul.msk.f32.gmra.mxu0 %vm948_vm9, %v2090_v55  ;;  %v2086_v46 = vsel %vm182_vm8, %v2085_v12, %v2068_v27  ;;  %3778 = vmatmul.msk.f32.gmra.mxu1 %vm948_vm9, %v2092_v52  ;;  %v2088_v58 = vsel %vm182_vm8, %v2080_v37, %v2087_v47 }
 0x9ee   :  { %3766 = vmatmul.msk.f32.gmra.mxu2 %vm948_vm9, %v2086_v46  ;;  %3770 = vmatmul.msk.f32.gmra.mxu3 %vm948_vm9, %v2088_v58 }
 0xa60   :  { %v2738_v11 = vpop.f32.mrf.mxu0 }
 0xa61   :  { %v2783_v26 = vmul.f32 0.35355338, %v2738_v11 }
 0xa62   :  { %v2773_v1 = vpop.f32.mrf.mxu1 }
 0xa63   :  { %v2785_v4 = vmul.f32 0.35355338, %v2773_v1  ;;  %v2791_v45 = vadd.f32 %v4019_v53, %v2783_v26 }
 0xa65   :  { %v2807_v6 = vsel %vm1105_vm10, %v2791_v45, -inf  ;;  %v2793_v51 = vadd.f32 %v4019_v53, %v2785_v4 }
 0xa66   :  { %2808 = vmax.xlane.f32.xlu1 %v2807_v6 }
 0xa67   :  { %v2813_v59 = vsel %vm1105_vm10, %v2793_v51, -inf }
 0xa68   :  { %2814 = vmax.xlane.f32.xlu2 %v2813_v59 }
 0xa69   :  { %v2668_v56 = vpop.f32.mrf.mxu2  ;;  %v2703_v48 = vpop.f32.mrf.mxu3 }
 0xa6a   :  { %v2779_v60 = vmul.f32 0.35355338, %v2668_v56  ;;  %v2781_v62 = vmul.f32 0.35355338, %v2703_v48  ;;  %v2776_v43 = vpop.f32.mrf.mxu1  ;;  %v2741_v33 = vpop.f32.mrf.mxu0 }
 0xa6b   :  { %v2786_v22 = vmul.f32 0.35355338, %v2776_v43  ;;  %v2784_v49 = vmul.f32 0.35355338, %v2741_v33 }
 0xa6c   :  { %v2789_v50 = vadd.f32 %v4019_v53, %v2781_v62  ;;  %v2787_v8 = vadd.f32 %v4019_v53, %v2779_v60 }
 0xa6d   :  { %v5233_v18 = vadd.f32 %v4020_v54, %v2786_v22  ;;  %v2792_v13 = vadd.f32 %v4020_v54, %v2784_v49 }
 0xa6e   :  { %v2801_v16 = vsel %vm1105_vm10, %v2789_v50, -inf  ;;  %v2795_v17 = vsel %vm1105_vm10, %v2787_v8, -inf }
 0xa6f   :  { %2802 = vmax.xlane.f32.xlu0 %v2801_v16  ;;  %v2816_v25 = vsel %vm1105_vm10, %v5233_v18, -inf  ;;  %v2810_v19 = vsel %vm1105_vm10, %v2792_v13, -inf }
 0xa70   :  { %2796 = vmax.xlane.f32.xlu2 %v2795_v17 }
 0xa71   :  { %v2706_v63 = vpop.f32.mrf.mxu3  ;;  %v2671_v20 = vpop.f32.mrf.mxu2 }
 0xa72   :  { %v2782_v34 = vmul.f32 0.35355338, %v2706_v63  ;;  %v2780_v14 = vmul.f32 0.35355338, %v2671_v20  ;;  %v2421_v63 = vrot.slane %v5245_v57, 4 }
 0xa74   :  { %v2790_v35 = vadd.f32 %v4020_v54, %v2782_v34  ;;  %v2788_v44 = vadd.f32 %v4020_v54, %v2780_v14  ;;  %v2477_v34 = vrot.slane %v5243_v41, 4 }
 0xa76   :  { %v2804_v3 = vsel %vm1105_vm10, %v2790_v35, -inf  ;;  %v2798_v24 = vsel %vm1105_vm10, %v2788_v44, -inf }
 0xa77   :  { %2817 = vmax.xlane.f32.xlu0 %v2816_v25  ;;  %2805 = vmax.xlane.f32.xlu1 %v2804_v3 }
 0xa78   :  { %2811 = vmax.xlane.f32.xlu2 %v2810_v19 }
 0xa7f   :  { %2799 = vmax.xlane.f32.xlu0 %v2798_v24 }
 0xa90   :  { %3892 = vrot.lane.b32.xlu2 %v3891_v36, %s4022_s18  ;;  %3887 = vrot.lane.b32.xlu1 %v3891_v36, %s4023_s19  ;;  %s5785_s18 = smov 8  }
 0xa93   :  { %3897 = vrot.lane.b32.xlu0 %v3891_v36, %s4024_s21 }
 0xad9   :  { %v2809_v28 = vpop.xlane.xlu1 %2808 }
 0xada   :  { %v2823_v0 = vsub.f32 %v2791_v45, %v2809_v28 }
 0xadb   :  { %v2815_v7 = vpop.xlane.xlu2 %2814 }
 0xadc   :  { %v2835_v32 = vmul.f32 1.442695, %v2823_v0  ;;  %v2825_v27 = vsub.f32 %v2793_v51, %v2815_v7 }
 0xade   :  { %3973 = vpow2.f32 %v2835_v32  ;;  %v2839_v12 = vmul.f32 1.442695, %v2825_v27 }
 0xae2   :  { %v2803_v21 = vpop.xlane.xlu0 %2802 }
 0xae3   :  { %v2797_v5 = vpop.xlane.xlu2 %2796  ;;  %v2821_v39 = vsub.f32 %v2789_v50, %v2803_v21 }
 0xae4   :  { %v5252_v40 = vpop.eup %3973  ;;  %v2819_v42 = vsub.f32 %v2787_v8, %v2797_v5 }
 0xae5   :  { %v2831_v37 = vmul.f32 1.442695, %v2821_v39  ;;  %v2855_v38 = vsel %vm1105_vm10, %v5252_v40, 0.0 }
 0xae6   :  { %v2827_v9 = vmul.f32 1.442695, %v2819_v42  ;;  %2856 = vadd.xlane.f32.xlu1 %v2855_v38 }
 0xae7   :  { %3975 = vpow2.f32 %v2831_v37 }
 0xae8   :  { %3977 = vpow2.f32 %v2827_v9 }
 0xae9   :  { %3979 = vpow2.f32 %v2839_v12 }
 0xaea   :  { %v2806_v47 = vpop.xlane.xlu1 %2805  ;;  %v2818_v55 = vpop.xlane.xlu0 %2817 }
 0xaeb   :  { %v2812_v52 = vpop.xlane.xlu2 %2811  ;;  %v2822_v46 = vsub.f32 %v2790_v35, %v2806_v47  ;;  %v2826_v59 = vsub.f32 %v5233_v18, %v2818_v55 }
 0xaec   :  { %v2824_v23 = vsub.f32 %v2792_v13, %v2812_v52 }
 0xaed   :  { %v5256_v58 = vpop.eup %3975  ;;  %v2833_v31 = vmul.f32 1.442695, %v2822_v46  ;;  %v2841_v43 = vmul.f32 1.442695, %v2826_v59 }
 0xaee   :  { %v5258_v11 = vpop.eup %3977  ;;  %v2849_v26 = vsel %vm1105_vm10, %v5256_v58, 0.0  ;;  %v2837_v4 = vmul.f32 1.442695, %v2824_v23 }
 0xaef   :  { %3981 = vpow2.f32 %v2833_v31  ;;  %v2843_v1 = vsel %vm1105_vm10, %v5258_v11, 0.0  ;;  %2850 = vadd.xlane.f32.xlu2 %v2849_v26  ;;  %v5264_v45 = vpop.eup %3979 }
 0xaf0   :  { %2844 = vadd.xlane.f32.xlu0 %v2843_v1  ;;  %3983 = vpow2.f32 %v2837_v4  ;;  %v2861_v48 = vsel %vm1105_vm10, %v5264_v45, 0.0 }
 0xaf2   :  { %v2800_v53 = vpop.xlane.xlu0 %2799 }
 0xaf3   :  { %v2820_v6 = vsub.f32 %v2788_v44, %v2800_v53  ;;  %v3893_v62 = vpop.permute.xlu2 %3892 }
 0xaf4   :  { %v3895_v50 = vunpack.i.h.bf16 %v3893_v62  ;;  %v3894_v8 = vunpack.i.l.bf16 %v3893_v62 }
 0xaf5   :  { %v5266_v51 = vpop.eup %3981  ;;  %v2829_v56 = vmul.f32 1.442695, %v2820_v6 }
 0xaf6   :  { %v2852_v60 = vsel %vm1105_vm10, %v5266_v51, 0.0  ;;  %v5273_v33 = vpop.eup %3983  ;;  %v2419_v17 = vrot.slane %v3895_v50, 4  ;;  %v2475_v54 = vrot.slane %v3894_v8, 4  ;;  %v2422_v18 = vsel %vm182_vm8, %v3895_v50, %v2421_v63 }
 0xaf7   :  { %3985 = vpow2.f32 %v2829_v56  ;;  %2862 = vadd.xlane.f32.xlu2 %v2861_v48  ;;  %2853 = vadd.xlane.f32.xlu1 %v2852_v60  ;;  %v2858_v16 = vsel %vm1105_vm10, %v5273_v33, 0.0  ;;  %v2478_v20 = vsel %vm182_vm8, %v3894_v8, %v2477_v34  ;;  %v2430_v44 = vperm.slane %v2422_v18, %v4222_v15 }
 0xaf8   :  { %3987 = vpow2.f32 %v2841_v43  ;;  %v2420_v14 = vsel %vm182_vm8, %v2419_v17, %v5245_v57  ;;  %v2476_v19 = vsel %vm182_vm8, %v2475_v54, %v5243_v41  ;;  %v2486_v24 = vperm.slane %v2478_v20, %v4222_v15 }
 0xaf9   :  { %v2426_v0 = vperm.slane %v2420_v14, %v4222_v15  ;;  %v2482_v57 = vperm.slane %v2476_v19, %v4222_v15  ;;  %v2457_v27 = vrot.slane %v2430_v44, 4 }
 0xafa   :  { %v2513_v12 = vrot.slane %v2486_v24, 4 }
 0xafb   :  { %v2445_v9 = vrot.slane %v2426_v0, 4  ;;  %v2501_v26 = vrot.slane %v2482_v57, 4 }
 0xafd   :  { %v5275_v22 = vpop.eup %3985 }
 0xafe   :  { %v2846_v49 = vsel %vm1105_vm10, %v5275_v22, 0.0  ;;  %v5285_v35 = vpop.eup %3987 }
 0xaff   :  { %2859 = vadd.xlane.f32.xlu2 %v2858_v16  ;;  %2847 = vadd.xlane.f32.xlu0 %v2846_v49  ;;  %v2864_v21 = vsel %vm1105_vm10, %v5285_v35, 0.0 }
 0xb02   :  { %v3888_v13 = vpop.permute.xlu1 %3887 }
 0xb03   :  { %v3890_v25 = vunpack.i.h.bf16 %v3888_v13  ;;  %v3889_v3 = vunpack.i.l.bf16 %v3888_v13 }
 0xb05   :  { %v2433_v29 = vrot.slane %v3890_v25, 4  ;;  %v2489_v36 = vrot.slane %v3889_v3, 4  ;;  %v3898_v28 = vpop.permute.xlu0 %3897 }
 0xb06   :  { %v3900_v7 = vunpack.i.h.bf16 %v3898_v28  ;;  %v3899_v32 = vunpack.i.l.bf16 %v3898_v28 }
 0xb07   :  { %2865 = vadd.xlane.f32.xlu0 %v2864_v21 }
 0xb08   :  { %v2431_v5 = vrot.slane %v3900_v7, 4  ;;  %v2434_v41 = vsel %vm182_vm8, %v3900_v7, %v2433_v29  ;;  %v2487_v39 = vrot.slane %v3899_v32, 4  ;;  %v2490_v42 = vsel %vm182_vm8, %v3899_v32, %v2489_v36 }
 0xb09   :  { %v2442_v37 = vperm.slane %v2434_v41, %v4222_v15  ;;  %v2498_v38 = vperm.slane %v2490_v42, %v4222_v15 }
 0xb0a   :  { %v2432_v47 = vsel %vm182_vm8, %v2431_v5, %v3890_v25  ;;  %v2488_v55 = vsel %vm182_vm8, %v2487_v39, %v3889_v3 }
 0xb0b   :  { %v2438_v52 = vperm.slane %v2432_v47, %v4222_v15  ;;  %v2455_v46 = vrot.slane %v2442_v37, 4  ;;  %v2458_v23 = vsel %vm182_vm8, %v2442_v37, %v2457_v27  ;;  %v2494_v31 = vperm.slane %v2488_v55, %v4222_v15 }
 0xb0c   :  { %v2466_v1 = vperm.slane %v2458_v23, %v4230_v30  ;;  %v2511_v4 = vrot.slane %v2498_v38, 4  ;;  %v2514_v53 = vsel %vm182_vm8, %v2498_v38, %v2513_v12 }
 0xb0d   :  { %v2443_v6 = vrot.slane %v2438_v52, 4  ;;  %v2446_v59 = vsel %vm182_vm8, %v2438_v52, %v2445_v9  ;;  %v2456_v56 = vsel %vm182_vm8, %v2455_v46, %v2430_v44  ;;  %v2499_v48 = vrot.slane %v2494_v31, 4 }
 0xb0e   :  { %v2454_v60 = vperm.slane %v2446_v59, %v4230_v30  ;;  %v2462_v62 = vperm.slane %v2456_v56, %v4230_v30  ;;  %v2473_v43 = vrot.slane %v2466_v1, 4  ;;  %v2502_v50 = vsel %vm182_vm8, %v2494_v31, %v2501_v26 }
 0xb0f   :  { %v2444_v8 = vsel %vm182_vm8, %v2443_v6, %v2426_v0  ;;  %v2500_v16 = vsel %vm182_vm8, %v2499_v48, %v2482_v57  ;;  %v2510_v49 = vperm.slane %v2502_v50, %v4230_v30  ;;  %v2512_v17 = vsel %vm182_vm8, %v2511_v4, %v2486_v24 }
 0xb10   :  { %v2450_v63 = vperm.slane %v2444_v8, %v4230_v30  ;;  %v2469_v34 = vrot.slane %v2454_v60, 4  ;;  %v2471_v54 = vrot.slane %v2462_v62, 4  ;;  %v2474_v18 = vsel %vm182_vm8, 0.0, %v2473_v43 }
 0xb11   :  { %v2547_v20 = vrot.slane %v2474_v18, 4  ;;  %v2506_v13 = vperm.slane %v2500_v16, %v4230_v30  ;;  %v2518_v14 = vperm.slane %v2512_v17, %v4230_v30  ;;  %v2522_v25 = vperm.slane %v2514_v53, %v4230_v30 }
 0xb12   :  { %v2470_v3 = vsel %vm182_vm8, 0.0, %v2469_v34  ;;  %v2525_v19 = vrot.slane %v2510_v49, 4  ;;  %v2467_v44 = vrot.slane %v2450_v63, 4  ;;  %v2472_v29 = vsel %vm182_vm8, 0.0, %v2471_v54 }
 0xb13   :  { %v2527_v24 = vrot.slane %v2518_v14, 4  ;;  %v2529_v36 = vrot.slane %v2522_v25, 4  ;;  %v2523_v28 = vrot.slane %v2506_v13, 4  ;;  %v2531_v0 = vsel %vm182_vm8, %v2469_v34, %v2450_v63 }
 0xb14   :  { %v2526_v7 = vsel %vm182_vm8, 0.0, %v2525_v19  ;;  %v2585_v32 = vsel %vm182_vm8, %v2525_v19, %v2506_v13  ;;  %v2468_v21 = vsel %vm182_vm8, 0.0, %v2467_v44  ;;  %v2535_v57 = vperm.slane %v2531_v0, %v4222_v15 }
 0xb15   :  { %v2530_v5 = vsel %vm182_vm8, 0.0, %v2529_v36  ;;  %v2590_v41 = vrot.slane %v2526_v7, 4  ;;  %v2596_v39 = vsel %vm182_vm8, %v2529_v36, %v2518_v14  ;;  %v2524_v42 = vsel %vm182_vm8, 0.0, %v2523_v28 }
 0xb16   :  { %v2601_v27 = vrot.slane %v2530_v5, 4  ;;  %v2528_v37 = vsel %vm182_vm8, 0.0, %v2527_v24  ;;  %v2589_v38 = vperm.slane %v2585_v32, %v4222_v15  ;;  %v2600_v9 = vperm.slane %v2596_v39, %v4222_v15 }
 0xb17   :  { %v2591_v12 = vsel %vm182_vm8, %v2590_v41, %v2524_v42  ;;  %v2536_v47 = vrot.slane %v2470_v3, 4  ;;  %v2542_v55 = vsel %vm182_vm8, %v2473_v43, %v2462_v62  ;;  %v2548_v52 = vsel %vm182_vm8, %v2547_v20, %v2472_v29 }
 0xb18   :  { %v2595_v46 = vperm.slane %v2591_v12, %v4222_v15  ;;  %v2602_v23 = vsel %vm182_vm8, %v2601_v27, %v2528_v37  ;;  %v2609_v31 = vrot.slane %v2589_v38, 4  ;;  %v2621_v26 = vrot.slane %v2600_v9, 4 }
 0xb19   :  { %v2606_v1 = vperm.slane %v2602_v23, %v4222_v15  ;;  %v2537_v4 = vsel %vm182_vm8, %v2536_v47, %v2468_v21  ;;  %v2546_v53 = vperm.slane %v2542_v55, %v4222_v15  ;;  %v2552_v6 = vperm.slane %v2548_v52, %v4222_v15 }
 0xb1a   :  { %v2610_v59 = vsel %vm182_vm8, %v2595_v46, %v2609_v31  ;;  %v2607_v56 = vrot.slane %v2595_v46, 4  ;;  %v2541_v48 = vperm.slane %v2537_v4, %v4222_v15  ;;  %v2555_v60 = vrot.slane %v2535_v57, 4 }
 0xb1b   :  { %v2618_v62 = vperm.slane %v2610_v59, %v4230_v30  ;;  %v2622_v43 = vsel %vm182_vm8, %v2606_v1, %v2621_v26  ;;  %v2619_v50 = vrot.slane %v2606_v1, 4  ;;  %v2567_v8 = vrot.slane %v2546_v53, 4 }
 0xb1c   :  { %v2630_v16 = vperm.slane %v2622_v43, %v4230_v30  ;;  %v2608_v49 = vsel %vm182_vm8, %v2607_v56, %v2589_v38  ;;  %v2556_v17 = vsel %vm182_vm8, %v2541_v48, %v2555_v60  ;;  %v2553_v63 = vrot.slane %v2541_v48, 4 }
 0xb1d   :  { %v2614_v34 = vperm.slane %v2608_v49, %v4230_v30  ;;  %v2620_v54 = vsel %vm182_vm8, %v2619_v50, %v2600_v9  ;;  %v2564_v18 = vperm.slane %v2556_v17, %v4230_v30  ;;  %v2568_v20 = vsel %vm182_vm8, %v2552_v6, %v2567_v8 }
 0xb1e   :  { %v2635_v13 = vrot.slane %v2630_v16, 4  ;;  %v2626_v14 = vperm.slane %v2620_v54, %v4230_v30  ;;  %v2576_v25 = vperm.slane %v2568_v20, %v4230_v30  ;;  %v2637_v3 = vrot.slane %v2618_v62, 4 }
 0xb1f   :  { %v2554_v19 = vsel %vm182_vm8, %v2553_v63, %v2535_v57  ;;  %v2565_v44 = vrot.slane %v2552_v6, 4  ;;  %v2633_v29 = vrot.slane %v2614_v34, 4  ;;  %v2583_v24 = vrot.slane %v2564_v18, 4 }
 0xb20   :  { %v2636_v36 = vsel %vm182_vm8, %v2635_v13, %v2618_v62  ;;  %v2631_v28 = vrot.slane %v2626_v14, 4  ;;  %v2581_v0 = vrot.slane %v2576_v25, 4  ;;  %v2638_v7 = vsel %vm182_vm8, %v2630_v16, %v2637_v3 }
 0xb21   :  { %2961 = vmatpush.msrb.mxu0 %v2636_v36  ;;  %2990 = vmatpush.msrb.mxu1 %v2638_v7  ;;  %v2560_v32 = vperm.slane %v2554_v19, %v4230_v30  ;;  %v2566_v21 = vsel %vm182_vm8, %v2565_v44, %v2546_v53  ;;  %v2634_v5 = vsel %vm182_vm8, %v2626_v14, %v2633_v29 }
 0xb22   :  { %v2632_v41 = vsel %vm182_vm8, %v2631_v28, %v2614_v34  ;;  %v2582_v57 = vsel %vm182_vm8, %v2581_v0, %v2564_v18  ;;  %v2572_v39 = vperm.slane %v2566_v21, %v4230_v30  ;;  %2932 = vmatpush.msrb.mxu3 %v2634_v5  ;;  %v2584_v42 = vsel %vm182_vm8, %v2576_v25, %v2583_v24 }
 0xb23   :  { %2903 = vmatpush.msra.mxu2 %v2632_v41  ;;  %2962 = vmatpush.msrb.mxu0 %v2582_v57  ;;  %v2579_v27 = vrot.slane %v2560_v32, 4 }
 0xb24   :  { %v2577_v37 = vrot.slane %v2572_v39, 4  ;;  %2991 = vmatpush.msrb.mxu1 %v2584_v42 }
 0xb25   :  { %v2580_v38 = vsel %vm182_vm8, %v2572_v39, %v2579_v27 }
 0xb26   :  { %v2578_v9 = vsel %vm182_vm8, %v2577_v37, %v2560_v32  ;;  %2933 = vmatpush.msrb.mxu3 %v2580_v38 }
 0xb27   :  { %2904 = vmatpush.msra.mxu2 %v2578_v9 }
 0xb59   :  { %v2857_v12 = vpop.xlane.xlu1 %2856 }
 0xb5a   :  { %3989 = vrcp.f32 %v2857_v12 }
 0xb60   :  { %v3990_v47 = vpop.eup %3989 }
 0xb61   :  { %v2879_v55 = vmul.f32 %v3990_v47, %v5252_v40 }
 0xb62   :  { %v2851_v52 = vpop.xlane.xlu2 %2850 }
 0xb63   :  { %3991 = vrcp.f32 %v2851_v52  ;;  %v2845_v46 = vpop.xlane.xlu0 %2844  ;;  %3783 = vmatmul.msk.f32.vlgmr.msrb.gmra.mxu0 %vm1105_vm10, %v2879_v55 }
 0xb64   :  { %3993 = vrcp.f32 %v2845_v46 }
 0xb69   :  { %v3992_v23 = vpop.eup %3991 }
 0xb6a   :  { %v3994_v31 = vpop.eup %3993  ;;  %v2877_v26 = vmul.f32 %v3992_v23, %v5256_v58  ;;  %v2863_v1 = vpop.xlane.xlu2 %2862 }
 0xb6b   :  { %v2875_v4 = vmul.f32 %v3994_v31, %v5258_v11  ;;  %v2854_v53 = vpop.xlane.xlu1 %2853  ;;  %3995 = vrcp.f32 %v2863_v1 }
 0xb6c   :  { %3997 = vrcp.f32 %v2854_v53  ;;  %3781 = vmatmul.msk.f32.vlgmr.msrb.gmra.mxu3 %vm1105_vm10, %v2877_v26 }
 0xb6d   :  { %3779 = vmatmul.msk.f32.vlgmr.msra.gmra.mxu2 %vm1105_vm10, %v2875_v4 }
 0xb71   :  { %v3996_v40 = vpop.eup %3995 }
 0xb72   :  { %v3998_v6 = vpop.eup %3997  ;;  %v2881_v59 = vmul.f32 %v3996_v40, %v5264_v45  ;;  %v2860_v56 = vpop.xlane.xlu2 %2859 }
 0xb73   :  { %v2848_v48 = vpop.xlane.xlu0 %2847  ;;  %3999 = vrcp.f32 %v2860_v56  ;;  %v2878_v60 = vmul.f32 %v3998_v6, %v5266_v51 }
 0xb74   :  { %4001 = vrcp.f32 %v2848_v48  ;;  %3785 = vmatmul.msk.f32.vlgmr.msrb.gmra.mxu1 %vm1105_vm10, %v2881_v59 }
 0xb75   :  { %3782 = vmatmul.msk.f32.gmra.mxu3 %vm1105_vm10, %v2878_v60 }
 0xb79   :  { %v4000_v58 = vpop.eup %3999 }
 0xb7a   :  { %v4002_v11 = vpop.eup %4001  ;;  %v2880_v43 = vmul.f32 %v4000_v58, %v5273_v33 }
 0xb7b   :  { %v2866_v62 = vpop.xlane.xlu0 %2865  ;;  %v2876_v50 = vmul.f32 %v4002_v11, %v5275_v22 }
 0xb7c   :  { %4003 = vrcp.f32 %v2866_v62  ;;  %3784 = vmatmul.msk.f32.gmra.mxu0 %vm1105_vm10, %v2880_v43 }
 0xb7d   :  { %3780 = vmatmul.msk.f32.gmra.mxu2 %vm1105_vm10, %v2876_v50 }
 0xb82   :  { %v4004_v45 = vpop.eup %4003 }
 0xb83   :  { %v2882_v51 = vmul.f32 %v4004_v45, %v5285_v35 }
 0xb85   :  { %3786 = vmatmul.msk.f32.gmra.mxu1 %vm1105_vm10, %v2882_v51 }
 0xbe0   :  { %v2964_v8 = vpop.f32.mrf.mxu0 }
 0xbe1   :  { %v2999_v16 = vrot.slane %v2964_v8, 4 }
 0xbef   :  { %v2935_v49 = vpop.f32.mrf.mxu3 }
 0xbf0   :  { %v2906_v17 = vpop.f32.mrf.mxu2  ;;  %v3013_v63 = vrot.slane %v2935_v49, 4 }
 0xbf1   :  { %v3000_v34 = vsel %vm182_vm8, %v2999_v16, %v2906_v17  ;;  %v3001_v33 = vrot.slane %v2906_v17, 4  ;;  %v2993_v54 = vpop.f32.mrf.mxu1 }
 0xbf2   :  { %v3006_v22 = vperm.slane %v3000_v34, %v4222_v15  ;;  %v3011_v18 = vrot.slane %v2993_v54, 4  ;;  %v3014_v20 = vsel %vm182_vm8, %v2993_v54, %v3013_v63 }
 0xbf3   :  { %v3002_v13 = vsel %vm182_vm8, %v2964_v8, %v3001_v33  ;;  %v3022_v35 = vperm.slane %v3014_v20, %v4222_v15 }
 0xbf4   :  { %v3010_v14 = vperm.slane %v3002_v13, %v4222_v15  ;;  %v3012_v25 = vsel %vm182_vm8, %v3011_v18, %v2935_v49  ;;  %v3025_v3 = vrot.slane %v3006_v22, 4 }
 0xbf5   :  { %v3018_v19 = vperm.slane %v3012_v25, %v4222_v15  ;;  %v3035_v44 = vrot.slane %v3022_v35, 4 }
 0xbf6   :  { %v3037_v29 = vrot.slane %v3010_v14, 4 }
 0xbf7   :  { %v3023_v24 = vrot.slane %v3018_v19, 4  ;;  %v3026_v36 = vsel %vm182_vm8, %v3018_v19, %v3025_v3  ;;  %v3036_v28 = vsel %vm182_vm8, %v3035_v44, %v3010_v14 }
 0xbf8   :  { %v3034_v0 = vperm.slane %v3026_v36, %v4230_v30  ;;  %v3038_v7 = vsel %vm182_vm8, %v3022_v35, %v3037_v29  ;;  %v3042_v32 = vperm.slane %v3036_v28, %v4230_v30  ;;  %v2938_v52 = vpop.f32.mrf.mxu3 }
 0xbf9   :  { %v3024_v21 = vsel %vm182_vm8, %v3023_v24, %v3006_v22  ;;  %v3046_v5 = vperm.slane %v3038_v7, %v4230_v30  ;;  %v2967_v38 = vpop.f32.mrf.mxu0  ;;  %v3069_v6 = vrot.slane %v2938_v52, 4 }
 0xbfa   :  { %v3030_v41 = vperm.slane %v3024_v21, %v4230_v30  ;;  %v3049_v57 = vrot.slane %v3034_v0, 4  ;;  %v3051_v39 = vrot.slane %v3042_v32, 4  ;;  %v3055_v4 = vrot.slane %v2967_v38, 4 }
 0xbfb   :  { %v3053_v42 = vrot.slane %v3046_v5, 4 }
 0xbfc   :  { %v3047_v27 = vrot.slane %v3030_v41, 4  ;;  %v3050_v37 = vsel %vm182_vm8, 0.0, %v3049_v57  ;;  %v3111_v9 = vsel %vm182_vm8, %v3049_v57, %v3030_v41  ;;  %v3052_v1 = vsel %vm182_vm8, 0.0, %v3051_v39 }
 0xbfd   :  { %v3054_v12 = vsel %vm182_vm8, 0.0, %v3053_v42  ;;  %v3116_v47 = vrot.slane %v3050_v37, 4  ;;  %v3122_v55 = vsel %vm182_vm8, %v3053_v42, %v3042_v32  ;;  %v3115_v46 = vperm.slane %v3111_v9, %v4222_v15 }
 0xbfe   :  { %v3127_v23 = vrot.slane %v3054_v12, 4  ;;  %v3048_v31 = vsel %vm182_vm8, 0.0, %v3047_v27  ;;  %v3126_v26 = vperm.slane %v3122_v55, %v4222_v15 }
 0xbff   :  { %v3117_v53 = vsel %vm182_vm8, %v3116_v47, %v3048_v31  ;;  %v3135_v40 = vrot.slane %v3115_v46, 4 }
 0xc00   :  { %v2909_v59 = vpop.f32.mrf.mxu2  ;;  %v3121_v56 = vperm.slane %v3117_v53, %v4222_v15  ;;  %v3128_v48 = vsel %vm182_vm8, %v3127_v23, %v3052_v1  ;;  %v3147_v60 = vrot.slane %v3126_v26, 4 }
 0xc01   :  { %v3056_v58 = vsel %vm182_vm8, %v3055_v4, %v2909_v59  ;;  %v3057_v11 = vrot.slane %v2909_v59, 4  ;;  %v3132_v43 = vperm.slane %v3128_v48, %v4222_v15 }
 0xc02   :  { %v2996_v62 = vpop.f32.mrf.mxu1  ;;  %v3062_v50 = vperm.slane %v3056_v58, %v4222_v15  ;;  %v3136_v8 = vsel %vm182_vm8, %v3121_v56, %v3135_v40  ;;  %v3133_v35 = vrot.slane %v3121_v56, 4 }
 0xc03   :  { %v3067_v45 = vrot.slane %v2996_v62, 4  ;;  %v3070_v51 = vsel %vm182_vm8, %v2996_v62, %v3069_v6  ;;  %v3058_v16 = vsel %vm182_vm8, %v2967_v38, %v3057_v11  ;;  %v3144_v17 = vperm.slane %v3136_v8, %v4230_v30 }
 0xc04   :  { %v3078_v49 = vperm.slane %v3070_v51, %v4222_v15  ;;  %v3148_v63 = vsel %vm182_vm8, %v3132_v43, %v3147_v60  ;;  %v3066_v34 = vperm.slane %v3058_v16, %v4222_v15  ;;  %v3081_v33 = vrot.slane %v3062_v50, 4 }
 0xc05   :  { %v3068_v54 = vsel %vm182_vm8, %v3067_v45, %v2938_v52  ;;  %v3156_v22 = vperm.slane %v3148_v63, %v4230_v30  ;;  %v3163_v13 = vrot.slane %v3144_v17, 4  ;;  %v3145_v3 = vrot.slane %v3132_v43, 4 }
 0xc06   :  { %v3074_v18 = vperm.slane %v3068_v54, %v4222_v15  ;;  %v3091_v20 = vrot.slane %v3078_v49, 4  ;;  %v3093_v14 = vrot.slane %v3066_v34, 4  ;;  %v3134_v5 = vsel %vm182_vm8, %v3133_v35, %v3115_v46 }
 0xc07   :  { %v3161_v25 = vrot.slane %v3156_v22, 4  ;;  %v3164_v24 = vsel %vm182_vm8, %v3156_v22, %v3163_v13  ;;  %v3146_v41 = vsel %vm182_vm8, %v3145_v3, %v3126_v26  ;;  %v3140_v27 = vperm.slane %v3134_v5, %v4230_v30  ;;  %v3787_v3 = vld [vmem:[%s5763_s6 + $0x20] sm:$0xff] }
 0xc08   :  { %v3079_v19 = vrot.slane %v3074_v18, 4  ;;  %v3082_v44 = vsel %vm182_vm8, %v3074_v18, %v3081_v33  ;;  %v3092_v29 = vsel %vm182_vm8, %v3091_v20, %v3066_v34  ;;  %v3094_v28 = vsel %vm182_vm8, %v3078_v49, %v3093_v14  ;;  %3237 = vrot.lane.b32.xlu0 %v3164_v24, %s4027_s0  ;;  %v3789_v14 = vld [vmem:[%s5763_s6 + $0x30] sm:$0xff] }
 0xc09   :  { %v3090_v36 = vperm.slane %v3082_v44, %v4230_v30  ;;  %v3098_v0 = vperm.slane %v3092_v29, %v4230_v30  ;;  %v3162_v7 = vsel %vm182_vm8, %v3161_v25, %v3144_v17  ;;  %v3102_v21 = vperm.slane %v3094_v28, %v4230_v30  ;;  %v3788_v25 = vld [vmem:[%s5763_s6 + $0x28] sm:$0xff] }
 0xc0a   :  { %v3080_v32 = vsel %vm182_vm8, %v3079_v19, %v3062_v50  ;;  %3229 = vrot.lane.b32.xlu2 %v3162_v7, %s5784_s5  ;;  %v3152_v38 = vperm.slane %v3146_v41, %v4230_v30  ;;  %v3159_v55 = vrot.slane %v3140_v27, 4 }
 0xc0b   :  { %v3086_v57 = vperm.slane %v3080_v32, %v4230_v30  ;;  %v3105_v39 = vrot.slane %v3090_v36, 4  ;;  %v3107_v42 = vrot.slane %v3098_v0, 4  ;;  %v3109_v37 = vrot.slane %v3102_v21, 4 }
 0xc0c   :  { %v3157_v31 = vrot.slane %v3152_v38, 4  ;;  %v3160_v1 = vsel %vm182_vm8, %v3152_v38, %v3159_v55 }
 0xc0d   :  { %v3103_v9 = vrot.slane %v3086_v57, 4  ;;  %v3106_v12 = vsel %vm182_vm8, 0.0, %v3105_v39  ;;  %v3108_v47 = vsel %vm182_vm8, 0.0, %v3107_v42  ;;  %v3110_v52 = vsel %vm182_vm8, 0.0, %v3109_v37  ;;  %3221 = vrot.lane.b32.xlu1 %v3160_v1, %s5785_s18 }
 0xc0e   :  { %v3170_v46 = vrot.slane %v3106_v12, 4  ;;  %v3176_v23 = vsel %vm182_vm8, %v3109_v37, %v3098_v0  ;;  %v3181_v26 = vrot.slane %v3110_v52, 4  ;;  %v3165_v53 = vsel %vm182_vm8, %v3105_v39, %v3086_v57  ;;  %v3916_v57 = vld [vmem:[%s5762_s7 + $0x1] ss:$0 sm:$0xff] }
 0xc0f   :  { %v3104_v4 = vsel %vm182_vm8, 0.0, %v3103_v9  ;;  %v3169_v40 = vperm.slane %v3165_v53, %v4222_v15  ;;  %v3180_v59 = vperm.slane %v3176_v23, %v4222_v15  ;;  %v3158_v56 = vsel %vm182_vm8, %v3157_v31, %v3140_v27  ;;  %v3799_v53 = vld [vmem:[%s5767_s10 + $0x38] sm:$0xff] }
 0xc10   :  { %v3171_v6 = vsel %vm182_vm8, %v3170_v46, %v3104_v4  ;;  %v3182_v60 = vsel %vm182_vm8, %v3181_v26, %v3108_v47  ;;  %3376 = vmatpush.msra.mxu3 %v3799_v53 }
 0xc11   :  { %v3175_v48 = vperm.slane %v3171_v6, %v4222_v15  ;;  %v3186_v58 = vperm.slane %v3182_v60, %v4222_v15  ;;  %v3189_v11 = vrot.slane %v3169_v40, 4  ;;  %v3201_v62 = vrot.slane %v3180_v59, 4  ;;  %v3797_v6 = vld [vmem:[%s5767_s10 + $0x28] sm:$0xff] }
 0xc13   :  { %v3187_v43 = vrot.slane %v3175_v48, 4  ;;  %v3190_v50 = vsel %vm182_vm8, %v3175_v48, %v3189_v11  ;;  %v3202_v45 = vsel %vm182_vm8, %v3186_v58, %v3201_v62  ;;  %v3199_v51 = vrot.slane %v3186_v58, 4  ;;  %v3818_v58 = vld [vmem:[%s5768_s12 + $0xf8] sm:$0xff]  ;;  %v3817_v11 = vld [vmem:[%s5768_s12 + $0xf0] sm:$0xff]  ;;  %v3816_v62 = vld [vmem:[%s5768_s12 + $0xe8] sm:$0xff] }
 0xc14   :  { %v3198_v8 = vperm.slane %v3190_v50, %v4230_v30  ;;  %v3210_v16 = vperm.slane %v3202_v45, %v4230_v30  ;;  %3427 = vmatpush.msra.mxu0 %v3818_v58 }
 0xc15   :  { %v3188_v49 = vsel %vm182_vm8, %v3187_v43, %v3169_v40  ;;  %v3200_v63 = vsel %vm182_vm8, %v3199_v51, %v3180_v59  ;;  %v3798_v40 = vld [vmem:[%s5767_s10 + $0x30] sm:$0xff]  ;;  %v3796_v59 = vld [vmem:[%s5767_s10 + $0x20] sm:$0xff] }
 0xc16   :  { %v3194_v17 = vperm.slane %v3188_v49, %v4230_v30  ;;  %v3217_v34 = vrot.slane %v3198_v8, 4  ;;  %v3215_v15 = vrot.slane %v3210_v16, 4  ;;  %v3206_v33 = vperm.slane %v3200_v63, %v4230_v30  ;;  %v3790_v30 = vld [vmem:[%s5763_s6 + $0x38] sm:$0xff]  ;;  %3377 = vmatpush.msra.mxu3 %v3798_v40  ;;  %3428 = vmatpush.msra.mxu0 %v3817_v11 }
 0xc17   :  { %3277 = vmatpush.msrb.mxu2 %v3790_v30 }
 0xc18   :  { %v3213_v54 = vrot.slane %v3194_v17, 4  ;;  %v3218_v22 = vsel %vm182_vm8, %v3210_v16, %v3217_v34  ;;  %v3216_v18 = vsel %vm182_vm8, %v3215_v15, %v3198_v8  ;;  %v3211_v20 = vrot.slane %v3206_v33, 4  ;;  %3378 = vmatpush.msra.mxu3 %v3797_v6  ;;  %v3815_v8 = vld [vmem:[%s5768_s12 + $0xe0] sm:$0xff]  ;;  %3429 = vmatpush.msra.mxu0 %v3816_v62 }
 0xc19   :  { %3239 = vrot.lane.b32.xlu2 %v3218_v22, %s4027_s0  ;;  %3231 = vrot.lane.b32.xlu0 %v3216_v18, %s5784_s5  ;;  %v3917_v15 = vld [vmem:[%s5764_s8 + $0x1] ss:$0 sm:$0xff] }
 0xc1a   :  { %v3214_v13 = vsel %vm182_vm8, %v3206_v33, %v3213_v54  ;;  %v3212_v35 = vsel %vm182_vm8, %v3211_v20, %v3194_v17  ;;  %3278 = vmatpush.msrb.mxu2 %v3789_v14  ;;  %3379 = vmatpush.msra.mxu3 %v3796_v59  ;;  %v3918_v20 = vld [vmem:[%s5765_s9 + $0x1] ss:$0 sm:$0xff] }
 0xc1b   :  { %3223 = vrot.lane.b32.xlu1 %v3214_v13, %s5785_s18  ;;  %3430 = vmatpush.msra.mxu0 %v3815_v8 }
 0xc1c   :  { %3279 = vmatpush.msrb.mxu2 %v3788_v25 }
 0xc1e   :  { %3280 = vmatpush.msrb.mxu2 %v3787_v3 }
 0xc64   :  { %v3230_v44 = vpop.permute.xlu2 %3229 }
 0xc73   :  { %v3240_v21 = vpop.permute.xlu2 %3239 }
 0xc7a   :  { %v3238_v24 = vpop.permute.xlu0 %3237 }
 0xc7f   :  { %v3222_v19 = vpop.permute.xlu1 %3221 }
 0xc80   :  { %v3243_v29 = vsel %vm948_vm9, %v3158_v56, %v3222_v19 }
 0xc81   :  { %v3245_v36 = vsel %vm1105_vm10, %v3243_v29, %v3230_v44 }
 0xc82   :  { %v3247_v28 = vsel %vm1558_vm11, %v3245_v36, %v3238_v24  ;;  %v3814_v36 = vld [vmem:[%s5768_s12 + $0xd8] sm:$0xff] }
 0xc83   :  { %3792 = vmatmul.msk.f32.vlgmr.msrb.gmra.mxu2 %vm62_vm0, %v3247_v28  ;;  %3431 = vmatpush.msra.mxu0 %v3814_v36  ;;  %v3813_v28 = vld [vmem:[%s5768_s12 + $0xd0] sm:$0xff] }
 0xc85   :  { %3432 = vmatpush.msra.mxu0 %v3813_v28 }
 0xc8b   :  { %v3232_v7 = vpop.permute.xlu0 %3231 }
 0xc8d   :  { %v3224_v0 = vpop.permute.xlu1 %3223 }
 0xc8e   :  { %v3244_v32 = vsel %vm948_vm9, %v3212_v35, %v3224_v0  ;;  %v3812_v0 = vld [vmem:[%s5768_s12 + $0xc8] sm:$0xff] }
 0xc8f   :  { %v3246_v5 = vsel %vm1105_vm10, %v3244_v32, %v3232_v7  ;;  %v3811_v7 = vld [vmem:[%s5768_s12 + $0xc0] sm:$0xff]  ;;  %3433 = vmatpush.msra.mxu0 %v3812_v0  ;;  %v3810_v32 = vld [vmem:[%s5768_s12 + $0xb8] sm:$0xff] }
 0xc90   :  { %v3248_v41 = vsel %vm1558_vm11, %v3246_v5, %v3240_v21  ;;  %v3809_v21 = vld [vmem:[%s5768_s12 + $0xb0] sm:$0xff]  ;;  %v3808_v5 = vld [vmem:[%s5768_s12 + $0xa8] sm:$0xff]  ;;  %v3516_v0 = vld [vmem:[%s5771_s16 + $0x40] sm:$0xff] }
 0xc91   :  { %3793 = vmatmul.msk.f32.gmra.mxu2 %vm62_vm0, %v3248_v41  ;;  %3434 = vmatpush.msra.mxu0 %v3811_v7  ;;  %v3807_v41 = vld [vmem:[%s5768_s12 + $0xa0] sm:$0xff] }
 0xc93   :  { %3435 = vmatpush.msra.mxu0 %v3810_v32  ;;  %v3532_v32 = vld [vmem:[%s5771_s16 + $0xc0] sm:$0xff] }
 0xc95   :  { %3436 = vmatpush.msra.mxu0 %v3809_v21 }
 0xc97   :  { %3437 = vmatpush.msra.mxu0 %v3808_v5  ;;  %v3515_v5 = vld [vmem:[%s5771_s16 + $0x38] sm:$0xff] }
 0xc99   :  { %3438 = vmatpush.msra.mxu0 %v3807_v41 }
 0xd06   :  { %v3282_v39 = vpop.f32.mrf.mxu2 }
 0xd07   :  { %v3283_v42 = vadd.f32 %v3916_v57, %v3282_v39  ;;  %v3805_v39 = vld [vmem:[%s5768_s12 + $0x90] sm:$0xff] }
 0xd09   :  { %v5495_v27 = vadd.f32 %v3283_v42, %v4861_v2  ;;  %v3804_v42 = vld [vmem:[%s5768_s12 + $0x88] sm:$0xff] }
 0xd0b   :  { %v3294_v37 = vsel %vm62_vm0, %v5495_v27, 0.0 }
 0xd0c   :  { %3295 = vadd.xlane.f32.xlu1 %v3294_v37  ;;  %v3803_v37 = vld [vmem:[%s5768_s12 + $0x80] sm:$0xff] }
 0xd14   :  { %v3285_v38 = vpop.f32.mrf.mxu2 }
 0xd15   :  { %v3286_v9 = vadd.f32 %v3916_v57, %v3285_v38  ;;  %v3806_v57 = vld [vmem:[%s5768_s12 + $0x98] sm:$0xff]  ;;  %v3919_v38 = vld [vmem:[%s5766_s11 + $0x1] ss:$0 sm:$0xff] }
 0xd16   :  { %3439 = vmatpush.msra.mxu0 %v3806_v57  ;;  %v3531_v57 = vld [vmem:[%s5771_s16 + $0xb8] sm:$0xff] }
 0xd17   :  { %v5500_v12 = vadd.f32 %v3286_v9, %v4866_v61 }
 0xd18   :  { %3440 = vmatpush.msra.mxu0 %v3805_v39  ;;  %v3514_v39 = vld [vmem:[%s5771_s16 + $0x30] sm:$0xff] }
 0xd19   :  { %v3297_v47 = vsel %vm62_vm0, %v5500_v12, 0.0 }
 0xd1a   :  { %3298 = vadd.xlane.f32.xlu0 %v3297_v47  ;;  %3441 = vmatpush.msra.mxu0 %v3804_v42  ;;  %v3530_v42 = vld [vmem:[%s5771_s16 + $0xb0] sm:$0xff] }
 0xd1c   :  { %3442 = vmatpush.msra.mxu0 %v3803_v37  ;;  %v3513_v37 = vld [vmem:[%s5771_s16 + $0x28] sm:$0xff] }
 0xd7f   :  { %v3296_v55 = vpop.xlane.xlu1 %3295 }
 0xd80   :  { %v3300_v52 = vmul.f32 %v3296_v55, %v4128_v10 }
 0xd82   :  { %v3302_v46 = vsub.f32 %v5495_v27, %v3300_v52 }
 0xd84   :  { %v3304_v2 = vmul.f32 %v3302_v46, %v3302_v46 }
 0xd86   :  { %v3306_v23 = vsel %vm62_vm0, %v3304_v2, 0.0 }
 0xd87   :  { %3307 = vadd.xlane.f32.xlu2 %v3306_v23 }
 0xd8d   :  { %v3299_v31 = vpop.xlane.xlu0 %3298 }
 0xd8e   :  { %v3301_v26 = vmul.f32 %v3299_v31, %v4128_v10 }
 0xd90   :  { %v3303_v1 = vsub.f32 %v5500_v12, %v3301_v26 }
 0xd92   :  { %v3305_v61 = vmul.f32 %v3303_v1, %v3303_v1 }
 0xd94   :  { %v3309_v4 = vsel %vm62_vm0, %v3305_v61, 0.0 }
 0xd95   :  { %3310 = vadd.xlane.f32.xlu1 %v3309_v4 }
 0xdfa   :  { %v3308_v56 = vpop.xlane.xlu2 %3307 }
 0xdfb   :  { %v3312_v48 = vmul.f32 %v3308_v56, %v4128_v10 }
 0xdfd   :  { %v3314_v60 = vadd.f32 1e-05, %v3312_v48 }
 0xdff   :  { %4005 = vrsqrt.f32 %v3314_v60  ;;  %vm3322_vm9 = vweird.f32 %v3314_v60 }
 0xe05   :  { %v4006_v43 = vpop.eup %4005 }
 0xe06   :  { %v3317_v45 = vmul.f32 %v4006_v43, %v3314_v60  ;;  %vm3323_vm8 = vweird.f32 %v4006_v43 }
 0xe07   :  { %vm3324_vm10 = vmor %vm3322_vm9, %vm3323_vm8 }
 0xe08   :  { %v3311_v50 = vpop.xlane.xlu1 %3310  ;;  %v3318_v16 = vmul.f32 %v4006_v43, %v3317_v45 }
 0xe09   :  { %v3313_v51 = vmul.f32 %v3311_v50, %v4128_v10 }
 0xe0a   :  { %v3319_v17 = vmul.f32 0.5, %v3318_v16 }
 0xe0b   :  { %v3315_v49 = vadd.f32 1e-05, %v3313_v51 }
 0xe0c   :  { %v3320_v63 = vsub.f32 1.5, %v3319_v17 }
 0xe0d   :  { %4007 = vrsqrt.f32 %v3315_v49  ;;  %vm3332_vm13 = vweird.f32 %v3315_v49 }
 0xe0e   :  { %v3321_v34 = vmul.f32 %v4006_v43, %v3320_v63 }
 0xe10   :  { %v3325_v54 = vsel %vm3324_vm10, %v4006_v43, %v3321_v34  ;;  %v3920_v43 = vld [vmem:[%s5769_s13 + $0x1] ss:$0 sm:$0xff]  ;;  %v3523_v34 = vld [vmem:[%s5771_s16 + $0x78] sm:$0xff] }
 0xe11   :  { %v3336_v22 = vmul.f32 %v3325_v54, %v3302_v46  ;;  %3820 = vmatpush.xpose.msk.msra.mxu1 %vm62_vm0, %v3523_v34  ;;  %v3537_v54 = vld [vmem:[%s5771_s16 + $0xe8] sm:$0xff] }
 0xe13   :  { %v4008_v33 = vpop.eup %4007  ;;  %v3341_v13 = vmul.f32 %v3917_v15, %v3336_v22  ;;  %v3520_v22 = vld [vmem:[%s5771_s16 + $0x60] sm:$0xff] }
 0xe14   :  { %v3327_v18 = vmul.f32 %v4008_v33, %v3315_v49  ;;  %vm3333_vm11 = vweird.f32 %v4008_v33 }
 0xe15   :  { %v3346_v14 = vadd.f32 %v3918_v20, %v3341_v13  ;;  %vm3334_vm14 = vmor %vm3332_vm13, %vm3333_vm11 }
 0xe16   :  { %v3328_v35 = vmul.f32 %v4008_v33, %v3327_v18  ;;  %v3536_v18 = vld [vmem:[%s5771_s16 + $0xe0] sm:$0xff] }
 0xe17   :  { %3801 = vmatmul.msk.f32.vlgmr.msra.gmra.mxu3 %vm62_vm0, %v3346_v14 }
 0xe18   :  { %v3329_v30 = vmul.f32 0.5, %v3328_v35  ;;  %v3519_v35 = vld [vmem:[%s5771_s16 + $0x58] sm:$0xff] }
 0xe1a   :  { %v3330_v25 = vsub.f32 1.5, %v3329_v30  ;;  %v3535_v30 = vld [vmem:[%s5771_s16 + $0xd8] sm:$0xff] }
 0xe1c   :  { %v3331_v3 = vmul.f32 %v4008_v33, %v3330_v25 }
 0xe1e   :  { %v3335_v19 = vsel %vm3334_vm14, %v4008_v33, %v3331_v3  ;;  %v3521_v33 = vld [vmem:[%s5771_s16 + $0x68] sm:$0xff]  ;;  %v3518_v3 = vld [vmem:[%s5771_s16 + $0x50] sm:$0xff] }
 0xe1f   :  { %v3337_v44 = vmul.f32 %v3335_v19, %v3303_v1  ;;  %v3534_v19 = vld [vmem:[%s5771_s16 + $0xd0] sm:$0xff] }
 0xe21   :  { %v3342_v29 = vmul.f32 %v3917_v15, %v3337_v44  ;;  %v3539_v15 = vld [vmem:[%s5771_s16 + $0xf8] sm:$0xff] }
 0xe22   :  { %3838 = vmatpush.xpose.msk.msra.mxu2 %vm62_vm0, %v3539_v15 }
 0xe23   :  { %v3347_v24 = vadd.f32 %v3918_v20, %v3342_v29  ;;  %v3517_v29 = vld [vmem:[%s5771_s16 + $0x48] sm:$0xff] }
 0xe25   :  { %3802 = vmatmul.msk.f32.gmra.mxu3 %vm62_vm0, %v3347_v24  ;;  %v3533_v24 = vld [vmem:[%s5771_s16 + $0xc8] sm:$0xff] }
 0xe9a   :  { %v3381_v9 = vpop.f32.mrf.mxu3 }
 0xe9b   :  { %v3382_v47 = vadd.f32 %v3919_v38, %v3381_v9  ;;  %v3512_v9 = vld [vmem:[%s5771_s16 + $0x20] sm:$0xff] }
 0xe9d   :  { %v3389_v55 = vmul.f32 0.044715, %v3382_v47  ;;  %v3387_v40 = vmul.f32 0.5, %v3382_v47 }
 0xe9f   :  { %v3391_v52 = vmul.f32 %v3389_v55, %v3382_v47  ;;  %v3511_v55 = vld [vmem:[%s5771_s16 + $0x18] sm:$0xff] }
 0xea1   :  { %v3393_v46 = vmul.f32 %v3391_v52, %v3382_v47  ;;  %v3527_v52 = vld [vmem:[%s5771_s16 + $0x98] sm:$0xff] }
 0xea3   :  { %v3395_v2 = vadd.f32 %v3393_v46, %v3382_v47  ;;  %v3528_v47 = vld [vmem:[%s5771_s16 + $0xa0] sm:$0xff]  ;;  %v3510_v46 = vld [vmem:[%s5771_s16 + $0x10] sm:$0xff] }
 0xea5   :  { %v3397_v31 = vmul.f32 0.7978846, %v3395_v2  ;;  %v3526_v2 = vld [vmem:[%s5771_s16 + $0x90] sm:$0xff] }
 0xea7   :  { %4009 = vtanh.f32 %v3397_v31  ;;  %v3525_v31 = vld [vmem:[%s5771_s16 + $0x88] sm:$0xff] }
 0xea8   :  { %v3384_v23 = vpop.f32.mrf.mxu3 }
 0xea9   :  { %v3385_v26 = vadd.f32 %v3919_v38, %v3384_v23  ;;  %v3529_v38 = vld [vmem:[%s5771_s16 + $0xa8] sm:$0xff] }
 0xeaa   :  { %v3509_v23 = vld [vmem:[%s5771_s16 + $0x8] sm:$0xff] }
 0xeab   :  { %v3390_v1 = vmul.f32 0.044715, %v3385_v26  ;;  %v3388_v58 = vmul.f32 0.5, %v3385_v26 }
 0xead   :  { %v3392_v61 = vmul.f32 %v3390_v1, %v3385_v26  ;;  %v4010_v53 = vpop.eup %4009  ;;  %v3524_v1 = vld [vmem:[%s5771_s16 + $0x80] sm:$0xff] }
 0xeae   :  { %v3401_v6 = vadd.f32 1.0, %v4010_v53 }
 0xeaf   :  { %v3394_v4 = vmul.f32 %v3392_v61, %v3385_v26 }
 0xeb0   :  { %v3403_v56 = vmul.f32 %v3401_v6, %v3387_v40 }
 0xeb1   :  { %v3396_v59 = vadd.f32 %v3394_v4, %v3385_v26  ;;  %v3508_v26 = vld [vmem:[%s5771_s16] sm:$0xff] }
 0xeb2   :  { %3443 = vmatmul.f32.vlgmr.msra.gmra.mxu0 %v3403_v56 }
 0xeb3   :  { %v3398_v48 = vmul.f32 0.7978846, %v3396_v59 }
 0xeb5   :  { %4011 = vtanh.f32 %v3398_v48 }
 0xebb   :  { %v4012_v60 = vpop.eup %4011 }
 0xebc   :  { %v3402_v11 = vadd.f32 1.0, %v4012_v60 }
 0xebe   :  { %v3404_v62 = vmul.f32 %v3402_v11, %v3388_v58 }
 0xec0   :  { %3446 = vmatmul.f32.gmra.mxu0 %v3404_v62 }
 0xf2f   :  { %v3444_v50 = vpop.f32.mrf.mxu0 }
 0xf30   :  { %v3445_v45 = vadd.f32 %v3920_v43, %v3444_v50 }
 0xf32   :  { %v3450_v51 = vadd.f32 %v3445_v45, %v5495_v27  ;;  %v3522_v27 = vld [vmem:[%s5771_s16 + $0x70] sm:$0xff] }
 0xf33   :  { %3821 = vmatpush.xpose.msk.msra.mxu1 %vm62_vm0, %v3522_v27 }
 0xf34   :  { %v3454_v8 = vsel %vm62_vm0, %v3450_v51, 0.0 }
 0xf35   :  { %3455 = vadd.xlane.f32.xlu0 %v3454_v8 }
 0xf37   :  { %3822 = vmatpush.xpose.msk.msra.mxu1 %vm62_vm0, %v3521_v33 }
 0xf3b   :  { %3823 = vmatpush.xpose.msk.msra.mxu1 %vm62_vm0, %v3520_v22 }
 0xf3d   :  { %v3447_v16 = vpop.f32.mrf.mxu0 }
 0xf3e   :  { %v3448_v49 = vadd.f32 %v3920_v43, %v3447_v16  ;;  %v3921_v43 = vld [vmem:[%s5770_s14] ss:$0 sm:$0xff] }
 0xf3f   :  { %3824 = vmatpush.xpose.msk.msra.mxu1 %vm62_vm0, %v3519_v35 }
 0xf40   :  { %v3451_v17 = vadd.f32 %v3448_v49, %v5500_v12  ;;  %v3538_v12 = vld [vmem:[%s5771_s16 + $0xf0] sm:$0xff] }
 0xf41   :  { %3839 = vmatpush.xpose.msk.msra.mxu2 %vm62_vm0, %v3538_v12 }
 0xf42   :  { %v3457_v63 = vsel %vm62_vm0, %v3451_v17, 0.0 }
 0xf43   :  { %3458 = vadd.xlane.f32.xlu2 %v3457_v63  ;;  %3825 = vmatpush.xpose.msk.msra.mxu1 %vm62_vm0, %v3518_v3 }
 0xf45   :  { %3840 = vmatpush.xpose.msk.msra.mxu2 %vm62_vm0, %v3537_v54 }
 0xf47   :  { %3826 = vmatpush.xpose.msk.msra.mxu1 %vm62_vm0, %v3517_v29 }
 0xf49   :  { %3841 = vmatpush.xpose.msk.msra.mxu2 %vm62_vm0, %v3536_v18 }
 0xf4b   :  { %3827 = vmatpush.xpose.msk.msra.mxu1 %vm62_vm0, %v3516_v0 }
 0xf4d   :  { %3842 = vmatpush.xpose.msk.msra.mxu2 %vm62_vm0, %v3535_v30 }
 0xf4f   :  { %3828 = vmatpush.xpose.msk.msra.mxu1 %vm62_vm0, %v3515_v5 }
 0xf51   :  { %3843 = vmatpush.xpose.msk.msra.mxu2 %vm62_vm0, %v3534_v19 }
 0xf53   :  { %3829 = vmatpush.xpose.msk.msra.mxu1 %vm62_vm0, %v3514_v39 }
 0xf55   :  { %3844 = vmatpush.xpose.msk.msra.mxu2 %vm62_vm0, %v3533_v24 }
 0xf57   :  { %3830 = vmatpush.xpose.msk.msra.mxu1 %vm62_vm0, %v3513_v37 }
 0xf59   :  { %3845 = vmatpush.xpose.msk.msra.mxu2 %vm62_vm0, %v3532_v32 }
 0xf5b   :  { %3831 = vmatpush.xpose.msk.msra.mxu1 %vm62_vm0, %v3512_v9 }
 0xf5d   :  { %3846 = vmatpush.xpose.msk.msra.mxu2 %vm62_vm0, %v3531_v57 }
 0xf5f   :  { %3832 = vmatpush.xpose.msk.msra.mxu1 %vm62_vm0, %v3511_v55 }
 0xf61   :  { %3847 = vmatpush.xpose.msk.msra.mxu2 %vm62_vm0, %v3530_v42 }
 0xf63   :  { %3833 = vmatpush.xpose.msk.msra.mxu1 %vm62_vm0, %v3510_v46 }
 0xf65   :  { %3848 = vmatpush.xpose.msk.msra.mxu2 %vm62_vm0, %v3529_v38 }
 0xf67   :  { %3834 = vmatpush.xpose.msk.msra.mxu1 %vm62_vm0, %v3509_v23 }
 0xf69   :  { %3849 = vmatpush.xpose.msk.msra.mxu2 %vm62_vm0, %v3528_v47 }
 0xf6b   :  { %3835 = vmatpush.xpose.msk.msra.mxu1 %vm62_vm0, %v3508_v26 }
 0xf6d   :  { %3850 = vmatpush.xpose.msk.msra.mxu2 %vm62_vm0, %v3527_v52 }
 0xf71   :  { %3851 = vmatpush.xpose.msk.msra.mxu2 %vm62_vm0, %v3526_v2 }
 0xf75   :  { %3852 = vmatpush.xpose.msk.msra.mxu2 %vm62_vm0, %v3525_v31 }
 0xf79   :  { %3853 = vmatpush.xpose.msk.msra.mxu2 %vm62_vm0, %v3524_v1 }
 0xfa8   :  { %v3456_v20 = vpop.xlane.xlu0 %3455 }
 0xfa9   :  { %v3460_v13 = vmul.f32 %v3456_v20, %v4128_v10 }
 0xfab   :  { %v5629_v14 = vsub.f32 %v3450_v51, %v3460_v13 }
 0xfad   :  { %v3464_v25 = vmul.f32 %v5629_v14, %v5629_v14 }
 0xfaf   :  { %v3466_v44 = vsel %vm62_vm0, %v3464_v25, 0.0 }
 0xfb0   :  { %3467 = vadd.xlane.f32.xlu1 %v3466_v44 }
 0xfb6   :  { %v3459_v36 = vpop.xlane.xlu2 %3458 }
 0xfb7   :  { %v3461_v28 = vmul.f32 %v3459_v36, %v4128_v10 }
 0xfb9   :  { %v5656_v7 = vsub.f32 %v3451_v17, %v3461_v28 }
 0xfbb   :  { %v3465_v21 = vmul.f32 %v5656_v7, %v5656_v7 }
 0xfbd   :  { %v3469_v41 = vsel %vm62_vm0, %v3465_v21, 0.0 }
 0xfbe   :  { %3470 = vadd.xlane.f32.xlu0 %v3469_v41 }
0x1023   :  { %v3468_v61 = vpop.xlane.xlu1 %3467 }
0x1024   :  { %v3472_v4 = vmul.f32 %v3468_v61, %v4128_v10 }
0x1026   :  { %v3474_v53 = vadd.f32 1e-05, %v3472_v4 }
0x1028   :  { %4013 = vrsqrt.f32 %v3474_v53  ;;  %vm3482_vm1 = vweird.f32 %v3474_v53 }
0x102e   :  { %v4014_v40 = vpop.eup %4013 }
0x102f   :  { %v3477_v59 = vmul.f32 %v4014_v40, %v3474_v53  ;;  %vm3483_vm15 = vweird.f32 %v4014_v40 }
0x1030   :  { %vm3484_vm2 = vmor %vm3482_vm1, %vm3483_vm15 }
0x1031   :  { %v3471_v6 = vpop.xlane.xlu0 %3470  ;;  %v3478_v48 = vmul.f32 %v4014_v40, %v3477_v59 }
0x1032   :  { %v3473_v56 = vmul.f32 %v3471_v6, %v4128_v10  ;;  %v3922_v10 = vld [vmem:[%s5772_s15] ss:$0 sm:$0xff] }
0x1033   :  { %v3479_v58 = vmul.f32 0.5, %v3478_v48 }
0x1034   :  { %v3475_v60 = vadd.f32 1e-05, %v3473_v56 }
0x1035   :  { %v3480_v11 = vsub.f32 1.5, %v3479_v58 }
0x1036   :  { %4015 = vrsqrt.f32 %v3475_v60  ;;  %vm3492_vm4 = vweird.f32 %v3475_v60 }
0x1037   :  { %v3481_v62 = vmul.f32 %v4014_v40, %v3480_v11 }
0x1039   :  { %v3485_v45 = vsel %vm3484_vm2, %v4014_v40, %v3481_v62 }
0x103a   :  { %v3496_v51 = vmul.f32 %v3485_v45, %v5629_v14 }
0x103c   :  { %v4016_v50 = vpop.eup %4015  ;;  %v3501_v16 = vmul.f32 %v3921_v43, %v3496_v51 }
0x103d   :  { %v3487_v8 = vmul.f32 %v4016_v50, %v3475_v60  ;;  %vm3493_vm3 = vweird.f32 %v4016_v50 }
0x103e   :  { %v3506_v63 = vadd.f32 %v3922_v10, %v3501_v16  ;;  %vm3494_vm5 = vmor %vm3492_vm4, %vm3493_vm3 }
0x103f   :  { %v3488_v49 = vmul.f32 %v4016_v50, %v3487_v8 }
0x1040   :  { %3836 = vmatmul.msk.f32.vlgmr.msra.gmra.mxu1 %vm62_vm0, %v3506_v63  ;;  %3854 = vmatmul.msk.f32.vlgmr.msra.gmra.mxu2 %vm62_vm0, %v3506_v63 }
0x1041   :  { %v3489_v17 = vmul.f32 0.5, %v3488_v49 }
0x1043   :  { %v3490_v34 = vsub.f32 1.5, %v3489_v17 }
0x1045   :  { %v3491_v15 = vmul.f32 %v4016_v50, %v3490_v34 }
0x1047   :  { %v3495_v27 = vsel %vm3494_vm5, %v4016_v50, %v3491_v15 }
0x1048   :  { %v3497_v12 = vmul.f32 %v3495_v27, %v5656_v7 }
0x104a   :  { %v3502_v33 = vmul.f32 %v3921_v43, %v3497_v12 }
0x104c   :  { %v3507_v54 = vadd.f32 %v3922_v10, %v3502_v33 }
0x104e   :  { %3837 = vmatmul.msk.f32.gmra.mxu1 %vm62_vm0, %v3507_v54  ;;  %3855 = vmatmul.msk.f32.gmra.mxu2 %vm62_vm0, %v3507_v54 }
0x10bd   :  { %v3659_v22 = vpop.f32.mrf.mxu1 }
0x10be   :  { %3688 = vst [vmem:[%s5773_s17] sm:$0xff] %v3659_v22 }
0x10c3   :  { %v3682_v18 = vpop.f32.mrf.mxu2 }
0x10c4   :  { %3689 = vst [vmem:[%s5773_s17 + $0x8] sm:$0xff] %v3682_v18 }
0x10cb   :  { %v3662_v20 = vpop.f32.mrf.mxu1 }
0x10cc   :  { %3690 = vst [vmem:[%s5773_s17 + $0x10] sm:$0xff] %v3662_v20 }
0x10d1   :  { %v3685_v13 = vpop.f32.mrf.mxu2 }
0x10d2   :  { %3691 = vst [vmem:[%s5773_s17 + $0x18] sm:$0xff] %v3685_v13 }

</bundles_post_ra>
